<compile_context>
chip_gen: v7x
topology: tpu7x:2x2x1
jax: 0.10.0
libtpu: 0.0.40
codegen_flags: <defaults>
</compile_context>

<pallas_src>
import functools
import math

import jax
import jax.numpy as jnp
import numpy as np
from jax.experimental import pallas as pl
from jax.experimental.pallas import tpu as pltpu


# ----------------------------------------------------------------------------
# shared math helpers (plain-array; used inside the kernel and the reference)
# ----------------------------------------------------------------------------
def _layernorm(x, gamma, beta, eps=1e-5):
    mu = jnp.mean(x, axis=-1, keepdims=True)
    xc = x - mu
    var = jnp.mean(xc * xc, axis=-1, keepdims=True)
    return xc * jax.lax.rsqrt(var + eps) * gamma + beta


def _swish(x):
    return x * jax.nn.sigmoid(x)


def _w_spec(arr):
    nd = arr.ndim
    return pl.BlockSpec(arr.shape, lambda bb, _nd=nd: (0,) * _nd)


# ----------------------------------------------------------------------------
# Fused encoder-layer kernel (one grid step per batch element)
# ----------------------------------------------------------------------------
def _layer_kernel(
        x_ref, mask_ref, mp_ref, pos_ref,
        mac_g_ref, mac_b_ref, mac_w1_ref, mac_b1_ref, mac_w2_ref, mac_b2_ref,
        mha_g_ref, mha_b_ref,
        wq_ref, bq_ref, wk_ref, bk_ref, wv_ref, bv_ref, wp_ref,
        pbu_ref, pbv_ref, wo_ref, bo_ref,
        conv_g_ref, conv_b_ref, pw1w_ref, pw1b_ref, dww_ref, dwb_ref,
        lng_ref, lnb_ref, pw2w_ref, pw2b_ref,
        ffg_ref, ffb_ref, ffw1_ref, ffb1_ref, ffw2_ref, ffb2_ref,
        fing_ref, finb_ref,
        o_ref, cache_ref,
        *, n_head, d_k, kernel_size):
    f32 = jnp.float32
    bf16 = jnp.bfloat16

    x = x_ref[...]                                       # (T, D) f32
    T, D = x.shape

    def ffn(xx, g, b, w1, b1, w2, b2):
        xn = _layernorm(xx, g, b)
        h = jnp.dot(xn.astype(bf16), w1, preferred_element_type=f32) + b1
        h = _swish(h)
        y = jnp.dot(h.astype(bf16), w2, preferred_element_type=f32) + b2
        return xx + 0.5 * y

    # ---------------- macaron feed-forward ----------------
    x = ffn(x, mac_g_ref[...], mac_b_ref[...], mac_w1_ref[...], mac_b1_ref[...],
            mac_w2_ref[...], mac_b2_ref[...])

    # ---------------- rel-pos multi-head self-attention ----------------
    xn = _layernorm(x, mha_g_ref[...], mha_b_ref[...])
    xn16 = xn.astype(bf16)
    q = jnp.dot(xn16, wq_ref[...], preferred_element_type=f32) + bq_ref[...]
    k = jnp.dot(xn16, wk_ref[...], preferred_element_type=f32) + bk_ref[...]
    v = jnp.dot(xn16, wv_ref[...], preferred_element_type=f32) + bv_ref[...]
    p = jnp.dot(pos_ref[...].astype(bf16), wp_ref[...], preferred_element_type=f32)

    # mask: int8 0/1 -> f32 multiplier + additive bias (hoisted out of head loop)
    maskf = mask_ref[...].astype(f32)                    # (T, T)
    neg = (maskf - 1.0) * 1e9                            # 0 where valid, -1e9 masked
    scale = 1.0 / math.sqrt(d_k)
    q_u = ((q + pbu_ref[...]) * scale).astype(bf16)      # pos-bias adds + scale hoisted
    q_v = ((q + pbv_ref[...]) * scale).astype(bf16)
    k16 = k.astype(bf16)
    v16 = v.astype(bf16)
    p16 = p.astype(bf16)
    wo16 = wo_ref[...]                                   # (D, D) bf16

    dn = (((1,), (1,)), ((), ()))                        # contract last dims (A @ B^T)
    att_acc = jnp.zeros((T, D), f32)
    for hh in range(n_head):                             # static unroll over heads
        sl = slice(hh * d_k, (hh + 1) * d_k)
        ac = jax.lax.dot_general(q_u[:, sl], k16[:, sl], dn,
                                 preferred_element_type=f32)
        bd = jax.lax.dot_general(q_v[:, sl], p16[:, sl], dn,
                                 preferred_element_type=f32)
        scores = ac + bd + neg
        m = jnp.max(scores, axis=-1, keepdims=True)
        e = jnp.exp(scores - m)
        inv = pl.reciprocal(jnp.sum(e, axis=-1, keepdims=True), approx=True)
        probs = (e * inv) * maskf                        # masked_fill(0.0) after softmax
        ctx = jnp.dot(probs.astype(bf16), v16[:, sl], preferred_element_type=f32)
        # fold output projection: removes the lane concat of per-head contexts
        att_acc = att_acc + jnp.dot(ctx.astype(bf16), wo16[sl, :],
                                    preferred_element_type=f32)
        # attention cache written directly in (head, T, 2*d_k) layout
        cache_ref[hh, :, 0:d_k] = k[:, sl]
        cache_ref[hh, :, d_k:2 * d_k] = v[:, sl]
    x = x + att_acc + bo_ref[...]

    # ---------------- convolution module ----------------
    mp = mp_ref[...]                                     # (T, 1) pad mask
    xn = _layernorm(x, conv_g_ref[...], conv_b_ref[...]) * mp
    h = jnp.dot(xn.astype(bf16), pw1w_ref[...], preferred_element_type=f32) + pw1b_ref[...]
    h = h[:, :D] * jax.nn.sigmoid(h[:, D:])              # GLU over channels

    # depthwise conv, symmetric "same" padding, via XLU rolls + edge masks
    pad = (kernel_size - 1) // 2
    tidx = jax.lax.broadcasted_iota(jnp.int32, (T, 1), 0)
    dwW = dww_ref[...]                                   # (K, D)
    dwb = dwb_ref[...]                                   # (1, D)
    acc = None
    for kk in range(kernel_size):
        off = kk - pad                                   # source index = t + off
        if off == 0:
            tap = h
        else:
            rolled = pltpu.roll(h, (-off) % T, axis=0)   # rolled[t] = h[t + off]
            valid = jnp.logical_and(tidx + off >= 0, tidx + off < T)
            tap = jnp.where(valid, rolled, 0.0)
        term = tap * dwW[kk:kk + 1, :]
        acc = term + dwb if acc is None else acc + term  # bias fused with first tap

    hn = _swish(_layernorm(acc, lng_ref[...], lnb_ref[...]))
    y = jnp.dot(hn.astype(bf16), pw2w_ref[...], preferred_element_type=f32) + pw2b_ref[...]
    x = x + y * mp

    # ---------------- final feed-forward + norm_final ----------------
    x = ffn(x, ffg_ref[...], ffb_ref[...], ffw1_ref[...], ffb1_ref[...],
            ffw2_ref[...], ffb2_ref[...])
    o_ref[...] = _layernorm(x, fing_ref[...], finb_ref[...])


# ----------------------------------------------------------------------------
# Wrapper: one pallas_call for the whole layer
# ----------------------------------------------------------------------------
def chunkformer_encoder_layer(x, mask, pos_emb, mask_pad, P, *,
                              n_head, d_k, kernel_size):
    B, T, D = x.shape
    bf16 = jnp.bfloat16

    # compact mask representations (int8 mask = 4x less HBM traffic than f32)
    mask_i8 = (mask > 0.5).astype(jnp.int8)              # (B, T, T)
    mp_t = jnp.transpose(mask_pad, (0, 2, 1)).astype(x.dtype)   # (B, T, 1)
    pbu_f = P['pbu'].reshape(1, D)
    pbv_f = P['pbv'].reshape(1, D)

    weights = [
        P['mac_g'], P['mac_b'], P['mac_w1'].astype(bf16), P['mac_b1'],
        P['mac_w2'].astype(bf16), P['mac_b2'],
        P['mha_g'], P['mha_b'],
        P['wq'].astype(bf16), P['bq'], P['wk'].astype(bf16), P['bk'],
        P['wv'].astype(bf16), P['bv'], P['wp'].astype(bf16),
        pbu_f, pbv_f, P['wo'].astype(bf16), P['bo'],
        P['conv_g'], P['conv_b'], P['pw1_w'].astype(bf16), P['pw1_b'],
        P['dw_w'], P['dw_b'], P['ln_g'], P['ln_b'],
        P['pw2_w'].astype(bf16), P['pw2_b'],
        P['ff_g'], P['ff_b'], P['ff_w1'].astype(bf16), P['ff_b1'],
        P['ff_w2'].astype(bf16), P['ff_b2'],
        P['final_g'], P['final_b'],
    ]

    xspec = pl.BlockSpec((None, T, D), lambda bb: (bb, 0, 0))
    in_specs = [
        xspec,
        pl.BlockSpec((None, T, T), lambda bb: (bb, 0, 0)),       # int8 mask
        pl.BlockSpec((None, T, 1), lambda bb: (bb, 0, 0)),       # conv pad mask
        pl.BlockSpec((None, T, D), lambda bb: (0, 0, 0)),        # shared pos_emb
    ] + [_w_spec(w) for w in weights]
    out_specs = (
        xspec,
        pl.BlockSpec((None, n_head, T, 2 * d_k), lambda bb: (bb, 0, 0, 0)),
    )

    kern = functools.partial(_layer_kernel, n_head=n_head, d_k=d_k,
                             kernel_size=kernel_size)
    out, att_cache = pl.pallas_call(
        kern,
        out_shape=(jax.ShapeDtypeStruct((B, T, D), x.dtype),
                   jax.ShapeDtypeStruct((B, n_head, T, 2 * d_k), x.dtype)),
        grid=(B,),
        in_specs=in_specs,
        out_specs=out_specs,
        compiler_params=pltpu.CompilerParams(
            dimension_semantics=("parallel",),
            vmem_limit_bytes=48 * 1024 * 1024),
    )(x, mask_i8, mp_t, pos_emb, *weights)

    new_cnn_cache = jnp.zeros((0, 0, 0), x.dtype)
    return out, mask, att_cache, new_cnn_cache


# ----------------------------------------------------------------------------
# Pure-JAX reference (f32 mirror of the layer math)
# ----------------------------------------------------------------------------
def reference_forward(x, mask, pos_emb, mask_pad, P, *, n_head, d_k, K):
    B, T, D = x.shape

    def ffn(xx, g, b, w1, b1, w2, b2, scale):
        xn = _layernorm(xx, g, b)
        h = _swish(xn @ w1 + b1)
        return xx + scale * (h @ w2 + b2)

    x = ffn(x, P['mac_g'], P['mac_b'], P['mac_w1'], P['mac_b1'],
            P['mac_w2'], P['mac_b2'], 0.5)

    residual = x
    xn = _layernorm(x, P['mha_g'], P['mha_b'])
    q = xn @ P['wq'] + P['bq']
    k = xn @ P['wk'] + P['bk']
    v = xn @ P['wv'] + P['bv']
    p = pos_emb @ P['wp']

    def split(t):
        return t.reshape(t.shape[0], T, n_head, d_k).transpose(0, 2, 1, 3)

    qh, kh, vh = split(q), split(k), split(v)
    ph = jnp.broadcast_to(split(p), (B, n_head, T, d_k))
    qu = qh + P['pbu'][None, :, None, :]
    qv = qh + P['pbv'][None, :, None, :]
    ac = jnp.einsum('bhtd,bhsd->bhts', qu, kh)
    bd = jnp.einsum('bhtd,bhsd->bhts', qv, ph)
    scores = (ac + bd) / math.sqrt(d_k)
    m4 = mask[:, None, :, :]
    scores = jnp.where(m4 > 0.5, scores, -1e9)
    probs = jax.nn.softmax(scores, axis=-1) * m4
    ctx = jnp.einsum('bhts,bhsd->bhtd', probs, vh)
    ctx = ctx.transpose(0, 2, 1, 3).reshape(B, T, D)
    x = residual + ctx @ P['wo'] + P['bo']
    att_cache = jnp.concatenate([kh, vh], axis=-1)

    residual = x
    mp = jnp.transpose(mask_pad, (0, 2, 1))             # (B, T, 1)
    xn = _layernorm(x, P['conv_g'], P['conv_b']) * mp
    h = xn @ P['pw1_w'] + P['pw1_b']
    h = h[..., :D] * jax.nn.sigmoid(h[..., D:])
    pad = (K - 1) // 2
    hp = jnp.pad(h, ((0, 0), (pad, pad), (0, 0)))
    acc = jnp.zeros_like(h) + P['dw_b']
    for kk in range(K):
        acc = acc + hp[:, kk:kk + T, :] * P['dw_w'][kk][None, None, :]
    hn = _swish(_layernorm(acc, P['ln_g'], P['ln_b']))
    y = (hn @ P['pw2_w'] + P['pw2_b']) * mp
    x = residual + y

    x = ffn(x, P['ff_g'], P['ff_b'], P['ff_w1'], P['ff_b1'],
            P['ff_w2'], P['ff_b2'], 0.5)
    x = _layernorm(x, P['final_g'], P['final_b'])
    return x, att_cache


# ----------------------------------------------------------------------------
# Deterministic parameter init
# ----------------------------------------------------------------------------
def init_params(key, D, H, n_head, d_k, K):
    keys = jax.random.split(key, 40)
    it = iter(keys)

    def w(shape, scale=0.05):
        return (scale * jax.random.normal(next(it), shape)).astype(jnp.float32)

    def gamma(shape):
        return (1.0 + 0.05 * jax.random.normal(next(it), shape)).astype(jnp.float32)

    return dict(
        mac_g=gamma((1, D)), mac_b=w((1, D)),
        mac_w1=w((D, H)), mac_b1=w((1, H)), mac_w2=w((H, D)), mac_b2=w((1, D)),
        mha_g=gamma((1, D)), mha_b=w((1, D)),
        wq=w((D, D)), bq=w((1, D)), wk=w((D, D)), bk=w((1, D)),
        wv=w((D, D)), bv=w((1, D)), wp=w((D, D)),
        pbu=w((n_head, d_k)), pbv=w((n_head, d_k)),
        wo=w((D, D)), bo=w((1, D)),
        conv_g=gamma((1, D)), conv_b=w((1, D)),
        pw1_w=w((D, 2 * D)), pw1_b=w((1, 2 * D)),
        dw_w=w((K, D)), dw_b=w((1, D)),
        ln_g=gamma((1, D)), ln_b=w((1, D)),
        pw2_w=w((D, D)), pw2_b=w((1, D)),
        ff_g=gamma((1, D)), ff_b=w((1, D)),
        ff_w1=w((D, H)), ff_b1=w((1, H)), ff_w2=w((H, D)), ff_b2=w((1, D)),
        final_g=gamma((1, D)), final_b=w((1, D)),
    )


if __name__ == "__main__":
    B, T, D = 2, 16, 64
    n_head, d_k = 4, 16
    H, K = 128, 7

    key = jax.random.PRNGKey(0)
    kx, kp, kparam = jax.random.split(key, 3)
    x = jax.random.normal(kx, (B, T, D), dtype=jnp.float32)
    pos_emb = (0.1 * jax.random.normal(kp, (1, T, D))).astype(jnp.float32)
    mask = jnp.ones((B, T, T), jnp.float32)
    mask = mask.at[1, :, T - 2:].set(0.0)               # mask last 2 keys, batch 1
    mask_pad = jnp.ones((B, 1, T), jnp.float32)
    mask_pad = mask_pad.at[1, :, T - 2:].set(0.0)       # pad last 2 frames, batch 1
    P = init_params(kparam, D, H, n_head, d_k, K)

    out, mask_out, att_cache, cnn_cache = chunkformer_encoder_layer(
        x, mask, pos_emb, mask_pad, P, n_head=n_head, d_k=d_k, kernel_size=K)
    jax.block_until_ready(out)

    ref_out, ref_cache = reference_forward(
        x, mask, pos_emb, mask_pad, P, n_head=n_head, d_k=d_k, K=K)
    # bf16 matmul operands in the kernel vs f32 reference -> slightly looser tol
    np.testing.assert_allclose(np.asarray(out), np.asarray(ref_out),
                               rtol=3e-2, atol=3e-2)
    np.testing.assert_allclose(np.asarray(att_cache), np.asarray(ref_cache),
                               rtol=3e-2, atol=3e-2)
    assert out.shape == (B, T, D) and mask_out.shape == (B, T, T)
    assert att_cache.shape == (B, n_head, T, 2 * d_k)
    assert cnn_cache.shape == (0, 0, 0)
    print("KERNEL_OK")
</pallas_src>

<mosaic_0001>
module attributes {stable_mosaic.version = 11 : i64} {
  func.func @_layer_kernel(%arg0: i32, %arg1: memref<1x16x64xf32, #tpu.memory_space<vmem>>, %arg2: memref<1x16x16xi8, #tpu.memory_space<vmem>>, %arg3: memref<1x16x1xf32, #tpu.memory_space<vmem>>, %arg4: memref<1x16x64xf32, #tpu.memory_space<vmem>>, %arg5: memref<1x64xf32, #tpu.memory_space<vmem>>, %arg6: memref<1x64xf32, #tpu.memory_space<vmem>>, %arg7: memref<64x128xbf16, #tpu.memory_space<vmem>>, %arg8: memref<1x128xf32, #tpu.memory_space<vmem>>, %arg9: memref<128x64xbf16, #tpu.memory_space<vmem>>, %arg10: memref<1x64xf32, #tpu.memory_space<vmem>>, %arg11: memref<1x64xf32, #tpu.memory_space<vmem>>, %arg12: memref<1x64xf32, #tpu.memory_space<vmem>>, %arg13: memref<64x64xbf16, #tpu.memory_space<vmem>>, %arg14: memref<1x64xf32, #tpu.memory_space<vmem>>, %arg15: memref<64x64xbf16, #tpu.memory_space<vmem>>, %arg16: memref<1x64xf32, #tpu.memory_space<vmem>>, %arg17: memref<64x64xbf16, #tpu.memory_space<vmem>>, %arg18: memref<1x64xf32, #tpu.memory_space<vmem>>, %arg19: memref<64x64xbf16, #tpu.memory_space<vmem>>, %arg20: memref<1x64xf32, #tpu.memory_space<vmem>>, %arg21: memref<1x64xf32, #tpu.memory_space<vmem>>, %arg22: memref<64x64xbf16, #tpu.memory_space<vmem>>, %arg23: memref<1x64xf32, #tpu.memory_space<vmem>>, %arg24: memref<1x64xf32, #tpu.memory_space<vmem>>, %arg25: memref<1x64xf32, #tpu.memory_space<vmem>>, %arg26: memref<64x128xbf16, #tpu.memory_space<vmem>>, %arg27: memref<1x128xf32, #tpu.memory_space<vmem>>, %arg28: memref<7x64xf32, #tpu.memory_space<vmem>>, %arg29: memref<1x64xf32, #tpu.memory_space<vmem>>, %arg30: memref<1x64xf32, #tpu.memory_space<vmem>>, %arg31: memref<1x64xf32, #tpu.memory_space<vmem>>, %arg32: memref<64x64xbf16, #tpu.memory_space<vmem>>, %arg33: memref<1x64xf32, #tpu.memory_space<vmem>>, %arg34: memref<1x64xf32, #tpu.memory_space<vmem>>, %arg35: memref<1x64xf32, #tpu.memory_space<vmem>>, %arg36: memref<64x128xbf16, #tpu.memory_space<vmem>>, %arg37: memref<1x128xf32, #tpu.memory_space<vmem>>, %arg38: memref<128x64xbf16, #tpu.memory_space<vmem>>, %arg39: memref<1x64xf32, #tpu.memory_space<vmem>>, %arg40: memref<1x64xf32, #tpu.memory_space<vmem>>, %arg41: memref<1x64xf32, #tpu.memory_space<vmem>>, %arg42: memref<1x16x64xf32, #tpu.memory_space<vmem>>, %arg43: memref<1x4x16x32xf32, #tpu.memory_space<vmem>>) attributes {dimension_semantics = [#tpu.dimension_semantics<parallel>], iteration_bounds = array<i64: 2>, scalar_prefetch = 0 : i64, scratch_operands = 0 : i64, tpu.core_type = #tpu.core_type<tc>, window_params = [{transform_indices = @transform_0, window_bounds = array<i64: 1, 16, 64>}, {transform_indices = @transform_1, window_bounds = array<i64: 1, 16, 16>}, {transform_indices = @transform_2, window_bounds = array<i64: 1, 16, 1>}, {pipeline_mode = #tpu.pipeline_mode<synchronous>, transform_indices = @transform_3, window_bounds = array<i64: 1, 16, 64>}, {pipeline_mode = #tpu.pipeline_mode<synchronous>, transform_indices = @transform_4, window_bounds = array<i64: 1, 64>}, {pipeline_mode = #tpu.pipeline_mode<synchronous>, transform_indices = @transform_5, window_bounds = array<i64: 1, 64>}, {pipeline_mode = #tpu.pipeline_mode<synchronous>, transform_indices = @transform_6, window_bounds = array<i64: 64, 128>}, {pipeline_mode = #tpu.pipeline_mode<synchronous>, transform_indices = @transform_7, window_bounds = array<i64: 1, 128>}, {pipeline_mode = #tpu.pipeline_mode<synchronous>, transform_indices = @transform_8, window_bounds = array<i64: 128, 64>}, {pipeline_mode = #tpu.pipeline_mode<synchronous>, transform_indices = @transform_9, window_bounds = array<i64: 1, 64>}, {pipeline_mode = #tpu.pipeline_mode<synchronous>, transform_indices = @transform_10, window_bounds = array<i64: 1, 64>}, {pipeline_mode = #tpu.pipeline_mode<synchronous>, transform_indices = @transform_11, window_bounds = array<i64: 1, 64>}, {pipeline_mode = #tpu.pipeline_mode<synchronous>, transform_indices = @transform_12, window_bounds = array<i64: 64, 64>}, {pipeline_mode = #tpu.pipeline_mode<synchronous>, transform_indices = @transform_13, window_bounds = array<i64: 1, 64>}, {pipeline_mode = #tpu.pipeline_mode<synchronous>, transform_indices = @transform_14, window_bounds = array<i64: 64, 64>}, {pipeline_mode = #tpu.pipeline_mode<synchronous>, transform_indices = @transform_15, window_bounds = array<i64: 1, 64>}, {pipeline_mode = #tpu.pipeline_mode<synchronous>, transform_indices = @transform_16, window_bounds = array<i64: 64, 64>}, {pipeline_mode = #tpu.pipeline_mode<synchronous>, transform_indices = @transform_17, window_bounds = array<i64: 1, 64>}, {pipeline_mode = #tpu.pipeline_mode<synchronous>, transform_indices = @transform_18, window_bounds = array<i64: 64, 64>}, {pipeline_mode = #tpu.pipeline_mode<synchronous>, transform_indices = @transform_19, window_bounds = array<i64: 1, 64>}, {pipeline_mode = #tpu.pipeline_mode<synchronous>, transform_indices = @transform_20, window_bounds = array<i64: 1, 64>}, {pipeline_mode = #tpu.pipeline_mode<synchronous>, transform_indices = @transform_21, window_bounds = array<i64: 64, 64>}, {pipeline_mode = #tpu.pipeline_mode<synchronous>, transform_indices = @transform_22, window_bounds = array<i64: 1, 64>}, {pipeline_mode = #tpu.pipeline_mode<synchronous>, transform_indices = @transform_23, window_bounds = array<i64: 1, 64>}, {pipeline_mode = #tpu.pipeline_mode<synchronous>, transform_indices = @transform_24, window_bounds = array<i64: 1, 64>}, {pipeline_mode = #tpu.pipeline_mode<synchronous>, transform_indices = @transform_25, window_bounds = array<i64: 64, 128>}, {pipeline_mode = #tpu.pipeline_mode<synchronous>, transform_indices = @transform_26, window_bounds = array<i64: 1, 128>}, {pipeline_mode = #tpu.pipeline_mode<synchronous>, transform_indices = @transform_27, window_bounds = array<i64: 7, 64>}, {pipeline_mode = #tpu.pipeline_mode<synchronous>, transform_indices = @transform_28, window_bounds = array<i64: 1, 64>}, {pipeline_mode = #tpu.pipeline_mode<synchronous>, transform_indices = @transform_29, window_bounds = array<i64: 1, 64>}, {pipeline_mode = #tpu.pipeline_mode<synchronous>, transform_indices = @transform_30, window_bounds = array<i64: 1, 64>}, {pipeline_mode = #tpu.pipeline_mode<synchronous>, transform_indices = @transform_31, window_bounds = array<i64: 64, 64>}, {pipeline_mode = #tpu.pipeline_mode<synchronous>, transform_indices = @transform_32, window_bounds = array<i64: 1, 64>}, {pipeline_mode = #tpu.pipeline_mode<synchronous>, transform_indices = @transform_33, window_bounds = array<i64: 1, 64>}, {pipeline_mode = #tpu.pipeline_mode<synchronous>, transform_indices = @transform_34, window_bounds = array<i64: 1, 64>}, {pipeline_mode = #tpu.pipeline_mode<synchronous>, transform_indices = @transform_35, window_bounds = array<i64: 64, 128>}, {pipeline_mode = #tpu.pipeline_mode<synchronous>, transform_indices = @transform_36, window_bounds = array<i64: 1, 128>}, {pipeline_mode = #tpu.pipeline_mode<synchronous>, transform_indices = @transform_37, window_bounds = array<i64: 128, 64>}, {pipeline_mode = #tpu.pipeline_mode<synchronous>, transform_indices = @transform_38, window_bounds = array<i64: 1, 64>}, {pipeline_mode = #tpu.pipeline_mode<synchronous>, transform_indices = @transform_39, window_bounds = array<i64: 1, 64>}, {pipeline_mode = #tpu.pipeline_mode<synchronous>, transform_indices = @transform_40, window_bounds = array<i64: 1, 64>}, {transform_indices = @transform_41, window_bounds = array<i64: 1, 16, 64>}, {transform_indices = @transform_42, window_bounds = array<i64: 1, 4, 16, 32>}]} {
    %c0 = arith.constant 0 : index
    %c0_0 = arith.constant 0 : index
    %c0_1 = arith.constant 0 : index
    %0 = vector.load %arg1[%c0, %c0_0, %c0_1] : memref<1x16x64xf32, #tpu.memory_space<vmem>>, vector<1x16x64xf32>
    %1 = vector.shape_cast %0 : vector<1x16x64xf32> to vector<16x64xf32>
    %c0_2 = arith.constant 0 : index
    %c0_3 = arith.constant 0 : index
    %2 = vector.load %arg5[%c0_2, %c0_3] : memref<1x64xf32, #tpu.memory_space<vmem>>, vector<1x64xf32>
    %c0_4 = arith.constant 0 : index
    %c0_5 = arith.constant 0 : index
    %3 = vector.load %arg6[%c0_4, %c0_5] : memref<1x64xf32, #tpu.memory_space<vmem>>, vector<1x64xf32>
    %c0_6 = arith.constant 0 : index
    %c0_7 = arith.constant 0 : index
    %4 = vector.load %arg7[%c0_6, %c0_7] : memref<64x128xbf16, #tpu.memory_space<vmem>>, vector<64x128xbf16>
    %c0_8 = arith.constant 0 : index
    %c0_9 = arith.constant 0 : index
    %5 = vector.load %arg8[%c0_8, %c0_9] : memref<1x128xf32, #tpu.memory_space<vmem>>, vector<1x128xf32>
    %c0_10 = arith.constant 0 : index
    %c0_11 = arith.constant 0 : index
    %6 = vector.load %arg9[%c0_10, %c0_11] : memref<128x64xbf16, #tpu.memory_space<vmem>>, vector<128x64xbf16>
    %c0_12 = arith.constant 0 : index
    %c0_13 = arith.constant 0 : index
    %7 = vector.load %arg10[%c0_12, %c0_13] : memref<1x64xf32, #tpu.memory_space<vmem>>, vector<1x64xf32>
    %cst = arith.constant dense<0.000000e+00> : vector<16xf32>
    %8 = vector.multi_reduction <add>, %1, %cst [1] : vector<16x64xf32> to vector<16xf32>
    %9 = vector.shape_cast %8 : vector<16xf32> to vector<16x1xf32>
    %cst_14 = arith.constant 6.400000e+01 : f32
    %10 = vector.broadcast %cst_14 : f32 to vector<16x1xf32>
    %11 = arith.divf %9, %10 : vector<16x1xf32>
    %12 = vector.broadcast %11 : vector<16x1xf32> to vector<16x64xf32>
    %13 = arith.subf %1, %12 : vector<16x64xf32>
    %14 = arith.mulf %13, %13 : vector<16x64xf32>
    %cst_15 = arith.constant dense<0.000000e+00> : vector<16xf32>
    %15 = vector.multi_reduction <add>, %14, %cst_15 [1] : vector<16x64xf32> to vector<16xf32>
    %16 = vector.shape_cast %15 : vector<16xf32> to vector<16x1xf32>
    %cst_16 = arith.constant 6.400000e+01 : f32
    %17 = vector.broadcast %cst_16 : f32 to vector<16x1xf32>
    %18 = arith.divf %16, %17 : vector<16x1xf32>
    %cst_17 = arith.constant 9.99999974E-6 : f32
    %19 = vector.broadcast %cst_17 : f32 to vector<16x1xf32>
    %20 = arith.addf %18, %19 : vector<16x1xf32>
    %21 = math.rsqrt %20 : vector<16x1xf32>
    %22 = vector.broadcast %21 : vector<16x1xf32> to vector<16x64xf32>
    %23 = arith.mulf %13, %22 : vector<16x64xf32>
    %24 = vector.broadcast %2 : vector<1x64xf32> to vector<16x64xf32>
    %25 = arith.mulf %23, %24 : vector<16x64xf32>
    %26 = vector.broadcast %3 : vector<1x64xf32> to vector<16x64xf32>
    %27 = arith.addf %25, %26 : vector<16x64xf32>
    %28 = arith.truncf %27 : vector<16x64xf32> to vector<16x64xbf16>
    %cst_18 = arith.constant dense<0.000000e+00> : vector<16x128xf32>
    %29 = tpu.matmul %28, %4, %cst_18 {dimension_numbers = #tpu.dot_dimension_numbers<[1], [0], [0], [1], [0, 0, 1, 1], [], []>} : vector<16x64xbf16>, vector<64x128xbf16>, vector<16x128xf32> -> vector<16x128xf32>
    %30 = vector.broadcast %5 : vector<1x128xf32> to vector<16x128xf32>
    %31 = arith.addf %29, %30 : vector<16x128xf32>
    %32 = arith.negf %31 : vector<16x128xf32>
    %33 = math.exp %32 : vector<16x128xf32>
    %cst_19 = arith.constant 1.000000e+00 : f32
    %34 = vector.broadcast %cst_19 : f32 to vector<16x128xf32>
    %35 = arith.addf %34, %33 : vector<16x128xf32>
    %36 = arith.divf %34, %35 : vector<16x128xf32>
    %37 = arith.mulf %31, %36 : vector<16x128xf32>
    %38 = arith.truncf %37 : vector<16x128xf32> to vector<16x128xbf16>
    %cst_20 = arith.constant dense<0.000000e+00> : vector<16x64xf32>
    %39 = tpu.matmul %38, %6, %cst_20 {dimension_numbers = #tpu.dot_dimension_numbers<[1], [0], [0], [1], [0, 0, 1, 1], [], []>} : vector<16x128xbf16>, vector<128x64xbf16>, vector<16x64xf32> -> vector<16x64xf32>
    %40 = vector.broadcast %7 : vector<1x64xf32> to vector<16x64xf32>
    %41 = arith.addf %39, %40 : vector<16x64xf32>
    %cst_21 = arith.constant 5.000000e-01 : f32
    %42 = vector.broadcast %cst_21 : f32 to vector<16x64xf32>
    %43 = arith.mulf %42, %41 : vector<16x64xf32>
    %44 = arith.addf %1, %43 : vector<16x64xf32>
    %c0_22 = arith.constant 0 : index
    %c0_23 = arith.constant 0 : index
    %45 = vector.load %arg11[%c0_22, %c0_23] : memref<1x64xf32, #tpu.memory_space<vmem>>, vector<1x64xf32>
    %c0_24 = arith.constant 0 : index
    %c0_25 = arith.constant 0 : index
    %46 = vector.load %arg12[%c0_24, %c0_25] : memref<1x64xf32, #tpu.memory_space<vmem>>, vector<1x64xf32>
    %cst_26 = arith.constant dense<0.000000e+00> : vector<16xf32>
    %47 = vector.multi_reduction <add>, %44, %cst_26 [1] : vector<16x64xf32> to vector<16xf32>
    %48 = vector.shape_cast %47 : vector<16xf32> to vector<16x1xf32>
    %cst_27 = arith.constant 6.400000e+01 : f32
    %49 = vector.broadcast %cst_27 : f32 to vector<16x1xf32>
    %50 = arith.divf %48, %49 : vector<16x1xf32>
    %51 = vector.broadcast %50 : vector<16x1xf32> to vector<16x64xf32>
    %52 = arith.subf %44, %51 : vector<16x64xf32>
    %53 = arith.mulf %52, %52 : vector<16x64xf32>
    %cst_28 = arith.constant dense<0.000000e+00> : vector<16xf32>
    %54 = vector.multi_reduction <add>, %53, %cst_28 [1] : vector<16x64xf32> to vector<16xf32>
    %55 = vector.shape_cast %54 : vector<16xf32> to vector<16x1xf32>
    %cst_29 = arith.constant 6.400000e+01 : f32
    %56 = vector.broadcast %cst_29 : f32 to vector<16x1xf32>
    %57 = arith.divf %55, %56 : vector<16x1xf32>
    %cst_30 = arith.constant 9.99999974E-6 : f32
    %58 = vector.broadcast %cst_30 : f32 to vector<16x1xf32>
    %59 = arith.addf %57, %58 : vector<16x1xf32>
    %60 = math.rsqrt %59 : vector<16x1xf32>
    %61 = vector.broadcast %60 : vector<16x1xf32> to vector<16x64xf32>
    %62 = arith.mulf %52, %61 : vector<16x64xf32>
    %63 = vector.broadcast %45 : vector<1x64xf32> to vector<16x64xf32>
    %64 = arith.mulf %62, %63 : vector<16x64xf32>
    %65 = vector.broadcast %46 : vector<1x64xf32> to vector<16x64xf32>
    %66 = arith.addf %64, %65 : vector<16x64xf32>
    %67 = arith.truncf %66 : vector<16x64xf32> to vector<16x64xbf16>
    %c0_31 = arith.constant 0 : index
    %c0_32 = arith.constant 0 : index
    %68 = vector.load %arg13[%c0_31, %c0_32] : memref<64x64xbf16, #tpu.memory_space<vmem>>, vector<64x64xbf16>
    %cst_33 = arith.constant dense<0.000000e+00> : vector<16x64xf32>
    %69 = tpu.matmul %67, %68, %cst_33 {dimension_numbers = #tpu.dot_dimension_numbers<[1], [0], [0], [1], [0, 0, 1, 1], [], []>} : vector<16x64xbf16>, vector<64x64xbf16>, vector<16x64xf32> -> vector<16x64xf32>
    %c0_34 = arith.constant 0 : index
    %c0_35 = arith.constant 0 : index
    %70 = vector.load %arg14[%c0_34, %c0_35] : memref<1x64xf32, #tpu.memory_space<vmem>>, vector<1x64xf32>
    %71 = vector.broadcast %70 : vector<1x64xf32> to vector<16x64xf32>
    %72 = arith.addf %69, %71 : vector<16x64xf32>
    %c0_36 = arith.constant 0 : index
    %c0_37 = arith.constant 0 : index
    %73 = vector.load %arg15[%c0_36, %c0_37] : memref<64x64xbf16, #tpu.memory_space<vmem>>, vector<64x64xbf16>
    %cst_38 = arith.constant dense<0.000000e+00> : vector<16x64xf32>
    %74 = tpu.matmul %67, %73, %cst_38 {dimension_numbers = #tpu.dot_dimension_numbers<[1], [0], [0], [1], [0, 0, 1, 1], [], []>} : vector<16x64xbf16>, vector<64x64xbf16>, vector<16x64xf32> -> vector<16x64xf32>
    %c0_39 = arith.constant 0 : index
    %c0_40 = arith.constant 0 : index
    %75 = vector.load %arg16[%c0_39, %c0_40] : memref<1x64xf32, #tpu.memory_space<vmem>>, vector<1x64xf32>
    %76 = vector.broadcast %75 : vector<1x64xf32> to vector<16x64xf32>
    %77 = arith.addf %74, %76 : vector<16x64xf32>
    %c0_41 = arith.constant 0 : index
    %c0_42 = arith.constant 0 : index
    %78 = vector.load %arg17[%c0_41, %c0_42] : memref<64x64xbf16, #tpu.memory_space<vmem>>, vector<64x64xbf16>
    %cst_43 = arith.constant dense<0.000000e+00> : vector<16x64xf32>
    %79 = tpu.matmul %67, %78, %cst_43 {dimension_numbers = #tpu.dot_dimension_numbers<[1], [0], [0], [1], [0, 0, 1, 1], [], []>} : vector<16x64xbf16>, vector<64x64xbf16>, vector<16x64xf32> -> vector<16x64xf32>
    %c0_44 = arith.constant 0 : index
    %c0_45 = arith.constant 0 : index
    %80 = vector.load %arg18[%c0_44, %c0_45] : memref<1x64xf32, #tpu.memory_space<vmem>>, vector<1x64xf32>
    %81 = vector.broadcast %80 : vector<1x64xf32> to vector<16x64xf32>
    %82 = arith.addf %79, %81 : vector<16x64xf32>
    %c0_46 = arith.constant 0 : index
    %c0_47 = arith.constant 0 : index
    %c0_48 = arith.constant 0 : index
    %83 = vector.load %arg4[%c0_46, %c0_47, %c0_48] : memref<1x16x64xf32, #tpu.memory_space<vmem>>, vector<1x16x64xf32>
    %84 = vector.shape_cast %83 : vector<1x16x64xf32> to vector<16x64xf32>
    %85 = arith.truncf %84 : vector<16x64xf32> to vector<16x64xbf16>
    %c0_49 = arith.constant 0 : index
    %c0_50 = arith.constant 0 : index
    %86 = vector.load %arg19[%c0_49, %c0_50] : memref<64x64xbf16, #tpu.memory_space<vmem>>, vector<64x64xbf16>
    %cst_51 = arith.constant dense<0.000000e+00> : vector<16x64xf32>
    %87 = tpu.matmul %85, %86, %cst_51 {dimension_numbers = #tpu.dot_dimension_numbers<[1], [0], [0], [1], [0, 0, 1, 1], [], []>} : vector<16x64xbf16>, vector<64x64xbf16>, vector<16x64xf32> -> vector<16x64xf32>
    %c0_52 = arith.constant 0 : index
    %c0_53 = arith.constant 0 : index
    %c0_54 = arith.constant 0 : index
    %88 = vector.load %arg2[%c0_52, %c0_53, %c0_54] : memref<1x16x16xi8, #tpu.memory_space<vmem>>, vector<1x16x16xi8>
    %89 = vector.shape_cast %88 : vector<1x16x16xi8> to vector<16x16xi8>
    %90 = arith.sitofp %89 : vector<16x16xi8> to vector<16x16xf32>
    %cst_55 = arith.constant 1.000000e+00 : f32
    %91 = vector.broadcast %cst_55 : f32 to vector<16x16xf32>
    %92 = arith.subf %90, %91 : vector<16x16xf32>
    %cst_56 = arith.constant 1.000000e+09 : f32
    %93 = vector.broadcast %cst_56 : f32 to vector<16x16xf32>
    %94 = arith.mulf %92, %93 : vector<16x16xf32>
    %c0_57 = arith.constant 0 : index
    %c0_58 = arith.constant 0 : index
    %95 = vector.load %arg20[%c0_57, %c0_58] : memref<1x64xf32, #tpu.memory_space<vmem>>, vector<1x64xf32>
    %96 = vector.broadcast %95 : vector<1x64xf32> to vector<16x64xf32>
    %97 = arith.addf %72, %96 : vector<16x64xf32>
    %cst_59 = arith.constant 2.500000e-01 : f32
    %98 = vector.broadcast %cst_59 : f32 to vector<16x64xf32>
    %99 = arith.mulf %97, %98 : vector<16x64xf32>
    %100 = arith.truncf %99 : vector<16x64xf32> to vector<16x64xbf16>
    %c0_60 = arith.constant 0 : index
    %c0_61 = arith.constant 0 : index
    %101 = vector.load %arg21[%c0_60, %c0_61] : memref<1x64xf32, #tpu.memory_space<vmem>>, vector<1x64xf32>
    %102 = vector.broadcast %101 : vector<1x64xf32> to vector<16x64xf32>
    %103 = arith.addf %72, %102 : vector<16x64xf32>
    %cst_62 = arith.constant 2.500000e-01 : f32
    %104 = vector.broadcast %cst_62 : f32 to vector<16x64xf32>
    %105 = arith.mulf %103, %104 : vector<16x64xf32>
    %106 = arith.truncf %105 : vector<16x64xf32> to vector<16x64xbf16>
    %107 = arith.truncf %77 : vector<16x64xf32> to vector<16x64xbf16>
    %108 = arith.truncf %82 : vector<16x64xf32> to vector<16x64xbf16>
    %109 = arith.truncf %87 : vector<16x64xf32> to vector<16x64xbf16>
    %c0_63 = arith.constant 0 : index
    %c0_64 = arith.constant 0 : index
    %110 = vector.load %arg22[%c0_63, %c0_64] : memref<64x64xbf16, #tpu.memory_space<vmem>>, vector<64x64xbf16>
    %cst_65 = arith.constant 0.000000e+00 : f32
    %111 = vector.broadcast %cst_65 : f32 to vector<16x64xf32>
    %112 = vector.extract_strided_slice %100 {offsets = [0, 0], sizes = [16, 16], strides = [1, 1]} : vector<16x64xbf16> to vector<16x16xbf16>
    %113 = vector.extract_strided_slice %107 {offsets = [0, 0], sizes = [16, 16], strides = [1, 1]} : vector<16x64xbf16> to vector<16x16xbf16>
    %cst_66 = arith.constant dense<0.000000e+00> : vector<16x16xf32>
    %114 = tpu.matmul %112, %113, %cst_66 {dimension_numbers = #tpu.dot_dimension_numbers<[1], [1], [0], [0], [0, 0, 1, 0], [], []>} : vector<16x16xbf16>, vector<16x16xbf16>, vector<16x16xf32> -> vector<16x16xf32>
    %115 = vector.extract_strided_slice %106 {offsets = [0, 0], sizes = [16, 16], strides = [1, 1]} : vector<16x64xbf16> to vector<16x16xbf16>
    %116 = vector.extract_strided_slice %109 {offsets = [0, 0], sizes = [16, 16], strides = [1, 1]} : vector<16x64xbf16> to vector<16x16xbf16>
    %cst_67 = arith.constant dense<0.000000e+00> : vector<16x16xf32>
    %117 = tpu.matmul %115, %116, %cst_67 {dimension_numbers = #tpu.dot_dimension_numbers<[1], [1], [0], [0], [0, 0, 1, 0], [], []>} : vector<16x16xbf16>, vector<16x16xbf16>, vector<16x16xf32> -> vector<16x16xf32>
    %118 = arith.addf %114, %117 : vector<16x16xf32>
    %119 = arith.addf %118, %94 : vector<16x16xf32>
    %cst_68 = arith.constant dense<0xFF800000> : vector<16xf32>
    %120 = vector.multi_reduction <maximumf>, %119, %cst_68 [1] : vector<16x16xf32> to vector<16xf32>
    %121 = vector.shape_cast %120 : vector<16xf32> to vector<16x1xf32>
    %122 = vector.broadcast %121 : vector<16x1xf32> to vector<16x16xf32>
    %123 = arith.subf %119, %122 : vector<16x16xf32>
    %124 = math.exp %123 : vector<16x16xf32>
    %cst_69 = arith.constant dense<0.000000e+00> : vector<16xf32>
    %125 = vector.multi_reduction <add>, %124, %cst_69 [1] : vector<16x16xf32> to vector<16xf32>
    %126 = vector.shape_cast %125 : vector<16xf32> to vector<16x1xf32>
    %127 = tpu.reciprocal %126 {approx = true} : vector<16x1xf32> -> vector<16x1xf32>
    %128 = vector.broadcast %127 : vector<16x1xf32> to vector<16x16xf32>
    %129 = arith.mulf %124, %128 : vector<16x16xf32>
    %130 = arith.mulf %129, %90 : vector<16x16xf32>
    %131 = arith.truncf %130 : vector<16x16xf32> to vector<16x16xbf16>
    %132 = vector.extract_strided_slice %108 {offsets = [0, 0], sizes = [16, 16], strides = [1, 1]} : vector<16x64xbf16> to vector<16x16xbf16>
    %cst_70 = arith.constant dense<0.000000e+00> : vector<16x16xf32>
    %133 = tpu.matmul %131, %132, %cst_70 {dimension_numbers = #tpu.dot_dimension_numbers<[1], [0], [0], [1], [0, 0, 1, 1], [], []>} : vector<16x16xbf16>, vector<16x16xbf16>, vector<16x16xf32> -> vector<16x16xf32>
    %134 = arith.truncf %133 : vector<16x16xf32> to vector<16x16xbf16>
    %135 = vector.extract_strided_slice %110 {offsets = [0, 0], sizes = [16, 64], strides = [1, 1]} : vector<64x64xbf16> to vector<16x64xbf16>
    %cst_71 = arith.constant dense<0.000000e+00> : vector<16x64xf32>
    %136 = tpu.matmul %134, %135, %cst_71 {dimension_numbers = #tpu.dot_dimension_numbers<[1], [0], [0], [1], [0, 0, 1, 1], [], []>} : vector<16x16xbf16>, vector<16x64xbf16>, vector<16x64xf32> -> vector<16x64xf32>
    %137 = arith.addf %111, %136 : vector<16x64xf32>
    %138 = vector.extract_strided_slice %77 {offsets = [0, 0], sizes = [16, 16], strides = [1, 1]} : vector<16x64xf32> to vector<16x16xf32>
    %c0_72 = arith.constant 0 : index
    %c0_73 = arith.constant 0 : index
    %c0_74 = arith.constant 0 : index
    %c0_75 = arith.constant 0 : index
    %139 = vector.load %arg43[%c0_72, %c0_73, %c0_74, %c0_75] : memref<1x4x16x32xf32, #tpu.memory_space<vmem>>, vector<1x1x16x16xf32>
    %140 = vector.shape_cast %139 : vector<1x1x16x16xf32> to vector<16x16xf32>
    %141 = vector.shape_cast %138 : vector<16x16xf32> to vector<1x1x16x16xf32>
    tpu.vector_store %arg43[%c0_72, %c0_73, %c0_74, %c0_75], %141 {strides = array<i32>} : memref<1x4x16x32xf32, #tpu.memory_space<vmem>>, vector<1x1x16x16xf32>,
    %142 = vector.extract_strided_slice %82 {offsets = [0, 0], sizes = [16, 16], strides = [1, 1]} : vector<16x64xf32> to vector<16x16xf32>
    %c0_76 = arith.constant 0 : index
    %c0_77 = arith.constant 0 : index
    %c0_78 = arith.constant 0 : index
    %c16 = arith.constant 16 : index
    %143 = vector.load %arg43[%c0_76, %c0_77, %c0_78, %c16] : memref<1x4x16x32xf32, #tpu.memory_space<vmem>>, vector<1x1x16x16xf32>
    %144 = vector.shape_cast %143 : vector<1x1x16x16xf32> to vector<16x16xf32>
    %145 = vector.shape_cast %142 : vector<16x16xf32> to vector<1x1x16x16xf32>
    tpu.vector_store %arg43[%c0_76, %c0_77, %c0_78, %c16], %145 {strides = array<i32>} : memref<1x4x16x32xf32, #tpu.memory_space<vmem>>, vector<1x1x16x16xf32>,
    %146 = vector.extract_strided_slice %100 {offsets = [0, 16], sizes = [16, 16], strides = [1, 1]} : vector<16x64xbf16> to vector<16x16xbf16>
    %147 = vector.extract_strided_slice %107 {offsets = [0, 16], sizes = [16, 16], strides = [1, 1]} : vector<16x64xbf16> to vector<16x16xbf16>
    %cst_79 = arith.constant dense<0.000000e+00> : vector<16x16xf32>
    %148 = tpu.matmul %146, %147, %cst_79 {dimension_numbers = #tpu.dot_dimension_numbers<[1], [1], [0], [0], [0, 0, 1, 0], [], []>} : vector<16x16xbf16>, vector<16x16xbf16>, vector<16x16xf32> -> vector<16x16xf32>
    %149 = vector.extract_strided_slice %106 {offsets = [0, 16], sizes = [16, 16], strides = [1, 1]} : vector<16x64xbf16> to vector<16x16xbf16>
    %150 = vector.extract_strided_slice %109 {offsets = [0, 16], sizes = [16, 16], strides = [1, 1]} : vector<16x64xbf16> to vector<16x16xbf16>
    %cst_80 = arith.constant dense<0.000000e+00> : vector<16x16xf32>
    %151 = tpu.matmul %149, %150, %cst_80 {dimension_numbers = #tpu.dot_dimension_numbers<[1], [1], [0], [0], [0, 0, 1, 0], [], []>} : vector<16x16xbf16>, vector<16x16xbf16>, vector<16x16xf32> -> vector<16x16xf32>
    %152 = arith.addf %148, %151 : vector<16x16xf32>
    %153 = arith.addf %152, %94 : vector<16x16xf32>
    %cst_81 = arith.constant dense<0xFF800000> : vector<16xf32>
    %154 = vector.multi_reduction <maximumf>, %153, %cst_81 [1] : vector<16x16xf32> to vector<16xf32>
    %155 = vector.shape_cast %154 : vector<16xf32> to vector<16x1xf32>
    %156 = vector.broadcast %155 : vector<16x1xf32> to vector<16x16xf32>
    %157 = arith.subf %153, %156 : vector<16x16xf32>
    %158 = math.exp %157 : vector<16x16xf32>
    %cst_82 = arith.constant dense<0.000000e+00> : vector<16xf32>
    %159 = vector.multi_reduction <add>, %158, %cst_82 [1] : vector<16x16xf32> to vector<16xf32>
    %160 = vector.shape_cast %159 : vector<16xf32> to vector<16x1xf32>
    %161 = tpu.reciprocal %160 {approx = true} : vector<16x1xf32> -> vector<16x1xf32>
    %162 = vector.broadcast %161 : vector<16x1xf32> to vector<16x16xf32>
    %163 = arith.mulf %158, %162 : vector<16x16xf32>
    %164 = arith.mulf %163, %90 : vector<16x16xf32>
    %165 = arith.truncf %164 : vector<16x16xf32> to vector<16x16xbf16>
    %166 = vector.extract_strided_slice %108 {offsets = [0, 16], sizes = [16, 16], strides = [1, 1]} : vector<16x64xbf16> to vector<16x16xbf16>
    %cst_83 = arith.constant dense<0.000000e+00> : vector<16x16xf32>
    %167 = tpu.matmul %165, %166, %cst_83 {dimension_numbers = #tpu.dot_dimension_numbers<[1], [0], [0], [1], [0, 0, 1, 1], [], []>} : vector<16x16xbf16>, vector<16x16xbf16>, vector<16x16xf32> -> vector<16x16xf32>
    %168 = arith.truncf %167 : vector<16x16xf32> to vector<16x16xbf16>
    %169 = vector.extract_strided_slice %110 {offsets = [16, 0], sizes = [16, 64], strides = [1, 1]} : vector<64x64xbf16> to vector<16x64xbf16>
    %cst_84 = arith.constant dense<0.000000e+00> : vector<16x64xf32>
    %170 = tpu.matmul %168, %169, %cst_84 {dimension_numbers = #tpu.dot_dimension_numbers<[1], [0], [0], [1], [0, 0, 1, 1], [], []>} : vector<16x16xbf16>, vector<16x64xbf16>, vector<16x64xf32> -> vector<16x64xf32>
    %171 = arith.addf %137, %170 : vector<16x64xf32>
    %172 = vector.extract_strided_slice %77 {offsets = [0, 16], sizes = [16, 16], strides = [1, 1]} : vector<16x64xf32> to vector<16x16xf32>
    %c0_85 = arith.constant 0 : index
    %c1 = arith.constant 1 : index
    %c0_86 = arith.constant 0 : index
    %c0_87 = arith.constant 0 : index
    %173 = vector.load %arg43[%c0_85, %c1, %c0_86, %c0_87] : memref<1x4x16x32xf32, #tpu.memory_space<vmem>>, vector<1x1x16x16xf32>
    %174 = vector.shape_cast %173 : vector<1x1x16x16xf32> to vector<16x16xf32>
    %175 = vector.shape_cast %172 : vector<16x16xf32> to vector<1x1x16x16xf32>
    tpu.vector_store %arg43[%c0_85, %c1, %c0_86, %c0_87], %175 {strides = array<i32>} : memref<1x4x16x32xf32, #tpu.memory_space<vmem>>, vector<1x1x16x16xf32>,
    %176 = vector.extract_strided_slice %82 {offsets = [0, 16], sizes = [16, 16], strides = [1, 1]} : vector<16x64xf32> to vector<16x16xf32>
    %c0_88 = arith.constant 0 : index
    %c1_89 = arith.constant 1 : index
    %c0_90 = arith.constant 0 : index
    %c16_91 = arith.constant 16 : index
    %177 = vector.load %arg43[%c0_88, %c1_89, %c0_90, %c16_91] : memref<1x4x16x32xf32, #tpu.memory_space<vmem>>, vector<1x1x16x16xf32>
    %178 = vector.shape_cast %177 : vector<1x1x16x16xf32> to vector<16x16xf32>
    %179 = vector.shape_cast %176 : vector<16x16xf32> to vector<1x1x16x16xf32>
    tpu.vector_store %arg43[%c0_88, %c1_89, %c0_90, %c16_91], %179 {strides = array<i32>} : memref<1x4x16x32xf32, #tpu.memory_space<vmem>>, vector<1x1x16x16xf32>,
    %180 = vector.extract_strided_slice %100 {offsets = [0, 32], sizes = [16, 16], strides = [1, 1]} : vector<16x64xbf16> to vector<16x16xbf16>
    %181 = vector.extract_strided_slice %107 {offsets = [0, 32], sizes = [16, 16], strides = [1, 1]} : vector<16x64xbf16> to vector<16x16xbf16>
    %cst_92 = arith.constant dense<0.000000e+00> : vector<16x16xf32>
    %182 = tpu.matmul %180, %181, %cst_92 {dimension_numbers = #tpu.dot_dimension_numbers<[1], [1], [0], [0], [0, 0, 1, 0], [], []>} : vector<16x16xbf16>, vector<16x16xbf16>, vector<16x16xf32> -> vector<16x16xf32>
    %183 = vector.extract_strided_slice %106 {offsets = [0, 32], sizes = [16, 16], strides = [1, 1]} : vector<16x64xbf16> to vector<16x16xbf16>
    %184 = vector.extract_strided_slice %109 {offsets = [0, 32], sizes = [16, 16], strides = [1, 1]} : vector<16x64xbf16> to vector<16x16xbf16>
    %cst_93 = arith.constant dense<0.000000e+00> : vector<16x16xf32>
    %185 = tpu.matmul %183, %184, %cst_93 {dimension_numbers = #tpu.dot_dimension_numbers<[1], [1], [0], [0], [0, 0, 1, 0], [], []>} : vector<16x16xbf16>, vector<16x16xbf16>, vector<16x16xf32> -> vector<16x16xf32>
    %186 = arith.addf %182, %185 : vector<16x16xf32>
    %187 = arith.addf %186, %94 : vector<16x16xf32>
    %cst_94 = arith.constant dense<0xFF800000> : vector<16xf32>
    %188 = vector.multi_reduction <maximumf>, %187, %cst_94 [1] : vector<16x16xf32> to vector<16xf32>
    %189 = vector.shape_cast %188 : vector<16xf32> to vector<16x1xf32>
    %190 = vector.broadcast %189 : vector<16x1xf32> to vector<16x16xf32>
    %191 = arith.subf %187, %190 : vector<16x16xf32>
    %192 = math.exp %191 : vector<16x16xf32>
    %cst_95 = arith.constant dense<0.000000e+00> : vector<16xf32>
    %193 = vector.multi_reduction <add>, %192, %cst_95 [1] : vector<16x16xf32> to vector<16xf32>
    %194 = vector.shape_cast %193 : vector<16xf32> to vector<16x1xf32>
    %195 = tpu.reciprocal %194 {approx = true} : vector<16x1xf32> -> vector<16x1xf32>
    %196 = vector.broadcast %195 : vector<16x1xf32> to vector<16x16xf32>
    %197 = arith.mulf %192, %196 : vector<16x16xf32>
    %198 = arith.mulf %197, %90 : vector<16x16xf32>
    %199 = arith.truncf %198 : vector<16x16xf32> to vector<16x16xbf16>
    %200 = vector.extract_strided_slice %108 {offsets = [0, 32], sizes = [16, 16], strides = [1, 1]} : vector<16x64xbf16> to vector<16x16xbf16>
    %cst_96 = arith.constant dense<0.000000e+00> : vector<16x16xf32>
    %201 = tpu.matmul %199, %200, %cst_96 {dimension_numbers = #tpu.dot_dimension_numbers<[1], [0], [0], [1], [0, 0, 1, 1], [], []>} : vector<16x16xbf16>, vector<16x16xbf16>, vector<16x16xf32> -> vector<16x16xf32>
    %202 = arith.truncf %201 : vector<16x16xf32> to vector<16x16xbf16>
    %203 = vector.extract_strided_slice %110 {offsets = [32, 0], sizes = [16, 64], strides = [1, 1]} : vector<64x64xbf16> to vector<16x64xbf16>
    %cst_97 = arith.constant dense<0.000000e+00> : vector<16x64xf32>
    %204 = tpu.matmul %202, %203, %cst_97 {dimension_numbers = #tpu.dot_dimension_numbers<[1], [0], [0], [1], [0, 0, 1, 1], [], []>} : vector<16x16xbf16>, vector<16x64xbf16>, vector<16x64xf32> -> vector<16x64xf32>
    %205 = arith.addf %171, %204 : vector<16x64xf32>
    %206 = vector.extract_strided_slice %77 {offsets = [0, 32], sizes = [16, 16], strides = [1, 1]} : vector<16x64xf32> to vector<16x16xf32>
    %c0_98 = arith.constant 0 : index
    %c2 = arith.constant 2 : index
    %c0_99 = arith.constant 0 : index
    %c0_100 = arith.constant 0 : index
    %207 = vector.load %arg43[%c0_98, %c2, %c0_99, %c0_100] : memref<1x4x16x32xf32, #tpu.memory_space<vmem>>, vector<1x1x16x16xf32>
    %208 = vector.shape_cast %207 : vector<1x1x16x16xf32> to vector<16x16xf32>
    %209 = vector.shape_cast %206 : vector<16x16xf32> to vector<1x1x16x16xf32>
    tpu.vector_store %arg43[%c0_98, %c2, %c0_99, %c0_100], %209 {strides = array<i32>} : memref<1x4x16x32xf32, #tpu.memory_space<vmem>>, vector<1x1x16x16xf32>,
    %210 = vector.extract_strided_slice %82 {offsets = [0, 32], sizes = [16, 16], strides = [1, 1]} : vector<16x64xf32> to vector<16x16xf32>
    %c0_101 = arith.constant 0 : index
    %c2_102 = arith.constant 2 : index
    %c0_103 = arith.constant 0 : index
    %c16_104 = arith.constant 16 : index
    %211 = vector.load %arg43[%c0_101, %c2_102, %c0_103, %c16_104] : memref<1x4x16x32xf32, #tpu.memory_space<vmem>>, vector<1x1x16x16xf32>
    %212 = vector.shape_cast %211 : vector<1x1x16x16xf32> to vector<16x16xf32>
    %213 = vector.shape_cast %210 : vector<16x16xf32> to vector<1x1x16x16xf32>
    tpu.vector_store %arg43[%c0_101, %c2_102, %c0_103, %c16_104], %213 {strides = array<i32>} : memref<1x4x16x32xf32, #tpu.memory_space<vmem>>, vector<1x1x16x16xf32>,
    %214 = vector.extract_strided_slice %100 {offsets = [0, 48], sizes = [16, 16], strides = [1, 1]} : vector<16x64xbf16> to vector<16x16xbf16>
    %215 = vector.extract_strided_slice %107 {offsets = [0, 48], sizes = [16, 16], strides = [1, 1]} : vector<16x64xbf16> to vector<16x16xbf16>
    %cst_105 = arith.constant dense<0.000000e+00> : vector<16x16xf32>
    %216 = tpu.matmul %214, %215, %cst_105 {dimension_numbers = #tpu.dot_dimension_numbers<[1], [1], [0], [0], [0, 0, 1, 0], [], []>} : vector<16x16xbf16>, vector<16x16xbf16>, vector<16x16xf32> -> vector<16x16xf32>
    %217 = vector.extract_strided_slice %106 {offsets = [0, 48], sizes = [16, 16], strides = [1, 1]} : vector<16x64xbf16> to vector<16x16xbf16>
    %218 = vector.extract_strided_slice %109 {offsets = [0, 48], sizes = [16, 16], strides = [1, 1]} : vector<16x64xbf16> to vector<16x16xbf16>
    %cst_106 = arith.constant dense<0.000000e+00> : vector<16x16xf32>
    %219 = tpu.matmul %217, %218, %cst_106 {dimension_numbers = #tpu.dot_dimension_numbers<[1], [1], [0], [0], [0, 0, 1, 0], [], []>} : vector<16x16xbf16>, vector<16x16xbf16>, vector<16x16xf32> -> vector<16x16xf32>
    %220 = arith.addf %216, %219 : vector<16x16xf32>
    %221 = arith.addf %220, %94 : vector<16x16xf32>
    %cst_107 = arith.constant dense<0xFF800000> : vector<16xf32>
    %222 = vector.multi_reduction <maximumf>, %221, %cst_107 [1] : vector<16x16xf32> to vector<16xf32>
    %223 = vector.shape_cast %222 : vector<16xf32> to vector<16x1xf32>
    %224 = vector.broadcast %223 : vector<16x1xf32> to vector<16x16xf32>
    %225 = arith.subf %221, %224 : vector<16x16xf32>
    %226 = math.exp %225 : vector<16x16xf32>
    %cst_108 = arith.constant dense<0.000000e+00> : vector<16xf32>
    %227 = vector.multi_reduction <add>, %226, %cst_108 [1] : vector<16x16xf32> to vector<16xf32>
    %228 = vector.shape_cast %227 : vector<16xf32> to vector<16x1xf32>
    %229 = tpu.reciprocal %228 {approx = true} : vector<16x1xf32> -> vector<16x1xf32>
    %230 = vector.broadcast %229 : vector<16x1xf32> to vector<16x16xf32>
    %231 = arith.mulf %226, %230 : vector<16x16xf32>
    %232 = arith.mulf %231, %90 : vector<16x16xf32>
    %233 = arith.truncf %232 : vector<16x16xf32> to vector<16x16xbf16>
    %234 = vector.extract_strided_slice %108 {offsets = [0, 48], sizes = [16, 16], strides = [1, 1]} : vector<16x64xbf16> to vector<16x16xbf16>
    %cst_109 = arith.constant dense<0.000000e+00> : vector<16x16xf32>
    %235 = tpu.matmul %233, %234, %cst_109 {dimension_numbers = #tpu.dot_dimension_numbers<[1], [0], [0], [1], [0, 0, 1, 1], [], []>} : vector<16x16xbf16>, vector<16x16xbf16>, vector<16x16xf32> -> vector<16x16xf32>
    %236 = arith.truncf %235 : vector<16x16xf32> to vector<16x16xbf16>
    %237 = vector.extract_strided_slice %110 {offsets = [48, 0], sizes = [16, 64], strides = [1, 1]} : vector<64x64xbf16> to vector<16x64xbf16>
    %cst_110 = arith.constant dense<0.000000e+00> : vector<16x64xf32>
    %238 = tpu.matmul %236, %237, %cst_110 {dimension_numbers = #tpu.dot_dimension_numbers<[1], [0], [0], [1], [0, 0, 1, 1], [], []>} : vector<16x16xbf16>, vector<16x64xbf16>, vector<16x64xf32> -> vector<16x64xf32>
    %239 = arith.addf %205, %238 : vector<16x64xf32>
    %240 = vector.extract_strided_slice %77 {offsets = [0, 48], sizes = [16, 16], strides = [1, 1]} : vector<16x64xf32> to vector<16x16xf32>
    %c0_111 = arith.constant 0 : index
    %c3 = arith.constant 3 : index
    %c0_112 = arith.constant 0 : index
    %c0_113 = arith.constant 0 : index
    %241 = vector.load %arg43[%c0_111, %c3, %c0_112, %c0_113] : memref<1x4x16x32xf32, #tpu.memory_space<vmem>>, vector<1x1x16x16xf32>
    %242 = vector.shape_cast %241 : vector<1x1x16x16xf32> to vector<16x16xf32>
    %243 = vector.shape_cast %240 : vector<16x16xf32> to vector<1x1x16x16xf32>
    tpu.vector_store %arg43[%c0_111, %c3, %c0_112, %c0_113], %243 {strides = array<i32>} : memref<1x4x16x32xf32, #tpu.memory_space<vmem>>, vector<1x1x16x16xf32>,
    %244 = vector.extract_strided_slice %82 {offsets = [0, 48], sizes = [16, 16], strides = [1, 1]} : vector<16x64xf32> to vector<16x16xf32>
    %c0_114 = arith.constant 0 : index
    %c3_115 = arith.constant 3 : index
    %c0_116 = arith.constant 0 : index
    %c16_117 = arith.constant 16 : index
    %245 = vector.load %arg43[%c0_114, %c3_115, %c0_116, %c16_117] : memref<1x4x16x32xf32, #tpu.memory_space<vmem>>, vector<1x1x16x16xf32>
    %246 = vector.shape_cast %245 : vector<1x1x16x16xf32> to vector<16x16xf32>
    %247 = vector.shape_cast %244 : vector<16x16xf32> to vector<1x1x16x16xf32>
    tpu.vector_store %arg43[%c0_114, %c3_115, %c0_116, %c16_117], %247 {strides = array<i32>} : memref<1x4x16x32xf32, #tpu.memory_space<vmem>>, vector<1x1x16x16xf32>,
    %248 = arith.addf %44, %239 : vector<16x64xf32>
    %c0_118 = arith.constant 0 : index
    %c0_119 = arith.constant 0 : index
    %249 = vector.load %arg23[%c0_118, %c0_119] : memref<1x64xf32, #tpu.memory_space<vmem>>, vector<1x64xf32>
    %250 = vector.broadcast %249 : vector<1x64xf32> to vector<16x64xf32>
    %251 = arith.addf %248, %250 : vector<16x64xf32>
    %c0_120 = arith.constant 0 : index
    %c0_121 = arith.constant 0 : index
    %c0_122 = arith.constant 0 : index
    %252 = vector.load %arg3[%c0_120, %c0_121, %c0_122] : memref<1x16x1xf32, #tpu.memory_space<vmem>>, vector<1x16x1xf32>
    %253 = vector.shape_cast %252 : vector<1x16x1xf32> to vector<16x1xf32>
    %c0_123 = arith.constant 0 : index
    %c0_124 = arith.constant 0 : index
    %254 = vector.load %arg24[%c0_123, %c0_124] : memref<1x64xf32, #tpu.memory_space<vmem>>, vector<1x64xf32>
    %c0_125 = arith.constant 0 : index
    %c0_126 = arith.constant 0 : index
    %255 = vector.load %arg25[%c0_125, %c0_126] : memref<1x64xf32, #tpu.memory_space<vmem>>, vector<1x64xf32>
    %cst_127 = arith.constant dense<0.000000e+00> : vector<16xf32>
    %256 = vector.multi_reduction <add>, %251, %cst_127 [1] : vector<16x64xf32> to vector<16xf32>
    %257 = vector.shape_cast %256 : vector<16xf32> to vector<16x1xf32>
    %cst_128 = arith.constant 6.400000e+01 : f32
    %258 = vector.broadcast %cst_128 : f32 to vector<16x1xf32>
    %259 = arith.divf %257, %258 : vector<16x1xf32>
    %260 = vector.broadcast %259 : vector<16x1xf32> to vector<16x64xf32>
    %261 = arith.subf %251, %260 : vector<16x64xf32>
    %262 = arith.mulf %261, %261 : vector<16x64xf32>
    %cst_129 = arith.constant dense<0.000000e+00> : vector<16xf32>
    %263 = vector.multi_reduction <add>, %262, %cst_129 [1] : vector<16x64xf32> to vector<16xf32>
    %264 = vector.shape_cast %263 : vector<16xf32> to vector<16x1xf32>
    %cst_130 = arith.constant 6.400000e+01 : f32
    %265 = vector.broadcast %cst_130 : f32 to vector<16x1xf32>
    %266 = arith.divf %264, %265 : vector<16x1xf32>
    %cst_131 = arith.constant 9.99999974E-6 : f32
    %267 = vector.broadcast %cst_131 : f32 to vector<16x1xf32>
    %268 = arith.addf %266, %267 : vector<16x1xf32>
    %269 = math.rsqrt %268 : vector<16x1xf32>
    %270 = vector.broadcast %269 : vector<16x1xf32> to vector<16x64xf32>
    %271 = arith.mulf %261, %270 : vector<16x64xf32>
    %272 = vector.broadcast %254 : vector<1x64xf32> to vector<16x64xf32>
    %273 = arith.mulf %271, %272 : vector<16x64xf32>
    %274 = vector.broadcast %255 : vector<1x64xf32> to vector<16x64xf32>
    %275 = arith.addf %273, %274 : vector<16x64xf32>
    %276 = vector.broadcast %253 : vector<16x1xf32> to vector<16x64xf32>
    %277 = arith.mulf %275, %276 : vector<16x64xf32>
    %278 = arith.truncf %277 : vector<16x64xf32> to vector<16x64xbf16>
    %c0_132 = arith.constant 0 : index
    %c0_133 = arith.constant 0 : index
    %279 = vector.load %arg26[%c0_132, %c0_133] : memref<64x128xbf16, #tpu.memory_space<vmem>>, vector<64x128xbf16>
    %cst_134 = arith.constant dense<0.000000e+00> : vector<16x128xf32>
    %280 = tpu.matmul %278, %279, %cst_134 {dimension_numbers = #tpu.dot_dimension_numbers<[1], [0], [0], [1], [0, 0, 1, 1], [], []>} : vector<16x64xbf16>, vector<64x128xbf16>, vector<16x128xf32> -> vector<16x128xf32>
    %c0_135 = arith.constant 0 : index
    %c0_136 = arith.constant 0 : index
    %281 = vector.load %arg27[%c0_135, %c0_136] : memref<1x128xf32, #tpu.memory_space<vmem>>, vector<1x128xf32>
    %282 = vector.broadcast %281 : vector<1x128xf32> to vector<16x128xf32>
    %283 = arith.addf %280, %282 : vector<16x128xf32>
    %284 = vector.extract_strided_slice %283 {offsets = [0, 0], sizes = [16, 64], strides = [1, 1]} : vector<16x128xf32> to vector<16x64xf32>
    %285 = vector.extract_strided_slice %283 {offsets = [0, 64], sizes = [16, 64], strides = [1, 1]} : vector<16x128xf32> to vector<16x64xf32>
    %286 = arith.negf %285 : vector<16x64xf32>
    %287 = math.exp %286 : vector<16x64xf32>
    %cst_137 = arith.constant 1.000000e+00 : f32
    %288 = vector.broadcast %cst_137 : f32 to vector<16x64xf32>
    %289 = arith.addf %288, %287 : vector<16x64xf32>
    %290 = arith.divf %288, %289 : vector<16x64xf32>
    %291 = arith.mulf %284, %290 : vector<16x64xf32>
    %292 = tpu.iota {dimensions = array<i32: 0>} : vector<16x1xi32>
    %c0_138 = arith.constant 0 : index
    %c0_139 = arith.constant 0 : index
    %293 = vector.load %arg28[%c0_138, %c0_139] : memref<7x64xf32, #tpu.memory_space<vmem>>, vector<7x64xf32>
    %c0_140 = arith.constant 0 : index
    %c0_141 = arith.constant 0 : index
    %294 = vector.load %arg29[%c0_140, %c0_141] : memref<1x64xf32, #tpu.memory_space<vmem>>, vector<1x64xf32>
    %c3_i32 = arith.constant 3 : i32
    %295 = tpu.dynamic_rotate %291 by %c3_i32 dim 0 : vector<16x64xf32>, i32 -> vector<16x64xf32>
    %c-3_i32 = arith.constant -3 : i32
    %296 = vector.broadcast %c-3_i32 : i32 to vector<16x1xi32>
    %297 = arith.addi %292, %296 : vector<16x1xi32>
    %c0_i32 = arith.constant 0 : i32
    %298 = vector.broadcast %c0_i32 : i32 to vector<16x1xi32>
    %299 = arith.cmpi sge, %297, %298 : vector<16x1xi32>
    %c-3_i32_142 = arith.constant -3 : i32
    %300 = vector.broadcast %c-3_i32_142 : i32 to vector<16x1xi32>
    %301 = arith.addi %292, %300 : vector<16x1xi32>
    %c16_i32 = arith.constant 16 : i32
    %302 = vector.broadcast %c16_i32 : i32 to vector<16x1xi32>
    %303 = arith.cmpi slt, %301, %302 : vector<16x1xi32>
    %304 = arith.andi %299, %303 : vector<16x1xi1>
    %cst_143 = arith.constant 0.000000e+00 : f32
    %305 = vector.shape_cast %304 : vector<16x1xi1> to vector<16x1xi1>
    %306 = vector.broadcast %305 : vector<16x1xi1> to vector<16x64xi1>
    %307 = vector.broadcast %cst_143 : f32 to vector<16x64xf32>
    %308 = arith.select %306, %295, %307 : vector<16x64xi1>, vector<16x64xf32>
    %309 = vector.extract_strided_slice %293 {offsets = [0, 0], sizes = [1, 64], strides = [1, 1]} : vector<7x64xf32> to vector<1x64xf32>
    %310 = vector.broadcast %309 : vector<1x64xf32> to vector<16x64xf32>
    %311 = arith.mulf %308, %310 : vector<16x64xf32>
    %312 = vector.broadcast %294 : vector<1x64xf32> to vector<16x64xf32>
    %313 = arith.addf %311, %312 : vector<16x64xf32>
    %c2_i32 = arith.constant 2 : i32
    %314 = tpu.dynamic_rotate %291 by %c2_i32 dim 0 : vector<16x64xf32>, i32 -> vector<16x64xf32>
    %c-2_i32 = arith.constant -2 : i32
    %315 = vector.broadcast %c-2_i32 : i32 to vector<16x1xi32>
    %316 = arith.addi %292, %315 : vector<16x1xi32>
    %c0_i32_144 = arith.constant 0 : i32
    %317 = vector.broadcast %c0_i32_144 : i32 to vector<16x1xi32>
    %318 = arith.cmpi sge, %316, %317 : vector<16x1xi32>
    %c-2_i32_145 = arith.constant -2 : i32
    %319 = vector.broadcast %c-2_i32_145 : i32 to vector<16x1xi32>
    %320 = arith.addi %292, %319 : vector<16x1xi32>
    %c16_i32_146 = arith.constant 16 : i32
    %321 = vector.broadcast %c16_i32_146 : i32 to vector<16x1xi32>
    %322 = arith.cmpi slt, %320, %321 : vector<16x1xi32>
    %323 = arith.andi %318, %322 : vector<16x1xi1>
    %cst_147 = arith.constant 0.000000e+00 : f32
    %324 = vector.shape_cast %323 : vector<16x1xi1> to vector<16x1xi1>
    %325 = vector.broadcast %324 : vector<16x1xi1> to vector<16x64xi1>
    %326 = vector.broadcast %cst_147 : f32 to vector<16x64xf32>
    %327 = arith.select %325, %314, %326 : vector<16x64xi1>, vector<16x64xf32>
    %328 = vector.extract_strided_slice %293 {offsets = [1, 0], sizes = [1, 64], strides = [1, 1]} : vector<7x64xf32> to vector<1x64xf32>
    %329 = vector.broadcast %328 : vector<1x64xf32> to vector<16x64xf32>
    %330 = arith.mulf %327, %329 : vector<16x64xf32>
    %331 = arith.addf %313, %330 : vector<16x64xf32>
    %c1_i32 = arith.constant 1 : i32
    %332 = tpu.dynamic_rotate %291 by %c1_i32 dim 0 : vector<16x64xf32>, i32 -> vector<16x64xf32>
    %c-1_i32 = arith.constant -1 : i32
    %333 = vector.broadcast %c-1_i32 : i32 to vector<16x1xi32>
    %334 = arith.addi %292, %333 : vector<16x1xi32>
    %c0_i32_148 = arith.constant 0 : i32
    %335 = vector.broadcast %c0_i32_148 : i32 to vector<16x1xi32>
    %336 = arith.cmpi sge, %334, %335 : vector<16x1xi32>
    %c-1_i32_149 = arith.constant -1 : i32
    %337 = vector.broadcast %c-1_i32_149 : i32 to vector<16x1xi32>
    %338 = arith.addi %292, %337 : vector<16x1xi32>
    %c16_i32_150 = arith.constant 16 : i32
    %339 = vector.broadcast %c16_i32_150 : i32 to vector<16x1xi32>
    %340 = arith.cmpi slt, %338, %339 : vector<16x1xi32>
    %341 = arith.andi %336, %340 : vector<16x1xi1>
    %cst_151 = arith.constant 0.000000e+00 : f32
    %342 = vector.shape_cast %341 : vector<16x1xi1> to vector<16x1xi1>
    %343 = vector.broadcast %342 : vector<16x1xi1> to vector<16x64xi1>
    %344 = vector.broadcast %cst_151 : f32 to vector<16x64xf32>
    %345 = arith.select %343, %332, %344 : vector<16x64xi1>, vector<16x64xf32>
    %346 = vector.extract_strided_slice %293 {offsets = [2, 0], sizes = [1, 64], strides = [1, 1]} : vector<7x64xf32> to vector<1x64xf32>
    %347 = vector.broadcast %346 : vector<1x64xf32> to vector<16x64xf32>
    %348 = arith.mulf %345, %347 : vector<16x64xf32>
    %349 = arith.addf %331, %348 : vector<16x64xf32>
    %350 = vector.extract_strided_slice %293 {offsets = [3, 0], sizes = [1, 64], strides = [1, 1]} : vector<7x64xf32> to vector<1x64xf32>
    %351 = vector.broadcast %350 : vector<1x64xf32> to vector<16x64xf32>
    %352 = arith.mulf %291, %351 : vector<16x64xf32>
    %353 = arith.addf %349, %352 : vector<16x64xf32>
    %c15_i32 = arith.constant 15 : i32
    %354 = tpu.dynamic_rotate %291 by %c15_i32 dim 0 : vector<16x64xf32>, i32 -> vector<16x64xf32>
    %c1_i32_152 = arith.constant 1 : i32
    %355 = vector.broadcast %c1_i32_152 : i32 to vector<16x1xi32>
    %356 = arith.addi %292, %355 : vector<16x1xi32>
    %c0_i32_153 = arith.constant 0 : i32
    %357 = vector.broadcast %c0_i32_153 : i32 to vector<16x1xi32>
    %358 = arith.cmpi sge, %356, %357 : vector<16x1xi32>
    %c1_i32_154 = arith.constant 1 : i32
    %359 = vector.broadcast %c1_i32_154 : i32 to vector<16x1xi32>
    %360 = arith.addi %292, %359 : vector<16x1xi32>
    %c16_i32_155 = arith.constant 16 : i32
    %361 = vector.broadcast %c16_i32_155 : i32 to vector<16x1xi32>
    %362 = arith.cmpi slt, %360, %361 : vector<16x1xi32>
    %363 = arith.andi %358, %362 : vector<16x1xi1>
    %cst_156 = arith.constant 0.000000e+00 : f32
    %364 = vector.shape_cast %363 : vector<16x1xi1> to vector<16x1xi1>
    %365 = vector.broadcast %364 : vector<16x1xi1> to vector<16x64xi1>
    %366 = vector.broadcast %cst_156 : f32 to vector<16x64xf32>
    %367 = arith.select %365, %354, %366 : vector<16x64xi1>, vector<16x64xf32>
    %368 = vector.extract_strided_slice %293 {offsets = [4, 0], sizes = [1, 64], strides = [1, 1]} : vector<7x64xf32> to vector<1x64xf32>
    %369 = vector.broadcast %368 : vector<1x64xf32> to vector<16x64xf32>
    %370 = arith.mulf %367, %369 : vector<16x64xf32>
    %371 = arith.addf %353, %370 : vector<16x64xf32>
    %c14_i32 = arith.constant 14 : i32
    %372 = tpu.dynamic_rotate %291 by %c14_i32 dim 0 : vector<16x64xf32>, i32 -> vector<16x64xf32>
    %c2_i32_157 = arith.constant 2 : i32
    %373 = vector.broadcast %c2_i32_157 : i32 to vector<16x1xi32>
    %374 = arith.addi %292, %373 : vector<16x1xi32>
    %c0_i32_158 = arith.constant 0 : i32
    %375 = vector.broadcast %c0_i32_158 : i32 to vector<16x1xi32>
    %376 = arith.cmpi sge, %374, %375 : vector<16x1xi32>
    %c2_i32_159 = arith.constant 2 : i32
    %377 = vector.broadcast %c2_i32_159 : i32 to vector<16x1xi32>
    %378 = arith.addi %292, %377 : vector<16x1xi32>
    %c16_i32_160 = arith.constant 16 : i32
    %379 = vector.broadcast %c16_i32_160 : i32 to vector<16x1xi32>
    %380 = arith.cmpi slt, %378, %379 : vector<16x1xi32>
    %381 = arith.andi %376, %380 : vector<16x1xi1>
    %cst_161 = arith.constant 0.000000e+00 : f32
    %382 = vector.shape_cast %381 : vector<16x1xi1> to vector<16x1xi1>
    %383 = vector.broadcast %382 : vector<16x1xi1> to vector<16x64xi1>
    %384 = vector.broadcast %cst_161 : f32 to vector<16x64xf32>
    %385 = arith.select %383, %372, %384 : vector<16x64xi1>, vector<16x64xf32>
    %386 = vector.extract_strided_slice %293 {offsets = [5, 0], sizes = [1, 64], strides = [1, 1]} : vector<7x64xf32> to vector<1x64xf32>
    %387 = vector.broadcast %386 : vector<1x64xf32> to vector<16x64xf32>
    %388 = arith.mulf %385, %387 : vector<16x64xf32>
    %389 = arith.addf %371, %388 : vector<16x64xf32>
    %c13_i32 = arith.constant 13 : i32
    %390 = tpu.dynamic_rotate %291 by %c13_i32 dim 0 : vector<16x64xf32>, i32 -> vector<16x64xf32>
    %c3_i32_162 = arith.constant 3 : i32
    %391 = vector.broadcast %c3_i32_162 : i32 to vector<16x1xi32>
    %392 = arith.addi %292, %391 : vector<16x1xi32>
    %c0_i32_163 = arith.constant 0 : i32
    %393 = vector.broadcast %c0_i32_163 : i32 to vector<16x1xi32>
    %394 = arith.cmpi sge, %392, %393 : vector<16x1xi32>
    %c3_i32_164 = arith.constant 3 : i32
    %395 = vector.broadcast %c3_i32_164 : i32 to vector<16x1xi32>
    %396 = arith.addi %292, %395 : vector<16x1xi32>
    %c16_i32_165 = arith.constant 16 : i32
    %397 = vector.broadcast %c16_i32_165 : i32 to vector<16x1xi32>
    %398 = arith.cmpi slt, %396, %397 : vector<16x1xi32>
    %399 = arith.andi %394, %398 : vector<16x1xi1>
    %cst_166 = arith.constant 0.000000e+00 : f32
    %400 = vector.shape_cast %399 : vector<16x1xi1> to vector<16x1xi1>
    %401 = vector.broadcast %400 : vector<16x1xi1> to vector<16x64xi1>
    %402 = vector.broadcast %cst_166 : f32 to vector<16x64xf32>
    %403 = arith.select %401, %390, %402 : vector<16x64xi1>, vector<16x64xf32>
    %404 = vector.extract_strided_slice %293 {offsets = [6, 0], sizes = [1, 64], strides = [1, 1]} : vector<7x64xf32> to vector<1x64xf32>
    %405 = vector.broadcast %404 : vector<1x64xf32> to vector<16x64xf32>
    %406 = arith.mulf %403, %405 : vector<16x64xf32>
    %407 = arith.addf %389, %406 : vector<16x64xf32>
    %c0_167 = arith.constant 0 : index
    %c0_168 = arith.constant 0 : index
    %408 = vector.load %arg30[%c0_167, %c0_168] : memref<1x64xf32, #tpu.memory_space<vmem>>, vector<1x64xf32>
    %c0_169 = arith.constant 0 : index
    %c0_170 = arith.constant 0 : index
    %409 = vector.load %arg31[%c0_169, %c0_170] : memref<1x64xf32, #tpu.memory_space<vmem>>, vector<1x64xf32>
    %cst_171 = arith.constant dense<0.000000e+00> : vector<16xf32>
    %410 = vector.multi_reduction <add>, %407, %cst_171 [1] : vector<16x64xf32> to vector<16xf32>
    %411 = vector.shape_cast %410 : vector<16xf32> to vector<16x1xf32>
    %cst_172 = arith.constant 6.400000e+01 : f32
    %412 = vector.broadcast %cst_172 : f32 to vector<16x1xf32>
    %413 = arith.divf %411, %412 : vector<16x1xf32>
    %414 = vector.broadcast %413 : vector<16x1xf32> to vector<16x64xf32>
    %415 = arith.subf %407, %414 : vector<16x64xf32>
    %416 = arith.mulf %415, %415 : vector<16x64xf32>
    %cst_173 = arith.constant dense<0.000000e+00> : vector<16xf32>
    %417 = vector.multi_reduction <add>, %416, %cst_173 [1] : vector<16x64xf32> to vector<16xf32>
    %418 = vector.shape_cast %417 : vector<16xf32> to vector<16x1xf32>
    %cst_174 = arith.constant 6.400000e+01 : f32
    %419 = vector.broadcast %cst_174 : f32 to vector<16x1xf32>
    %420 = arith.divf %418, %419 : vector<16x1xf32>
    %cst_175 = arith.constant 9.99999974E-6 : f32
    %421 = vector.broadcast %cst_175 : f32 to vector<16x1xf32>
    %422 = arith.addf %420, %421 : vector<16x1xf32>
    %423 = math.rsqrt %422 : vector<16x1xf32>
    %424 = vector.broadcast %423 : vector<16x1xf32> to vector<16x64xf32>
    %425 = arith.mulf %415, %424 : vector<16x64xf32>
    %426 = vector.broadcast %408 : vector<1x64xf32> to vector<16x64xf32>
    %427 = arith.mulf %425, %426 : vector<16x64xf32>
    %428 = vector.broadcast %409 : vector<1x64xf32> to vector<16x64xf32>
    %429 = arith.addf %427, %428 : vector<16x64xf32>
    %430 = arith.negf %429 : vector<16x64xf32>
    %431 = math.exp %430 : vector<16x64xf32>
    %cst_176 = arith.constant 1.000000e+00 : f32
    %432 = vector.broadcast %cst_176 : f32 to vector<16x64xf32>
    %433 = arith.addf %432, %431 : vector<16x64xf32>
    %434 = arith.divf %432, %433 : vector<16x64xf32>
    %435 = arith.mulf %429, %434 : vector<16x64xf32>
    %436 = arith.truncf %435 : vector<16x64xf32> to vector<16x64xbf16>
    %c0_177 = arith.constant 0 : index
    %c0_178 = arith.constant 0 : index
    %437 = vector.load %arg32[%c0_177, %c0_178] : memref<64x64xbf16, #tpu.memory_space<vmem>>, vector<64x64xbf16>
    %cst_179 = arith.constant dense<0.000000e+00> : vector<16x64xf32>
    %438 = tpu.matmul %436, %437, %cst_179 {dimension_numbers = #tpu.dot_dimension_numbers<[1], [0], [0], [1], [0, 0, 1, 1], [], []>} : vector<16x64xbf16>, vector<64x64xbf16>, vector<16x64xf32> -> vector<16x64xf32>
    %c0_180 = arith.constant 0 : index
    %c0_181 = arith.constant 0 : index
    %439 = vector.load %arg33[%c0_180, %c0_181] : memref<1x64xf32, #tpu.memory_space<vmem>>, vector<1x64xf32>
    %440 = vector.broadcast %439 : vector<1x64xf32> to vector<16x64xf32>
    %441 = arith.addf %438, %440 : vector<16x64xf32>
    %442 = vector.broadcast %253 : vector<16x1xf32> to vector<16x64xf32>
    %443 = arith.mulf %441, %442 : vector<16x64xf32>
    %444 = arith.addf %251, %443 : vector<16x64xf32>
    %c0_182 = arith.constant 0 : index
    %c0_183 = arith.constant 0 : index
    %445 = vector.load %arg34[%c0_182, %c0_183] : memref<1x64xf32, #tpu.memory_space<vmem>>, vector<1x64xf32>
    %c0_184 = arith.constant 0 : index
    %c0_185 = arith.constant 0 : index
    %446 = vector.load %arg35[%c0_184, %c0_185] : memref<1x64xf32, #tpu.memory_space<vmem>>, vector<1x64xf32>
    %c0_186 = arith.constant 0 : index
    %c0_187 = arith.constant 0 : index
    %447 = vector.load %arg36[%c0_186, %c0_187] : memref<64x128xbf16, #tpu.memory_space<vmem>>, vector<64x128xbf16>
    %c0_188 = arith.constant 0 : index
    %c0_189 = arith.constant 0 : index
    %448 = vector.load %arg37[%c0_188, %c0_189] : memref<1x128xf32, #tpu.memory_space<vmem>>, vector<1x128xf32>
    %c0_190 = arith.constant 0 : index
    %c0_191 = arith.constant 0 : index
    %449 = vector.load %arg38[%c0_190, %c0_191] : memref<128x64xbf16, #tpu.memory_space<vmem>>, vector<128x64xbf16>
    %c0_192 = arith.constant 0 : index
    %c0_193 = arith.constant 0 : index
    %450 = vector.load %arg39[%c0_192, %c0_193] : memref<1x64xf32, #tpu.memory_space<vmem>>, vector<1x64xf32>
    %cst_194 = arith.constant dense<0.000000e+00> : vector<16xf32>
    %451 = vector.multi_reduction <add>, %444, %cst_194 [1] : vector<16x64xf32> to vector<16xf32>
    %452 = vector.shape_cast %451 : vector<16xf32> to vector<16x1xf32>
    %cst_195 = arith.constant 6.400000e+01 : f32
    %453 = vector.broadcast %cst_195 : f32 to vector<16x1xf32>
    %454 = arith.divf %452, %453 : vector<16x1xf32>
    %455 = vector.broadcast %454 : vector<16x1xf32> to vector<16x64xf32>
    %456 = arith.subf %444, %455 : vector<16x64xf32>
    %457 = arith.mulf %456, %456 : vector<16x64xf32>
    %cst_196 = arith.constant dense<0.000000e+00> : vector<16xf32>
    %458 = vector.multi_reduction <add>, %457, %cst_196 [1] : vector<16x64xf32> to vector<16xf32>
    %459 = vector.shape_cast %458 : vector<16xf32> to vector<16x1xf32>
    %cst_197 = arith.constant 6.400000e+01 : f32
    %460 = vector.broadcast %cst_197 : f32 to vector<16x1xf32>
    %461 = arith.divf %459, %460 : vector<16x1xf32>
    %cst_198 = arith.constant 9.99999974E-6 : f32
    %462 = vector.broadcast %cst_198 : f32 to vector<16x1xf32>
    %463 = arith.addf %461, %462 : vector<16x1xf32>
    %464 = math.rsqrt %463 : vector<16x1xf32>
    %465 = vector.broadcast %464 : vector<16x1xf32> to vector<16x64xf32>
    %466 = arith.mulf %456, %465 : vector<16x64xf32>
    %467 = vector.broadcast %445 : vector<1x64xf32> to vector<16x64xf32>
    %468 = arith.mulf %466, %467 : vector<16x64xf32>
    %469 = vector.broadcast %446 : vector<1x64xf32> to vector<16x64xf32>
    %470 = arith.addf %468, %469 : vector<16x64xf32>
    %471 = arith.truncf %470 : vector<16x64xf32> to vector<16x64xbf16>
    %cst_199 = arith.constant dense<0.000000e+00> : vector<16x128xf32>
    %472 = tpu.matmul %471, %447, %cst_199 {dimension_numbers = #tpu.dot_dimension_numbers<[1], [0], [0], [1], [0, 0, 1, 1], [], []>} : vector<16x64xbf16>, vector<64x128xbf16>, vector<16x128xf32> -> vector<16x128xf32>
    %473 = vector.broadcast %448 : vector<1x128xf32> to vector<16x128xf32>
    %474 = arith.addf %472, %473 : vector<16x128xf32>
    %475 = arith.negf %474 : vector<16x128xf32>
    %476 = math.exp %475 : vector<16x128xf32>
    %cst_200 = arith.constant 1.000000e+00 : f32
    %477 = vector.broadcast %cst_200 : f32 to vector<16x128xf32>
    %478 = arith.addf %477, %476 : vector<16x128xf32>
    %479 = arith.divf %477, %478 : vector<16x128xf32>
    %480 = arith.mulf %474, %479 : vector<16x128xf32>
    %481 = arith.truncf %480 : vector<16x128xf32> to vector<16x128xbf16>
    %cst_201 = arith.constant dense<0.000000e+00> : vector<16x64xf32>
    %482 = tpu.matmul %481, %449, %cst_201 {dimension_numbers = #tpu.dot_dimension_numbers<[1], [0], [0], [1], [0, 0, 1, 1], [], []>} : vector<16x128xbf16>, vector<128x64xbf16>, vector<16x64xf32> -> vector<16x64xf32>
    %483 = vector.broadcast %450 : vector<1x64xf32> to vector<16x64xf32>
    %484 = arith.addf %482, %483 : vector<16x64xf32>
    %cst_202 = arith.constant 5.000000e-01 : f32
    %485 = vector.broadcast %cst_202 : f32 to vector<16x64xf32>
    %486 = arith.mulf %485, %484 : vector<16x64xf32>
    %487 = arith.addf %444, %486 : vector<16x64xf32>
    %c0_203 = arith.constant 0 : index
    %c0_204 = arith.constant 0 : index
    %488 = vector.load %arg40[%c0_203, %c0_204] : memref<1x64xf32, #tpu.memory_space<vmem>>, vector<1x64xf32>
    %c0_205 = arith.constant 0 : index
    %c0_206 = arith.constant 0 : index
    %489 = vector.load %arg41[%c0_205, %c0_206] : memref<1x64xf32, #tpu.memory_space<vmem>>, vector<1x64xf32>
    %cst_207 = arith.constant dense<0.000000e+00> : vector<16xf32>
    %490 = vector.multi_reduction <add>, %487, %cst_207 [1] : vector<16x64xf32> to vector<16xf32>
    %491 = vector.shape_cast %490 : vector<16xf32> to vector<16x1xf32>
    %cst_208 = arith.constant 6.400000e+01 : f32
    %492 = vector.broadcast %cst_208 : f32 to vector<16x1xf32>
    %493 = arith.divf %491, %492 : vector<16x1xf32>
    %494 = vector.broadcast %493 : vector<16x1xf32> to vector<16x64xf32>
    %495 = arith.subf %487, %494 : vector<16x64xf32>
    %496 = arith.mulf %495, %495 : vector<16x64xf32>
    %cst_209 = arith.constant dense<0.000000e+00> : vector<16xf32>
    %497 = vector.multi_reduction <add>, %496, %cst_209 [1] : vector<16x64xf32> to vector<16xf32>
    %498 = vector.shape_cast %497 : vector<16xf32> to vector<16x1xf32>
    %cst_210 = arith.constant 6.400000e+01 : f32
    %499 = vector.broadcast %cst_210 : f32 to vector<16x1xf32>
    %500 = arith.divf %498, %499 : vector<16x1xf32>
    %cst_211 = arith.constant 9.99999974E-6 : f32
    %501 = vector.broadcast %cst_211 : f32 to vector<16x1xf32>
    %502 = arith.addf %500, %501 : vector<16x1xf32>
    %503 = math.rsqrt %502 : vector<16x1xf32>
    %504 = vector.broadcast %503 : vector<16x1xf32> to vector<16x64xf32>
    %505 = arith.mulf %495, %504 : vector<16x64xf32>
    %506 = vector.broadcast %488 : vector<1x64xf32> to vector<16x64xf32>
    %507 = arith.mulf %505, %506 : vector<16x64xf32>
    %508 = vector.broadcast %489 : vector<1x64xf32> to vector<16x64xf32>
    %509 = arith.addf %507, %508 : vector<16x64xf32>
    %c0_212 = arith.constant 0 : index
    %c0_213 = arith.constant 0 : index
    %c0_214 = arith.constant 0 : index
    %510 = vector.load %arg42[%c0_212, %c0_213, %c0_214] : memref<1x16x64xf32, #tpu.memory_space<vmem>>, vector<1x16x64xf32>
    %511 = vector.shape_cast %510 : vector<1x16x64xf32> to vector<16x64xf32>
    %512 = vector.shape_cast %509 : vector<16x64xf32> to vector<1x16x64xf32>
    tpu.vector_store %arg42[%c0_212, %c0_213, %c0_214], %512 {strides = array<i32>} : memref<1x16x64xf32, #tpu.memory_space<vmem>>, vector<1x16x64xf32>,
    return
  }
  func.func @transform_0(%arg0: i32) -> (i32, i32, i32) {
    %c0_i32 = arith.constant 0 : i32
    %c0_i32_0 = arith.constant 0 : i32
    %c0_i32_1 = arith.constant 0 : i32
    return %arg0, %c0_i32, %c0_i32_0 : i32, i32, i32
  }
  func.func @transform_1(%arg0: i32) -> (i32, i32, i32) {
    %c0_i32 = arith.constant 0 : i32
    %c0_i32_0 = arith.constant 0 : i32
    %c0_i32_1 = arith.constant 0 : i32
    return %arg0, %c0_i32, %c0_i32_0 : i32, i32, i32
  }
  func.func @transform_2(%arg0: i32) -> (i32, i32, i32) {
    %c0_i32 = arith.constant 0 : i32
    %c0_i32_0 = arith.constant 0 : i32
    %c0_i32_1 = arith.constant 0 : i32
    return %arg0, %c0_i32, %c0_i32_0 : i32, i32, i32
  }
  func.func @transform_3(%arg0: i32) -> (i32, i32, i32) {
    %c0_i32 = arith.constant 0 : i32
    %c0_i32_0 = arith.constant 0 : i32
    %c0_i32_1 = arith.constant 0 : i32
    %c0_i32_2 = arith.constant 0 : i32
    return %c0_i32, %c0_i32_0, %c0_i32_1 : i32, i32, i32
  }
  func.func @transform_4(%arg0: i32) -> (i32, i32) {
    %c0_i32 = arith.constant 0 : i32
    %c0_i32_0 = arith.constant 0 : i32
    %c0_i32_1 = arith.constant 0 : i32
    return %c0_i32, %c0_i32_0 : i32, i32
  }
  func.func @transform_5(%arg0: i32) -> (i32, i32) {
    %c0_i32 = arith.constant 0 : i32
    %c0_i32_0 = arith.constant 0 : i32
    %c0_i32_1 = arith.constant 0 : i32
    return %c0_i32, %c0_i32_0 : i32, i32
  }
  func.func @transform_6(%arg0: i32) -> (i32, i32) {
    %c0_i32 = arith.constant 0 : i32
    %c0_i32_0 = arith.constant 0 : i32
    %c0_i32_1 = arith.constant 0 : i32
    return %c0_i32, %c0_i32_0 : i32, i32
  }
  func.func @transform_7(%arg0: i32) -> (i32, i32) {
    %c0_i32 = arith.constant 0 : i32
    %c0_i32_0 = arith.constant 0 : i32
    %c0_i32_1 = arith.constant 0 : i32
    return %c0_i32, %c0_i32_0 : i32, i32
  }
  func.func @transform_8(%arg0: i32) -> (i32, i32) {
    %c0_i32 = arith.constant 0 : i32
    %c0_i32_0 = arith.constant 0 : i32
    %c0_i32_1 = arith.constant 0 : i32
    return %c0_i32, %c0_i32_0 : i32, i32
  }
  func.func @transform_9(%arg0: i32) -> (i32, i32) {
    %c0_i32 = arith.constant 0 : i32
    %c0_i32_0 = arith.constant 0 : i32
    %c0_i32_1 = arith.constant 0 : i32
    return %c0_i32, %c0_i32_0 : i32, i32
  }
  func.func @transform_10(%arg0: i32) -> (i32, i32) {
    %c0_i32 = arith.constant 0 : i32
    %c0_i32_0 = arith.constant 0 : i32
    %c0_i32_1 = arith.constant 0 : i32
    return %c0_i32, %c0_i32_0 : i32, i32
  }
  func.func @transform_11(%arg0: i32) -> (i32, i32) {
    %c0_i32 = arith.constant 0 : i32
    %c0_i32_0 = arith.constant 0 : i32
    %c0_i32_1 = arith.constant 0 : i32
    return %c0_i32, %c0_i32_0 : i32, i32
  }
  func.func @transform_12(%arg0: i32) -> (i32, i32) {
    %c0_i32 = arith.constant 0 : i32
    %c0_i32_0 = arith.constant 0 : i32
    %c0_i32_1 = arith.constant 0 : i32
    return %c0_i32, %c0_i32_0 : i32, i32
  }
  func.func @transform_13(%arg0: i32) -> (i32, i32) {
    %c0_i32 = arith.constant 0 : i32
    %c0_i32_0 = arith.constant 0 : i32
    %c0_i32_1 = arith.constant 0 : i32
    return %c0_i32, %c0_i32_0 : i32, i32
  }
  func.func @transform_14(%arg0: i32) -> (i32, i32) {
    %c0_i32 = arith.constant 0 : i32
    %c0_i32_0 = arith.constant 0 : i32
    %c0_i32_1 = arith.constant 0 : i32
    return %c0_i32, %c0_i32_0 : i32, i32
  }
  func.func @transform_15(%arg0: i32) -> (i32, i32) {
    %c0_i32 = arith.constant 0 : i32
    %c0_i32_0 = arith.constant 0 : i32
    %c0_i32_1 = arith.constant 0 : i32
    return %c0_i32, %c0_i32_0 : i32, i32
  }
  func.func @transform_16(%arg0: i32) -> (i32, i32) {
    %c0_i32 = arith.constant 0 : i32
    %c0_i32_0 = arith.constant 0 : i32
    %c0_i32_1 = arith.constant 0 : i32
    return %c0_i32, %c0_i32_0 : i32, i32
  }
  func.func @transform_17(%arg0: i32) -> (i32, i32) {
    %c0_i32 = arith.constant 0 : i32
    %c0_i32_0 = arith.constant 0 : i32
    %c0_i32_1 = arith.constant 0 : i32
    return %c0_i32, %c0_i32_0 : i32, i32
  }
  func.func @transform_18(%arg0: i32) -> (i32, i32) {
    %c0_i32 = arith.constant 0 : i32
    %c0_i32_0 = arith.constant 0 : i32
    %c0_i32_1 = arith.constant 0 : i32
    return %c0_i32, %c0_i32_0 : i32, i32
  }
  func.func @transform_19(%arg0: i32) -> (i32, i32) {
    %c0_i32 = arith.constant 0 : i32
    %c0_i32_0 = arith.constant 0 : i32
    %c0_i32_1 = arith.constant 0 : i32
    return %c0_i32, %c0_i32_0 : i32, i32
  }
  func.func @transform_20(%arg0: i32) -> (i32, i32) {
    %c0_i32 = arith.constant 0 : i32
    %c0_i32_0 = arith.constant 0 : i32
    %c0_i32_1 = arith.constant 0 : i32
    return %c0_i32, %c0_i32_0 : i32, i32
  }
  func.func @transform_21(%arg0: i32) -> (i32, i32) {
    %c0_i32 = arith.constant 0 : i32
    %c0_i32_0 = arith.constant 0 : i32
    %c0_i32_1 = arith.constant 0 : i32
    return %c0_i32, %c0_i32_0 : i32, i32
  }
  func.func @transform_22(%arg0: i32) -> (i32, i32) {
    %c0_i32 = arith.constant 0 : i32
    %c0_i32_0 = arith.constant 0 : i32
    %c0_i32_1 = arith.constant 0 : i32
    return %c0_i32, %c0_i32_0 : i32, i32
  }
  func.func @transform_23(%arg0: i32) -> (i32, i32) {
    %c0_i32 = arith.constant 0 : i32
    %c0_i32_0 = arith.constant 0 : i32
    %c0_i32_1 = arith.constant 0 : i32
    return %c0_i32, %c0_i32_0 : i32, i32
  }
  func.func @transform_24(%arg0: i32) -> (i32, i32) {
    %c0_i32 = arith.constant 0 : i32
    %c0_i32_0 = arith.constant 0 : i32
    %c0_i32_1 = arith.constant 0 : i32
    return %c0_i32, %c0_i32_0 : i32, i32
  }
  func.func @transform_25(%arg0: i32) -> (i32, i32) {
    %c0_i32 = arith.constant 0 : i32
    %c0_i32_0 = arith.constant 0 : i32
    %c0_i32_1 = arith.constant 0 : i32
    return %c0_i32, %c0_i32_0 : i32, i32
  }
  func.func @transform_26(%arg0: i32) -> (i32, i32) {
    %c0_i32 = arith.constant 0 : i32
    %c0_i32_0 = arith.constant 0 : i32
    %c0_i32_1 = arith.constant 0 : i32
    return %c0_i32, %c0_i32_0 : i32, i32
  }
  func.func @transform_27(%arg0: i32) -> (i32, i32) {
    %c0_i32 = arith.constant 0 : i32
    %c0_i32_0 = arith.constant 0 : i32
    %c0_i32_1 = arith.constant 0 : i32
    return %c0_i32, %c0_i32_0 : i32, i32
  }
  func.func @transform_28(%arg0: i32) -> (i32, i32) {
    %c0_i32 = arith.constant 0 : i32
    %c0_i32_0 = arith.constant 0 : i32
    %c0_i32_1 = arith.constant 0 : i32
    return %c0_i32, %c0_i32_0 : i32, i32
  }
  func.func @transform_29(%arg0: i32) -> (i32, i32) {
    %c0_i32 = arith.constant 0 : i32
    %c0_i32_0 = arith.constant 0 : i32
    %c0_i32_1 = arith.constant 0 : i32
    return %c0_i32, %c0_i32_0 : i32, i32
  }
  func.func @transform_30(%arg0: i32) -> (i32, i32) {
    %c0_i32 = arith.constant 0 : i32
    %c0_i32_0 = arith.constant 0 : i32
    %c0_i32_1 = arith.constant 0 : i32
    return %c0_i32, %c0_i32_0 : i32, i32
  }
  func.func @transform_31(%arg0: i32) -> (i32, i32) {
    %c0_i32 = arith.constant 0 : i32
    %c0_i32_0 = arith.constant 0 : i32
    %c0_i32_1 = arith.constant 0 : i32
    return %c0_i32, %c0_i32_0 : i32, i32
  }
  func.func @transform_32(%arg0: i32) -> (i32, i32) {
    %c0_i32 = arith.constant 0 : i32
    %c0_i32_0 = arith.constant 0 : i32
    %c0_i32_1 = arith.constant 0 : i32
    return %c0_i32, %c0_i32_0 : i32, i32
  }
  func.func @transform_33(%arg0: i32) -> (i32, i32) {
    %c0_i32 = arith.constant 0 : i32
    %c0_i32_0 = arith.constant 0 : i32
    %c0_i32_1 = arith.constant 0 : i32
    return %c0_i32, %c0_i32_0 : i32, i32
  }
  func.func @transform_34(%arg0: i32) -> (i32, i32) {
    %c0_i32 = arith.constant 0 : i32
    %c0_i32_0 = arith.constant 0 : i32
    %c0_i32_1 = arith.constant 0 : i32
    return %c0_i32, %c0_i32_0 : i32, i32
  }
  func.func @transform_35(%arg0: i32) -> (i32, i32) {
    %c0_i32 = arith.constant 0 : i32
    %c0_i32_0 = arith.constant 0 : i32
    %c0_i32_1 = arith.constant 0 : i32
    return %c0_i32, %c0_i32_0 : i32, i32
  }
  func.func @transform_36(%arg0: i32) -> (i32, i32) {
    %c0_i32 = arith.constant 0 : i32
    %c0_i32_0 = arith.constant 0 : i32
    %c0_i32_1 = arith.constant 0 : i32
    return %c0_i32, %c0_i32_0 : i32, i32
  }
  func.func @transform_37(%arg0: i32) -> (i32, i32) {
    %c0_i32 = arith.constant 0 : i32
    %c0_i32_0 = arith.constant 0 : i32
    %c0_i32_1 = arith.constant 0 : i32
    return %c0_i32, %c0_i32_0 : i32, i32
  }
  func.func @transform_38(%arg0: i32) -> (i32, i32) {
    %c0_i32 = arith.constant 0 : i32
    %c0_i32_0 = arith.constant 0 : i32
    %c0_i32_1 = arith.constant 0 : i32
    return %c0_i32, %c0_i32_0 : i32, i32
  }
  func.func @transform_39(%arg0: i32) -> (i32, i32) {
    %c0_i32 = arith.constant 0 : i32
    %c0_i32_0 = arith.constant 0 : i32
    %c0_i32_1 = arith.constant 0 : i32
    return %c0_i32, %c0_i32_0 : i32, i32
  }
  func.func @transform_40(%arg0: i32) -> (i32, i32) {
    %c0_i32 = arith.constant 0 : i32
    %c0_i32_0 = arith.constant 0 : i32
    %c0_i32_1 = arith.constant 0 : i32
    return %c0_i32, %c0_i32_0 : i32, i32
  }
  func.func @transform_41(%arg0: i32) -> (i32, i32, i32) {
    %c0_i32 = arith.constant 0 : i32
    %c0_i32_0 = arith.constant 0 : i32
    %c0_i32_1 = arith.constant 0 : i32
    return %arg0, %c0_i32, %c0_i32_0 : i32, i32, i32
  }
  func.func @transform_42(%arg0: i32) -> (i32, i32, i32, i32) {
    %c0_i32 = arith.constant 0 : i32
    %c0_i32_0 = arith.constant 0 : i32
    %c0_i32_1 = arith.constant 0 : i32
    %c0_i32_2 = arith.constant 0 : i32
    return %arg0, %c0_i32, %c0_i32_0, %c0_i32_1 : i32, i32, i32, i32
  }
}

</mosaic_0001>

<bundles_post_ra>
// kernel: tpu_custom_call.1
= control target key start
LH: loop header
LB: loop body
LE: loop exit
PB: predicated region body
PF: predicated region fallthrough
CT: control target
= control target key end

     0   :  { %s6262_s6 = smov 1   ;;  %s6263_s10 = smov 2   ;;  %s7657_s0 = inlined_call_operand.smem [shape: u32[43], index: -1, kind: input, shape index: {}] }
   0x1   :  { %s6353_s5 = sld [smem:[%s7657_s0]]   ;;  %s6264_s14 = smov 3  }
   0x2   :  { %s6358_s9 = sld [smem:[%s7657_s0 + %s6262_s6]]   ;;  %s6265_s18 = smov 4  }
   0x3   :  { %s6363_s13 = sld [smem:[%s7657_s0 + %s6263_s10]]   ;;  %s6266_s22 = smov 5  }
   0x4   :  { %s6368_s17 = sld [smem:[%s7657_s0 + %s6264_s14]]   ;;  %s6267_s26 = smov 6  }
   0x5   :  { %s6373_s21 = sld [smem:[%s7657_s0 + %s6265_s18]]   ;;  %s6268_s30 = smov 7  }
   0x6   :  { %s6378_s25 = sld [smem:[%s7657_s0 + %s6266_s22]]   ;;  %s6269_s4 = smov 8  }
   0x7   :  { %7714 = sst [smem:[#allocation55_spill]] %s6353_s5  ;;  %s6270_s10 = smov 9  }
   0x8   :  { %7715 = sst [smem:[#allocation56_spill]] %s6358_s9  ;;  %s6271_s15 = smov 10  }
   0x9   :  { %7716 = sst [smem:[#allocation57_spill]] %s6363_s13  ;;  %s6272_s20 = smov 11  }
   0xa   :  { %7717 = sst [smem:[#allocation58_spill]] %s6368_s17  ;;  %s6274_s1 = smov 13  }
   0xb   :  { %s6383_s29 = sld [smem:[%s7657_s0 + %s6267_s26]]   ;;  %s6273_s26 = smov 12  }
   0xc   :  { %s6388_s3 = sld [smem:[%s7657_s0 + %s6268_s30]]   ;;  %s6275_s7 = smov 14  }
   0xd   :  { %s6393_s8 = sld [smem:[%s7657_s0 + %s6269_s4]]   ;;  %s6277_s22 = smov 16  }
   0xe   :  { %s6398_s14 = sld [smem:[%s7657_s0 + %s6270_s10]]   ;;  %s6278_s28 = smov 17  }
   0xf   :  { %s6403_s19 = sld [smem:[%s7657_s0 + %s6271_s15]]   ;;  %s6276_s15 = smov 15  }
  0x10   :  { %s6408_s24 = sld [smem:[%s7657_s0 + %s6272_s20]]  }
  0x11   :  { %7718 = sst [smem:[#allocation59_spill]] %s6383_s29 }
  0x12   :  { %7719 = sst [smem:[#allocation60_spill]] %s6388_s3 }
  0x13   :  { %7720 = sst [smem:[#allocation61_spill]] %s6393_s8 }
  0x14   :  { %7721 = sst [smem:[#allocation62_spill]] %s6398_s14 }
  0x15   :  { %7722 = sst [smem:[#allocation63_spill]] %s6403_s19 }
  0x16   :  { %s6413_s30 = sld [smem:[%s7657_s0 + %s6273_s26]]  }
  0x17   :  { %s6418_s6 = sld [smem:[%s7657_s0 + %s6274_s1]]  }
  0x18   :  { %s6423_s12 = sld [smem:[%s7657_s0 + %s6275_s7]]   ;;  %s6279_s7 = smov 18  }
  0x19   :  { %s6428_s20 = sld [smem:[%s7657_s0 + %s6276_s15]]   ;;  %s6280_s15 = smov 19  }
  0x1a   :  { %s6433_s27 = sld [smem:[%s7657_s0 + %s6277_s22]]   ;;  %s6281_s22 = smov 20  }
  0x1b   :  { %s6438_s4 = sld [smem:[%s7657_s0 + %s6278_s28]]   ;;  %s6282_s28 = smov 21  }
  0x1c   :  { %7723 = sst [smem:[#allocation64_spill]] %s6413_s30 }
  0x1d   :  { %7724 = sst [smem:[#allocation65_spill]] %s6418_s6 }
  0x1e   :  { %7725 = sst [smem:[#allocation66_spill]] %s6423_s12 }
  0x1f   :  { %7726 = sst [smem:[#allocation67_spill]] %s6428_s20 }
  0x20   :  { %7727 = sst [smem:[#allocation68_spill]] %s6433_s27 }
  0x21   :  { %7728 = sst [smem:[#allocation69_spill]] %s6438_s4 }
  0x22   :  { %s6443_s13 = sld [smem:[%s7657_s0 + %s6279_s7]]   ;;  %s6283_s7 = smov 22  }
  0x23   :  { %s6448_s12 = sld [smem:[%s7657_s0 + %s6280_s15]]   ;;  %s6284_s15 = smov 23  }
  0x24   :  { %s6453_s27 = sld [smem:[%s7657_s0 + %s6281_s22]]   ;;  %s6285_s22 = smov 24  }
  0x25   :  { %s6458_s30 = sld [smem:[%s7657_s0 + %s6282_s28]]   ;;  %s6286_s28 = smov 25  }
  0x26   :  { %s6468_s8 = sld [smem:[%s7657_s0 + %s6284_s15]]   ;;  %s6288_s15 = smov 27  }
  0x27   :  { %s6473_s29 = sld [smem:[%s7657_s0 + %s6285_s22]]   ;;  %s6289_s22 = smov 28  }
  0x28   :  { %7729 = sst [smem:[#allocation70_spill]] %s6443_s13 }
  0x29   :  { %7730 = sst [smem:[#allocation71_spill]] %s6448_s12 }
  0x2a   :  { %7731 = sst [smem:[#allocation72_spill]] %s6453_s27 }
  0x2b   :  { %7732 = sst [smem:[#allocation73_spill]] %s6458_s30 }
  0x2c   :  { %s6463_s13 = sld [smem:[%s7657_s0 + %s6283_s7]]   ;;  %s6287_s7 = smov 26  }
  0x2d   :  { %7734 = sst [smem:[#allocation75_spill]] %s6468_s8 }
  0x2e   :  { %s6478_s30 = sld [smem:[%s7657_s0 + %s6286_s28]]   ;;  %s6290_s28 = smov 29  }
  0x2f   :  { %s6483_s5 = sld [smem:[%s7657_s0 + %s6287_s7]]   ;;  %s6291_s7 = smov 30  }
  0x30   :  { %s6488_s9 = sld [smem:[%s7657_s0 + %s6288_s15]]   ;;  %s6292_s15 = smov 31  }
  0x31   :  { %s6493_s8 = sld [smem:[%s7657_s0 + %s6289_s22]]   ;;  %s6293_s22 = smov 32  }
  0x32   :  { %7733 = sst [smem:[#allocation74_spill]] %s6463_s13 }
  0x34   :  { %7735 = sst [smem:[#allocation76_spill]] %s6478_s30 }
  0x35   :  { %7736 = sst [smem:[#allocation77_spill]] %s6483_s5 }
  0x36   :  { %7737 = sst [smem:[#allocation78_spill]] %s6488_s9 }
  0x37   :  { %7738 = sst [smem:[#allocation79_spill]] %s6493_s8 }
  0x38   :  { %s6498_s30 = sld [smem:[%s7657_s0 + %s6290_s28]]   ;;  %s6294_s28 = smov 33  }
  0x39   :  { %s6503_s5 = sld [smem:[%s7657_s0 + %s6291_s7]]   ;;  %s6295_s7 = smov 34  }
  0x3a   :  { %s6508_s9 = sld [smem:[%s7657_s0 + %s6292_s15]]   ;;  %s6296_s15 = smov 35  }
  0x3b   :  { %s6513_s8 = sld [smem:[%s7657_s0 + %s6293_s22]]   ;;  %s6297_s22 = smov 36  }
  0x3c   :  { %s6518_s27 = sld [smem:[%s7657_s0 + %s6294_s28]]   ;;  %s6298_s28 = smov 37  }
  0x3d   :  { %s6528_s4 = sld [smem:[%s7657_s0 + %s6296_s15]]   ;;  %s6300_s15 = smov 39  }
  0x3e   :  { %s6538_s6 = sld [smem:[%s7657_s0 + %s6298_s28]]   ;;  %s6302_s28 = smov 41  }
  0x3f   :  { %7739 = sst [smem:[#allocation80_spill]] %s6503_s5 }
  0x40   :  { %7740 = sst [smem:[#allocation81_spill]] %s6508_s9 }
  0x41   :  { %7741 = sst [smem:[#allocation82_spill]] %s6513_s8 }
  0x42   :  { %s6523_s5 = sld [smem:[%s7657_s0 + %s6295_s7]]   ;;  %s6299_s7 = smov 38  }
  0x43   :  { %7743 = sst [smem:[#allocation84_spill]] %s6528_s4 }
  0x44   :  { %s6533_s8 = sld [smem:[%s7657_s0 + %s6297_s22]]   ;;  %s6301_s22 = smov 40  }
  0x45   :  { %7745 = sst [smem:[#allocation86_spill]] %s6538_s6 }
  0x46   :  { %s6548_s4 = sld [smem:[%s7657_s0 + %s6300_s15]]  }
  0x47   :  { %s6558_s6 = sld [smem:[%s7657_s0 + %s6302_s28]]  }
  0x48   :  { %7742 = sst [smem:[#allocation83_spill]] %s6523_s5 }
  0x49   :  { %s6543_s5 = sld [smem:[%s7657_s0 + %s6299_s7]]   ;;  %s6303_s7 = smov 42  }
  0x4a   :  { %7744 = sst [smem:[#allocation85_spill]] %s6533_s8 }
  0x4b   :  { %s6553_s8 = sld [smem:[%s7657_s0 + %s6301_s22]]  }
  0x4c   :  { %7747 = sst [smem:[#allocation88_spill]] %s6548_s4 }
  0x4d   :  { %7749 = sst [smem:[#allocation90_spill]] %s6558_s6 }
  0x4f   :  { %7746 = sst [smem:[#allocation87_spill]] %s6543_s5 }
  0x50   :  { %s6563_s5 = sld [smem:[%s7657_s0 + %s6303_s7]]  }
  0x51   :  { %7748 = sst [smem:[#allocation89_spill]] %s6553_s8 }
  0x56   :  { %7750 = sst [smem:[#allocation91_spill]] %s6563_s5 }
  0x57   :  { %91 = vsyncpa [#allocation3], 0 }
  0x58   :  { %93 = vsyncpa [#allocation3 + $0x1], 0 }
  0x59   :  { %94 = vsyncpa [#allocation6], 0 }
  0x5a   :  { %95 = vsyncpa [#allocation9], 0 }
  0x5b   :  { %96 = vsyncpa [#allocation12], 0 }
  0x5c   :  { %97 = vsyncpa [#allocation15], 0 }
  0x5d   :  { %98 = vsyncpa [#allocation18], 0 }
  0x5e   :  { %99 = vsyncpa [#allocation21], 0 }
  0x5f   :  { %100 = vsyncpa [#allocation24], 0 }
  0x60   :  { %101 = vsyncpa [#allocation27], 0 }
  0x61   :  { %102 = vsyncpa [#allocation30], 0 }
  0x62   :  { %103 = vsyncpa [#allocation33], 0 }
  0x63   :  { %104 = vsyncpa [#allocation36], 0 }
  0x64   :  { %105 = vsyncpa [#allocation4], 0 }
  0x65   :  { %107 = vsyncpa [#allocation4 + $0x1], 0 }
  0x66   :  { %108 = vsyncpa [#allocation40], 0 }
  0x67   :  { %110 = vsyncpa [#allocation40 + $0x1], 0  ;;  %s6565_s15 = smov 0   ;;  %s6567_s0 = smov 0  }
  0x68   :  { %s6569_s16 = smov 0   ;;  %s6571_s18 = smov 0  }
  0x69 LB: > { %s7751_s5 = sld [smem:[#allocation91_spill]]  ;;  %s7753_s19 = sld [smem:[#allocation63_spill]]  ;;  %s6248_s15 = sphi %s6565_s15, %s7828_s15   ;;  %s6260_s18 = sphi %s6571_s18, %s7831_s18   ;;  %s6256_s16 = sphi %s6569_s16, %s7830_s16   ;;  %s6252_s0 = sphi %s6567_s0, %s7829_s0  }
  0x6a   : > { %s7752_s20 = sld [smem:[#allocation67_spill]]  ;;  %s7754_s17 = sld [smem:[#allocation58_spill]] }
  0x6b   : > { %s7755_s14 = sld [smem:[#allocation62_spill]]  ;;  %s7756_s13 = sld [smem:[#allocation74_spill]] }
  0x6c   : > { %s7757_s9 = sld [smem:[#allocation81_spill]]  ;;  %s7758_s3 = sld [smem:[#allocation60_spill]] }
  0x6d   : > { %s7759_s12 = sld [smem:[#allocation71_spill]]  ;;  %s6304_s22 = smov [#allocation5]  }
  0x6e   : > { %s1061_s23 = sshll.u32 %s6304_s22, 4  ;;  %s6586_s26 = sadd.s32 4294967295, %s6260_s18   ;;  %s6591_s23 = int_to_ptr.vmem [resolvable:$true] %s1061_s23 }
  0x6f   : > { %p4481_p0 = scmp.ge.s32.totalorder %s6260_s18, 1  ;;  %p7678_p1 = scmp.eq.s32.totalorder %s6586_s26, 0 }
  0x70   : > { %p1049_p2 = scmp.lt.s32.totalorder %s6260_s18, 3  ;;  %s6305_s1 = smov [#allocation8]  }
  0x71   : > { %s1086_s2 = sshll.u32 %s6305_s1, 4  ;;  %s6306_s10 = smov [#allocation11]   ;;  %s6606_s2 = int_to_ptr.vmem [resolvable:$true] %s1086_s2 }
  0x72   : > { %p6593_p3 = pnand %p4481_p0, %p1049_p2  ;;  %s1114_s11 = sshll.u32 %s6306_s10, 4  ;;  %s6608_s11 = int_to_ptr.vmem [resolvable:$true] %s1114_s11 }
  0x73   : > { %s5472_s22 = scalar_lea.hbm %s7754_s17, 256 }
  0x74   : > { %s7760_s28 = scalar_select %p6593_p3, 1, 0 }
  0x75   : > { %p5094_p5 = pneg %p6593_p3  ;;  %p5473_p7 = scmp.ne.s32.totalorder %s7754_s17, %s5472_s22 }
  0x76   : > { %p5479_p11 = scmp.lt.u32.totalorder %s5472_s22, %s7754_s17 }
  0x77   : > { %p6602_p6 = pnand %p5094_p5, %p7678_p1 }
  0x79   : > { %p6614_p8 = pneg %p6602_p6 }
  0x7b   : > { %p5475_p9 = pnand %p6614_p8, %p5473_p7 }
  0x7d   : > { %p5476_p10 = pneg %p5475_p9 }
  0x7f   : > { %p5481_p12 = pnand %p5479_p11, %p5476_p10 }
  0x81   : > { %5484 = shalt.err (!%p5481_p12)
}
  0x82   : > { %s5485_s1 = scalar_lea.vmem %s6591_s23, 256  ;;  %p5493_p5 = scmp.lt.s32.totalorder %s6591_s23, %s6591_s23 }
  0x83   : > { %p5486_p13 = scmp.ne.s32.totalorder %s6591_s23, %s5485_s1  ;;  %p5494_p4 = scmp.lt.s32.totalorder %s5485_s1, %s5485_s1 }
  0x85   : > { %p5488_p0 = pnand %p5486_p13, %p6614_p8  ;;  %p5495_p1 = por %p5494_p4, %p5493_p5 }
  0x87   : > { %p5489_p2 = pneg %p5488_p0 }
  0x89   : > { %p5496_p3 = pnand %p5495_p1, %p5489_p2 }
  0x8b   : > { %5499 = shalt.err (!%p5496_p3)
}
  0x8c   : > { %s6307_s10 = smov 128   ;;  %s6308_s22 = smov 8  }
  0x8d   : > { %5097 = dma.hbm_to_vmem [thread:$0]  (!%p6602_p6), %s7754_s17, 256, %s6591_s23, [#allocation6], %s6307_s10, %s6307_s10, %s6308_s22  }
  0x8e   : > { %s5500_s8 = scalar_lea.hbm %s6378_s25, 16 }
  0x8f   : > { %p5501_p7 = scmp.ne.s32.totalorder %s6378_s25, %s5500_s8  ;;  %p5507_p11 = scmp.lt.u32.totalorder %s5500_s8, %s6378_s25 }
  0x91   : > { %p5503_p9 = pnand %p5501_p7, %p6614_p8 }
  0x93   : > { %p5504_p10 = pneg %p5503_p9 }
  0x95   : > { %p5509_p4 = pnand %p5507_p11, %p5504_p10 }
  0x97   : > { %5512 = shalt.err (!%p5509_p4)
}
  0x98   : > { %s5513_s1 = scalar_lea.vmem %s6606_s2, 16  ;;  %s5520_s4 = scalar_lea.vmem %s6606_s2, 32 }
  0x99   : > { %p5514_p1 = scmp.ne.s32.totalorder %s6606_s2, %s5513_s1  ;;  %p5521_p13 = scmp.lt.s32.totalorder %s6606_s2, %s6606_s2 }
  0x9a   : > { %p5522_p0 = scmp.lt.s32.totalorder %s5520_s4, %s5513_s1 }
  0x9b   : > { %p5516_p3 = pnand %p5514_p1, %p6614_p8 }
  0x9c   : > { %p5523_p2 = por %p5522_p0, %p5521_p13 }
  0x9d   : > { %p5517_p12 = pneg %p5516_p3 }
  0x9f   : > { %p5524_p5 = pnand %p5523_p2, %p5517_p12 }
  0xa1   : > { %5527 = shalt.err (!%p5524_p5)
}
  0xa2   : > { %5103 = dma.hbm_to_vmem [thread:$0]  (!%p6602_p6), %s6378_s25, 16, %s6606_s2, [#allocation9]  }
  0xa3   : > { %s5528_s8 = scalar_lea.hbm %s7755_s14, 16 }
  0xa4   : > { %p5529_p7 = scmp.ne.s32.totalorder %s7755_s14, %s5528_s8  ;;  %p5535_p11 = scmp.lt.u32.totalorder %s5528_s8, %s7755_s14 }
  0xa6   : > { %p5531_p9 = pnand %p5529_p7, %p6614_p8 }
  0xa8   : > { %p5532_p10 = pneg %p5531_p9 }
  0xaa   : > { %p5537_p4 = pnand %p5535_p11, %p5532_p10 }
  0xac   : > { %5540 = shalt.err (!%p5537_p4)
}
  0xad   : > { %s5541_s4 = scalar_lea.vmem %s6608_s11, 16  ;;  %s5548_s23 = scalar_lea.vmem %s6608_s11, 32 }
  0xae   : > { %p5542_p1 = scmp.ne.s32.totalorder %s6608_s11, %s5541_s4  ;;  %p5549_p13 = scmp.lt.s32.totalorder %s6608_s11, %s6608_s11 }
  0xaf   : > { %p5550_p0 = scmp.lt.s32.totalorder %s5548_s23, %s5541_s4 }
  0xb0   : > { %p5544_p3 = pnand %p5542_p1, %p6614_p8 }
  0xb1   : > { %p5551_p2 = por %p5550_p0, %p5549_p13 }
  0xb2   : > { %p5545_p12 = pneg %p5544_p3 }
  0xb4   : > { %p5552_p5 = pnand %p5551_p2, %p5545_p12 }
  0xb6   : > { %5555 = shalt.err (!%p5552_p5)
}
  0xb7   : > { %5109 = dma.hbm_to_vmem [thread:$0]  (!%p6602_p6), %s7755_s14, 16, %s6608_s11, [#allocation12]  }
  0xb8   : > { %s6309_s2 = smov [#allocation14]   ;;  %s6310_s22 = smov [#allocation17]  }
  0xb9   : > { %s1136_s10 = sshll.u32 %s6309_s2, 4  ;;  %s1164_s1 = sshll.u32 %s6310_s22, 4  ;;  %s1137_s10 = int_to_ptr.vmem [resolvable:$true] %s1136_s10  ;;  %s1165_s1 = int_to_ptr.vmem [resolvable:$true] %s1164_s1 }
  0xba   : > { %s5556_s8 = scalar_lea.hbm %s6408_s24, 16 }
  0xbb   : > { %p5557_p7 = scmp.ne.s32.totalorder %s6408_s24, %s5556_s8  ;;  %p5563_p11 = scmp.lt.u32.totalorder %s5556_s8, %s6408_s24 }
  0xbd   : > { %p5559_p9 = pnand %p5557_p7, %p6614_p8 }
  0xbf   : > { %p5560_p10 = pneg %p5559_p9 }
  0xc1   : > { %p5565_p4 = pnand %p5563_p11, %p5560_p10 }
  0xc3   : > { %5568 = shalt.err (!%p5565_p4)
}
  0xc4   : > { %s5569_s4 = scalar_lea.vmem %s1137_s10, 16  ;;  %s5576_s11 = scalar_lea.vmem %s1137_s10, 32 }
  0xc5   : > { %p5570_p1 = scmp.ne.s32.totalorder %s1137_s10, %s5569_s4  ;;  %p5577_p13 = scmp.lt.s32.totalorder %s1137_s10, %s1137_s10 }
  0xc6   : > { %p5578_p0 = scmp.lt.s32.totalorder %s5576_s11, %s5569_s4 }
  0xc7   : > { %p5572_p3 = pnand %p5570_p1, %p6614_p8 }
  0xc8   : > { %p5579_p2 = por %p5578_p0, %p5577_p13 }
  0xc9   : > { %p5573_p12 = pneg %p5572_p3 }
  0xcb   : > { %p5580_p5 = pnand %p5579_p2, %p5573_p12 }
  0xcd   : > { %5583 = shalt.err (!%p5580_p5)
}
  0xce   : > { %5115 = dma.hbm_to_vmem [thread:$0]  (!%p6602_p6), %s6408_s24, 16, %s1137_s10, [#allocation15]  }
  0xcf   : > { %s5584_s23 = scalar_lea.hbm %s7752_s20, 16 }
  0xd0   : > { %p5585_p7 = scmp.ne.s32.totalorder %s7752_s20, %s5584_s23  ;;  %p5591_p11 = scmp.lt.u32.totalorder %s5584_s23, %s7752_s20 }
  0xd2   : > { %p5587_p9 = pnand %p5585_p7, %p6614_p8 }
  0xd4   : > { %p5588_p10 = pneg %p5587_p9 }
  0xd6   : > { %p5593_p4 = pnand %p5591_p11, %p5588_p10 }
  0xd8   : > { %5596 = shalt.err (!%p5593_p4)
}
  0xd9   : > { %s5597_s2 = scalar_lea.vmem %s1165_s1, 16  ;;  %s5604_s22 = scalar_lea.vmem %s1165_s1, 32 }
  0xda   : > { %p5598_p1 = scmp.ne.s32.totalorder %s1165_s1, %s5597_s2  ;;  %p5605_p13 = scmp.lt.s32.totalorder %s1165_s1, %s1165_s1 }
  0xdb   : > { %p5606_p0 = scmp.lt.s32.totalorder %s5604_s22, %s5597_s2 }
  0xdc   : > { %p5600_p3 = pnand %p5598_p1, %p6614_p8 }
  0xdd   : > { %p5607_p2 = por %p5606_p0, %p5605_p13 }
  0xde   : > { %p5601_p12 = pneg %p5600_p3 }
  0xe0   : > { %p5608_p5 = pnand %p5607_p2, %p5601_p12 }
  0xe2   : > { %5611 = shalt.err (!%p5608_p5)
}
  0xe3   : > { %5121 = dma.hbm_to_vmem [thread:$0]  (!%p6602_p6), %s7752_s20, 16, %s1165_s1, [#allocation18]  }
  0xe4   : > { %s6311_s10 = smov [#allocation20]   ;;  %s6312_s4 = smov [#allocation23]  }
  0xe5   : > { %s1192_s8 = sshll.u32 %s6311_s10, 4  ;;  %s1217_s11 = sshll.u32 %s6312_s4, 4  ;;  %s1193_s8 = int_to_ptr.vmem [resolvable:$true] %s1192_s8  ;;  %s1218_s11 = int_to_ptr.vmem [resolvable:$true] %s1217_s11 }
  0xe6   : > { %s5612_s23 = scalar_lea.hbm %s7759_s12, 16 }
  0xe7   : > { %p5613_p7 = scmp.ne.s32.totalorder %s7759_s12, %s5612_s23  ;;  %p5619_p11 = scmp.lt.u32.totalorder %s5612_s23, %s7759_s12 }
  0xe9   : > { %p5615_p9 = pnand %p5613_p7, %p6614_p8 }
  0xeb   : > { %p5616_p10 = pneg %p5615_p9 }
  0xed   : > { %p5621_p4 = pnand %p5619_p11, %p5616_p10 }
  0xef   : > { %5624 = shalt.err (!%p5621_p4)
}
  0xf0   : > { %s5625_s2 = scalar_lea.vmem %s1193_s8, 16  ;;  %s5632_s1 = scalar_lea.vmem %s1193_s8, 32 }
  0xf1   : > { %p5626_p1 = scmp.ne.s32.totalorder %s1193_s8, %s5625_s2  ;;  %p5633_p13 = scmp.lt.s32.totalorder %s1193_s8, %s1193_s8 }
  0xf2   : > { %p5634_p0 = scmp.lt.s32.totalorder %s5632_s1, %s5625_s2 }
  0xf3   : > { %p5628_p3 = pnand %p5626_p1, %p6614_p8 }
  0xf4   : > { %p5635_p2 = por %p5634_p0, %p5633_p13 }
  0xf5   : > { %p5629_p12 = pneg %p5628_p3 }
  0xf7   : > { %p5636_p5 = pnand %p5635_p2, %p5629_p12 }
  0xf9   : > { %5639 = shalt.err (!%p5636_p5)
}
  0xfa   : > { %5127 = dma.hbm_to_vmem [thread:$0]  (!%p6602_p6), %s7759_s12, 16, %s1193_s8, [#allocation21]  }
  0xfb   : > { %s5640_s22 = scalar_lea.hbm %s7756_s13, 16 }
  0xfc   : > { %p5641_p7 = scmp.ne.s32.totalorder %s7756_s13, %s5640_s22  ;;  %p5647_p11 = scmp.lt.u32.totalorder %s5640_s22, %s7756_s13 }
  0xfe   : > { %p5643_p9 = pnand %p5641_p7, %p6614_p8 }
 0x100   : > { %p5644_p10 = pneg %p5643_p9 }
 0x102   : > { %p5649_p4 = pnand %p5647_p11, %p5644_p10 }
 0x104   : > { %5652 = shalt.err (!%p5649_p4)
}
 0x105   : > { %s5653_s10 = scalar_lea.vmem %s1218_s11, 16  ;;  %s5660_s4 = scalar_lea.vmem %s1218_s11, 32 }
 0x106   : > { %p5654_p1 = scmp.ne.s32.totalorder %s1218_s11, %s5653_s10  ;;  %p5661_p13 = scmp.lt.s32.totalorder %s1218_s11, %s1218_s11 }
 0x107   : > { %p5662_p0 = scmp.lt.s32.totalorder %s5660_s4, %s5653_s10 }
 0x108   : > { %p5656_p3 = pnand %p5654_p1, %p6614_p8 }
 0x109   : > { %p5663_p2 = por %p5662_p0, %p5661_p13 }
 0x10a   : > { %p5657_p12 = pneg %p5656_p3 }
 0x10c   : > { %p5664_p5 = pnand %p5663_p2, %p5657_p12 }
 0x10e   : > { %5667 = shalt.err (!%p5664_p5)
}
 0x10f   : > { %5133 = dma.hbm_to_vmem [thread:$0]  (!%p6602_p6), %s7756_s13, 16, %s1218_s11, [#allocation24]  }
 0x110   : > { %s6313_s8 = smov [#allocation26]   ;;  %s6314_s2 = smov [#allocation29]  }
 0x111   : > { %s1239_s23 = sshll.u32 %s6313_s8, 4  ;;  %s1270_s1 = sshll.u32 %s6314_s2, 4  ;;  %s1240_s23 = int_to_ptr.vmem [resolvable:$true] %s1239_s23  ;;  %s1271_s1 = int_to_ptr.vmem [resolvable:$true] %s1270_s1 }
 0x112   : > { %s5668_s22 = scalar_lea.hbm %s6473_s29, 16 }
 0x113   : > { %p5669_p7 = scmp.ne.s32.totalorder %s6473_s29, %s5668_s22  ;;  %p5675_p11 = scmp.lt.u32.totalorder %s5668_s22, %s6473_s29 }
 0x115   : > { %p5671_p9 = pnand %p5669_p7, %p6614_p8 }
 0x117   : > { %p5672_p10 = pneg %p5671_p9 }
 0x119   : > { %p5677_p4 = pnand %p5675_p11, %p5672_p10 }
 0x11b   : > { %5680 = shalt.err (!%p5677_p4)
}
 0x11c   : > { %s5681_s10 = scalar_lea.vmem %s1240_s23, 16  ;;  %s5688_s11 = scalar_lea.vmem %s1240_s23, 32 }
 0x11d   : > { %p5682_p1 = scmp.ne.s32.totalorder %s1240_s23, %s5681_s10  ;;  %p5689_p13 = scmp.lt.s32.totalorder %s1240_s23, %s1240_s23 }
 0x11e   : > { %p5690_p0 = scmp.lt.s32.totalorder %s5688_s11, %s5681_s10 }
 0x11f   : > { %p5684_p3 = pnand %p5682_p1, %p6614_p8 }
 0x120   : > { %p5691_p2 = por %p5690_p0, %p5689_p13 }
 0x121   : > { %p5685_p12 = pneg %p5684_p3 }
 0x123   : > { %p5692_p5 = pnand %p5691_p2, %p5685_p12 }
 0x125   : > { %5695 = shalt.err (!%p5692_p5)
}
 0x126   : > { %5139 = dma.hbm_to_vmem [thread:$0]  (!%p6602_p6), %s6473_s29, 16, %s1240_s23, [#allocation27]  }
 0x127   : > { %s5696_s4 = scalar_lea.hbm %s6498_s30, 16 }
 0x128   : > { %p5697_p7 = scmp.ne.s32.totalorder %s6498_s30, %s5696_s4  ;;  %p5703_p11 = scmp.lt.u32.totalorder %s5696_s4, %s6498_s30 }
 0x12a   : > { %p5699_p9 = pnand %p5697_p7, %p6614_p8 }
 0x12c   : > { %p5700_p10 = pneg %p5699_p9 }
 0x12e   : > { %p5705_p4 = pnand %p5703_p11, %p5700_p10 }
 0x130   : > { %5708 = shalt.err (!%p5705_p4)
}
 0x131   : > { %s5709_s8 = scalar_lea.vmem %s1271_s1, 16  ;;  %s5716_s2 = scalar_lea.vmem %s1271_s1, 32 }
 0x132   : > { %p5710_p1 = scmp.ne.s32.totalorder %s1271_s1, %s5709_s8  ;;  %p5717_p13 = scmp.lt.s32.totalorder %s1271_s1, %s1271_s1 }
 0x133   : > { %p5718_p0 = scmp.lt.s32.totalorder %s5716_s2, %s5709_s8 }
 0x134   : > { %p5712_p3 = pnand %p5710_p1, %p6614_p8 }
 0x135   : > { %p5719_p2 = por %p5718_p0, %p5717_p13 }
 0x136   : > { %p5713_p12 = pneg %p5712_p3 }
 0x138   : > { %p5720_p5 = pnand %p5719_p2, %p5713_p12 }
 0x13a   : > { %5723 = shalt.err (!%p5720_p5)
}
 0x13b   : > { %5145 = dma.hbm_to_vmem [thread:$0]  (!%p6602_p6), %s6498_s30, 16, %s1271_s1, [#allocation30]  }
 0x13c   : > { %s6315_s23 = smov [#allocation32]   ;;  %s5724_s10 = scalar_lea.hbm %s7757_s9, 512 }
 0x13d   : > { %s1291_s22 = sshll.u32 %s6315_s23, 4  ;;  %p5725_p7 = scmp.ne.s32.totalorder %s7757_s9, %s5724_s10  ;;  %s1292_s22 = int_to_ptr.vmem [resolvable:$true] %s1291_s22 }
 0x13e   : > { %p5731_p11 = scmp.lt.u32.totalorder %s5724_s10, %s7757_s9 }
 0x13f   : > { %p5727_p9 = pnand %p5725_p7, %p6614_p8 }
 0x141   : > { %p5728_p10 = pneg %p5727_p9 }
 0x143   : > { %p5733_p4 = pnand %p5731_p11, %p5728_p10 }
 0x145   : > { %5736 = shalt.err (!%p5733_p4)
}
 0x146   : > { %s5737_s11 = scalar_lea.vmem %s1292_s22, 512  ;;  %p5745_p13 = scmp.lt.s32.totalorder %s1292_s22, %s1292_s22 }
 0x147   : > { %p5738_p1 = scmp.ne.s32.totalorder %s1292_s22, %s5737_s11  ;;  %p5746_p0 = scmp.lt.s32.totalorder %s5737_s11, %s5737_s11 }
 0x149   : > { %p5740_p3 = pnand %p5738_p1, %p6614_p8  ;;  %p5747_p2 = por %p5746_p0, %p5745_p13 }
 0x14b   : > { %p5741_p12 = pneg %p5740_p3 }
 0x14d   : > { %p5748_p5 = pnand %p5747_p2, %p5741_p12 }
 0x14f   : > { %5751 = shalt.err (!%p5748_p5)
}
 0x150   : > { %s6316_s1 = smov 64   ;;  %s6317_s4 = smov 4  }
 0x151   : > { %5151 = dma.hbm_to_vmem [thread:$0]  (!%p6602_p6), %s7757_s9, 512, %s1292_s22, [#allocation33], %s6316_s1, %s6316_s1, %s6317_s4  }
 0x152   : > { %s6318_s8 = smov [#allocation35]   ;;  %s6319_s23 = smov [#allocation7]  }
 0x153   : > { %s1316_s2 = sshll.u32 %s6318_s8, 4  ;;  %s1075_s10 = sshll.u32 %s6319_s23, 4  ;;  %s1317_s2 = int_to_ptr.vmem [resolvable:$true] %s1316_s2  ;;  %s6733_s10 = int_to_ptr.vmem [resolvable:$true] %s1075_s10 }
 0x154   : > { %s5752_s11 = scalar_lea.hbm %s6518_s27, 16 }
 0x155   : > { %p5753_p7 = scmp.ne.s32.totalorder %s6518_s27, %s5752_s11  ;;  %p5759_p11 = scmp.lt.u32.totalorder %s5752_s11, %s6518_s27 }
 0x157   : > { %p5755_p9 = pnand %p5753_p7, %p6614_p8 }
 0x159   : > { %p5756_p10 = pneg %p5755_p9 }
 0x15b   : > { %p5761_p4 = pnand %p5759_p11, %p5756_p10 }
 0x15d   : > { %5764 = shalt.err (!%p5761_p4)
}
 0x15e   : > { %s5765_s12 = scalar_lea.vmem %s1317_s2, 16  ;;  %s5772_s22 = scalar_lea.vmem %s1317_s2, 32 }
 0x15f   : > { %p5766_p1 = scmp.ne.s32.totalorder %s1317_s2, %s5765_s12  ;;  %p5773_p13 = scmp.lt.s32.totalorder %s1317_s2, %s1317_s2 }
 0x160   : > { %p5774_p0 = scmp.lt.s32.totalorder %s5772_s22, %s5765_s12 }
 0x161   : > { %p5768_p3 = pnand %p5766_p1, %p6614_p8 }
 0x162   : > { %p5775_p2 = por %p5774_p0, %p5773_p13 }
 0x163   : > { %p5769_p12 = pneg %p5768_p3 }
 0x165   : > { %p5776_p5 = pnand %p5775_p2, %p5769_p12 }
 0x167   : > { %5779 = shalt.err (!%p5776_p5)
}
 0x168   : > { %5157 = dma.hbm_to_vmem [thread:$0]  (!%p6602_p6), %s6518_s27, 16, %s1317_s2, [#allocation36]  }
 0x169   : > { %s5780_s1 = scalar_lea.hbm %s6373_s21, 16 }
 0x16a   : > { %p5781_p7 = scmp.ne.s32.totalorder %s6373_s21, %s5780_s1  ;;  %p5787_p11 = scmp.lt.u32.totalorder %s5780_s1, %s6373_s21 }
 0x16c   : > { %p5783_p9 = pnand %p5781_p7, %p6614_p8 }
 0x16e   : > { %p5784_p10 = pneg %p5783_p9 }
 0x170   : > { %p5789_p4 = pnand %p5787_p11, %p5784_p10 }
 0x172   : > { %5792 = shalt.err (!%p5789_p4)
}
 0x173   : > { %s5793_s12 = scalar_lea.vmem %s6733_s10, 16  ;;  %s5800_s4 = scalar_lea.vmem %s6733_s10, 32 }
 0x174   : > { %p5794_p1 = scmp.ne.s32.totalorder %s6733_s10, %s5793_s12  ;;  %p5801_p13 = scmp.lt.s32.totalorder %s6733_s10, %s6733_s10 }
 0x175   : > { %p5802_p0 = scmp.lt.s32.totalorder %s5800_s4, %s5793_s12 }
 0x176   : > { %p5796_p3 = pnand %p5794_p1, %p6614_p8 }
 0x177   : > { %p5803_p2 = por %p5802_p0, %p5801_p13 }
 0x178   : > { %p5797_p12 = pneg %p5796_p3 }
 0x17a   : > { %p5804_p5 = pnand %p5803_p2, %p5797_p12 }
 0x17c   : > { %5807 = shalt.err (!%p5804_p5)
}
 0x17d   : > { %5100 = dma.hbm_to_vmem [thread:$0]  (!%p6602_p6), %s6373_s21, 16, %s6733_s10, [#allocation6]  }
 0x17e   : > { %s6320_s8 = smov [#allocation10]   ;;  %s6321_s23 = smov [#allocation13]  }
 0x17f   : > { %s1100_s2 = sshll.u32 %s6320_s8, 4  ;;  %s1125_s11 = sshll.u32 %s6321_s23, 4  ;;  %s1101_s2 = int_to_ptr.vmem [resolvable:$true] %s1100_s2  ;;  %s6761_s11 = int_to_ptr.vmem [resolvable:$true] %s1125_s11 }
 0x180   : > { %s5808_s22 = scalar_lea.hbm %s7758_s3, 16 }
 0x181   : > { %p5809_p7 = scmp.ne.s32.totalorder %s7758_s3, %s5808_s22  ;;  %p5815_p11 = scmp.lt.u32.totalorder %s5808_s22, %s7758_s3 }
 0x183   : > { %p5811_p9 = pnand %p5809_p7, %p6614_p8 }
 0x185   : > { %p5812_p10 = pneg %p5811_p9 }
 0x187   : > { %p5817_p4 = pnand %p5815_p11, %p5812_p10 }
 0x189   : > { %5820 = shalt.err (!%p5817_p4)
}
 0x18a   : > { %s5821_s1 = scalar_lea.vmem %s1101_s2, 16  ;;  %s5828_s10 = scalar_lea.vmem %s1101_s2, 32 }
 0x18b   : > { %p5822_p1 = scmp.ne.s32.totalorder %s1101_s2, %s5821_s1  ;;  %p5829_p13 = scmp.lt.s32.totalorder %s1101_s2, %s1101_s2 }
 0x18c   : > { %p5830_p0 = scmp.lt.s32.totalorder %s5828_s10, %s5821_s1 }
 0x18d   : > { %p5824_p3 = pnand %p5822_p1, %p6614_p8 }
 0x18e   : > { %p5831_p2 = por %p5830_p0, %p5829_p13 }
 0x18f   : > { %p5825_p12 = pneg %p5824_p3 }
 0x191   : > { %p5832_p5 = pnand %p5831_p2, %p5825_p12 }
 0x193   : > { %5835 = shalt.err (!%p5832_p5)
}
 0x194   : > { %5106 = dma.hbm_to_vmem [thread:$0]  (!%p6602_p6), %s7758_s3, 16, %s1101_s2, [#allocation9]  }
 0x195   : > { %s5836_s12 = scalar_lea.hbm %s7753_s19, 16 }
 0x196   : > { %p5837_p7 = scmp.ne.s32.totalorder %s7753_s19, %s5836_s12  ;;  %p5843_p11 = scmp.lt.u32.totalorder %s5836_s12, %s7753_s19 }
 0x198   : > { %p5839_p9 = pnand %p5837_p7, %p6614_p8 }
 0x19a   : > { %p5840_p10 = pneg %p5839_p9 }
 0x19c   : > { %p5845_p4 = pnand %p5843_p11, %p5840_p10 }
 0x19e   : > { %5848 = shalt.err (!%p5845_p4)
}
 0x19f   : > { %s5849_s4 = scalar_lea.vmem %s6761_s11, 16  ;;  %s5856_s8 = scalar_lea.vmem %s6761_s11, 32 }
 0x1a0   : > { %p5850_p1 = scmp.ne.s32.totalorder %s6761_s11, %s5849_s4  ;;  %p5857_p13 = scmp.lt.s32.totalorder %s6761_s11, %s6761_s11 }
 0x1a1   : > { %p5858_p0 = scmp.lt.s32.totalorder %s5856_s8, %s5849_s4 }
 0x1a2   : > { %p5852_p3 = pnand %p5850_p1, %p6614_p8 }
 0x1a3   : > { %p5859_p2 = por %p5858_p0, %p5857_p13 }
 0x1a4   : > { %p5853_p12 = pneg %p5852_p3 }
 0x1a6   : > { %p5860_p5 = pnand %p5859_p2, %p5853_p12 }
 0x1a8   : > { %5863 = shalt.err (!%p5860_p5)
}
 0x1a9   : > { %s7763_s2 = sld [smem:[#allocation65_spill]]  ;;  %s6322_s23 = smov [#allocation16]  }
 0x1aa   : > { %5112 = dma.hbm_to_vmem [thread:$0]  (!%p6602_p6), %s7753_s19, 16, %s6761_s11, [#allocation12]  }
 0x1ab   : > { %s1150_s22 = sshll.u32 %s6322_s23, 4  ;;  %s6323_s1 = smov [#allocation19]   ;;  %s1151_s22 = int_to_ptr.vmem [resolvable:$true] %s1150_s22 }
 0x1ac   : > { %s1178_s10 = sshll.u32 %s6323_s1, 4  ;;  %s6789_s10 = int_to_ptr.vmem [resolvable:$true] %s1178_s10 }
 0x1af   : > { %s5864_s12 = scalar_lea.hbm %s7763_s2, 16 }
 0x1b0   : > { %p5865_p7 = scmp.ne.s32.totalorder %s7763_s2, %s5864_s12  ;;  %p5871_p11 = scmp.lt.u32.totalorder %s5864_s12, %s7763_s2 }
 0x1b2   : > { %p5867_p9 = pnand %p5865_p7, %p6614_p8 }
 0x1b4   : > { %p5868_p10 = pneg %p5867_p9 }
 0x1b6   : > { %p5873_p4 = pnand %p5871_p11, %p5868_p10 }
 0x1b8   : > { %5876 = shalt.err (!%p5873_p4)
}
 0x1b9   : > { %s5877_s4 = scalar_lea.vmem %s1151_s22, 16  ;;  %s5884_s11 = scalar_lea.vmem %s1151_s22, 32 }
 0x1ba   : > { %p5878_p1 = scmp.ne.s32.totalorder %s1151_s22, %s5877_s4  ;;  %p5885_p13 = scmp.lt.s32.totalorder %s1151_s22, %s1151_s22 }
 0x1bb   : > { %p5886_p0 = scmp.lt.s32.totalorder %s5884_s11, %s5877_s4 }
 0x1bc   : > { %p5880_p3 = pnand %p5878_p1, %p6614_p8 }
 0x1bd   : > { %p5887_p2 = por %p5886_p0, %p5885_p13 }
 0x1be   : > { %p5881_p12 = pneg %p5880_p3 }
 0x1c0   : > { %p5888_p5 = pnand %p5887_p2, %p5881_p12 }
 0x1c2   : > { %5891 = shalt.err (!%p5888_p5)
}
 0x1c3   : > { %s7764_s8 = sld [smem:[#allocation69_spill]] }
 0x1c4   : > { %5118 = dma.hbm_to_vmem [thread:$0]  (!%p6602_p6), %s7763_s2, 16, %s1151_s22, [#allocation15]  }
 0x1c9   : > { %s5892_s23 = scalar_lea.hbm %s7764_s8, 16 }
 0x1ca   : > { %p5893_p7 = scmp.ne.s32.totalorder %s7764_s8, %s5892_s23  ;;  %p5899_p11 = scmp.lt.u32.totalorder %s5892_s23, %s7764_s8 }
 0x1cc   : > { %p5895_p9 = pnand %p5893_p7, %p6614_p8 }
 0x1ce   : > { %p5896_p10 = pneg %p5895_p9 }
 0x1d0   : > { %p5901_p4 = pnand %p5899_p11, %p5896_p10 }
 0x1d2   : > { %5904 = shalt.err (!%p5901_p4)
}
 0x1d3   : > { %s5905_s1 = scalar_lea.vmem %s6789_s10, 16  ;;  %s5912_s12 = scalar_lea.vmem %s6789_s10, 32 }
 0x1d4   : > { %p5906_p1 = scmp.ne.s32.totalorder %s6789_s10, %s5905_s1  ;;  %p5913_p13 = scmp.lt.s32.totalorder %s6789_s10, %s6789_s10 }
 0x1d5   : > { %p5914_p0 = scmp.lt.s32.totalorder %s5912_s12, %s5905_s1 }
 0x1d6   : > { %p5908_p3 = pnand %p5906_p1, %p6614_p8 }
 0x1d7   : > { %p5915_p2 = por %p5914_p0, %p5913_p13 }
 0x1d8   : > { %p5909_p12 = pneg %p5908_p3 }
 0x1da   : > { %p5916_p5 = pnand %p5915_p2, %p5909_p12 }
 0x1dc   : > { %5919 = shalt.err (!%p5916_p5)
}
 0x1dd   : > { %s7765_s22 = sld [smem:[#allocation72_spill]]  ;;  %s6324_s4 = smov [#allocation22]  }
 0x1de   : > { %5124 = dma.hbm_to_vmem [thread:$0]  (!%p6602_p6), %s7764_s8, 16, %s6789_s10, [#allocation18]  }
 0x1df   : > { %s1203_s11 = sshll.u32 %s6324_s4, 4  ;;  %s6325_s23 = smov [#allocation25]   ;;  %s1204_s11 = int_to_ptr.vmem [resolvable:$true] %s1203_s11 }
 0x1e0   : > { %s1228_s2 = sshll.u32 %s6325_s23, 4  ;;  %s6817_s2 = int_to_ptr.vmem [resolvable:$true] %s1228_s2 }
 0x1e3   : > { %s5920_s1 = scalar_lea.hbm %s7765_s22, 16 }
 0x1e4   : > { %p5921_p7 = scmp.ne.s32.totalorder %s7765_s22, %s5920_s1  ;;  %p5927_p11 = scmp.lt.u32.totalorder %s5920_s1, %s7765_s22 }
 0x1e6   : > { %p5923_p9 = pnand %p5921_p7, %p6614_p8 }
 0x1e8   : > { %p5924_p10 = pneg %p5923_p9 }
 0x1ea   : > { %p5929_p4 = pnand %p5927_p11, %p5924_p10 }
 0x1ec   : > { %5932 = shalt.err (!%p5929_p4)
}
 0x1ed   : > { %s5933_s12 = scalar_lea.vmem %s1204_s11, 16  ;;  %s5940_s10 = scalar_lea.vmem %s1204_s11, 32 }
 0x1ee   : > { %p5934_p1 = scmp.ne.s32.totalorder %s1204_s11, %s5933_s12  ;;  %p5941_p13 = scmp.lt.s32.totalorder %s1204_s11, %s1204_s11 }
 0x1ef   : > { %p5942_p0 = scmp.lt.s32.totalorder %s5940_s10, %s5933_s12 }
 0x1f0   : > { %p5936_p3 = pnand %p5934_p1, %p6614_p8 }
 0x1f1   : > { %p5943_p2 = por %p5942_p0, %p5941_p13 }
 0x1f2   : > { %p5937_p12 = pneg %p5936_p3 }
 0x1f4   : > { %p5944_p5 = pnand %p5943_p2, %p5937_p12 }
 0x1f6   : > { %5947 = shalt.err (!%p5944_p5)
}
 0x1f7   : > { %s7766_s4 = sld [smem:[#allocation75_spill]] }
 0x1f8   : > { %5130 = dma.hbm_to_vmem [thread:$0]  (!%p6602_p6), %s7765_s22, 16, %s1204_s11, [#allocation21]  }
 0x1fd   : > { %s5948_s23 = scalar_lea.hbm %s7766_s4, 16 }
 0x1fe   : > { %p5949_p7 = scmp.ne.s32.totalorder %s7766_s4, %s5948_s23  ;;  %p5955_p11 = scmp.lt.u32.totalorder %s5948_s23, %s7766_s4 }
 0x200   : > { %p5951_p9 = pnand %p5949_p7, %p6614_p8 }
 0x202   : > { %p5952_p10 = pneg %p5951_p9 }
 0x204   : > { %p5957_p4 = pnand %p5955_p11, %p5952_p10 }
 0x206   : > { %5960 = shalt.err (!%p5957_p4)
}
 0x207   : > { %s5961_s1 = scalar_lea.vmem %s6817_s2, 16  ;;  %s5968_s12 = scalar_lea.vmem %s6817_s2, 32 }
 0x208   : > { %p5962_p1 = scmp.ne.s32.totalorder %s6817_s2, %s5961_s1  ;;  %p5969_p13 = scmp.lt.s32.totalorder %s6817_s2, %s6817_s2 }
 0x209   : > { %p5970_p0 = scmp.lt.s32.totalorder %s5968_s12, %s5961_s1 }
 0x20a   : > { %p5964_p3 = pnand %p5962_p1, %p6614_p8 }
 0x20b   : > { %p5971_p2 = por %p5970_p0, %p5969_p13 }
 0x20c   : > { %p5965_p12 = pneg %p5964_p3 }
 0x20e   : > { %p5972_p5 = pnand %p5971_p2, %p5965_p12 }
 0x210   : > { %5975 = shalt.err (!%p5972_p5)
}
 0x211   : > { %s7767_s11 = sld [smem:[#allocation78_spill]]  ;;  %s6326_s10 = smov [#allocation28]  }
 0x212   : > { %5136 = dma.hbm_to_vmem [thread:$0]  (!%p6602_p6), %s7766_s4, 16, %s6817_s2, [#allocation24]  }
 0x213   : > { %s1256_s23 = sshll.u32 %s6326_s10, 4  ;;  %s6327_s3 = smov [#allocation31]   ;;  %s1257_s23 = int_to_ptr.vmem [resolvable:$true] %s1256_s23 }
 0x214   : > { %s1281_s8 = sshll.u32 %s6327_s3, 4  ;;  %s6845_s8 = int_to_ptr.vmem [resolvable:$true] %s1281_s8 }
 0x217   : > { %s5976_s1 = scalar_lea.hbm %s7767_s11, 128 }
 0x218   : > { %p5977_p7 = scmp.ne.s32.totalorder %s7767_s11, %s5976_s1  ;;  %p5983_p11 = scmp.lt.u32.totalorder %s5976_s1, %s7767_s11 }
 0x21a   : > { %p5979_p9 = pnand %p5977_p7, %p6614_p8 }
 0x21c   : > { %p5980_p10 = pneg %p5979_p9 }
 0x21e   : > { %p5985_p4 = pnand %p5983_p11, %p5980_p10 }
 0x220   : > { %5988 = shalt.err (!%p5985_p4)
}
 0x221   : > { %s5989_s12 = scalar_lea.vmem %s1257_s23, 128  ;;  %p5997_p13 = scmp.lt.s32.totalorder %s1257_s23, %s1257_s23 }
 0x222   : > { %p5990_p1 = scmp.ne.s32.totalorder %s1257_s23, %s5989_s12  ;;  %p5998_p0 = scmp.lt.s32.totalorder %s5989_s12, %s5989_s12 }
 0x224   : > { %p5992_p3 = pnand %p5990_p1, %p6614_p8  ;;  %p5999_p2 = por %p5998_p0, %p5997_p13 }
 0x226   : > { %p5993_p12 = pneg %p5992_p3 }
 0x228   : > { %p6000_p5 = pnand %p5999_p2, %p5993_p12 }
 0x22a   : > { %6003 = shalt.err (!%p6000_p5)
}
 0x22b   : > { %s7768_s3 = sld [smem:[#allocation80_spill]] }
 0x22c   : > { %5142 = dma.hbm_to_vmem [thread:$0]  (!%p6602_p6), %s7767_s11, 128, %s1257_s23, [#allocation27]  }
 0x231   : > { %s6004_s2 = scalar_lea.hbm %s7768_s3, 16 }
 0x232   : > { %p6005_p7 = scmp.ne.s32.totalorder %s7768_s3, %s6004_s2  ;;  %p6011_p11 = scmp.lt.u32.totalorder %s6004_s2, %s7768_s3 }
 0x234   : > { %p6007_p9 = pnand %p6005_p7, %p6614_p8 }
 0x236   : > { %p6008_p10 = pneg %p6007_p9 }
 0x238   : > { %p6013_p4 = pnand %p6011_p11, %p6008_p10 }
 0x23a   : > { %6016 = shalt.err (!%p6013_p4)
}
 0x23b   : > { %s6017_s10 = scalar_lea.vmem %s6845_s8, 16  ;;  %s6024_s1 = scalar_lea.vmem %s6845_s8, 32 }
 0x23c   : > { %p6018_p1 = scmp.ne.s32.totalorder %s6845_s8, %s6017_s10  ;;  %p6025_p13 = scmp.lt.s32.totalorder %s6845_s8, %s6845_s8 }
 0x23d   : > { %p6026_p0 = scmp.lt.s32.totalorder %s6024_s1, %s6017_s10 }
 0x23e   : > { %p6020_p3 = pnand %p6018_p1, %p6614_p8 }
 0x23f   : > { %p6027_p2 = por %p6026_p0, %p6025_p13 }
 0x240   : > { %p6021_p12 = pneg %p6020_p3 }
 0x242   : > { %p6028_p5 = pnand %p6027_p2, %p6021_p12 }
 0x244   : > { %6031 = shalt.err (!%p6028_p5)
}
 0x245   : > { %s7769_s23 = sld [smem:[#allocation82_spill]]  ;;  %s6328_s12 = smov [#allocation34]  }
 0x246   : > { %5148 = dma.hbm_to_vmem [thread:$0]  (!%p6602_p6), %s7768_s3, 16, %s6845_s8, [#allocation30]  }
 0x247   : > { %s1305_s2 = sshll.u32 %s6328_s12, 4  ;;  %s6329_s4 = smov [#allocation37]   ;;  %s1306_s2 = int_to_ptr.vmem [resolvable:$true] %s1305_s2 }
 0x248   : > { %s1327_s9 = sshll.u32 %s6329_s4, 4  ;;  %s6873_s9 = int_to_ptr.vmem [resolvable:$true] %s1327_s9 }
 0x24b   : > { %s6032_s10 = scalar_lea.hbm %s7769_s23, 16 }
 0x24c   : > { %p6033_p7 = scmp.ne.s32.totalorder %s7769_s23, %s6032_s10  ;;  %p6039_p11 = scmp.lt.u32.totalorder %s6032_s10, %s7769_s23 }
 0x24e   : > { %p6035_p9 = pnand %p6033_p7, %p6614_p8 }
 0x250   : > { %p6036_p10 = pneg %p6035_p9 }
 0x252   : > { %p6041_p4 = pnand %p6039_p11, %p6036_p10 }
 0x254   : > { %6044 = shalt.err (!%p6041_p4)
}
 0x255   : > { %s6045_s1 = scalar_lea.vmem %s1306_s2, 16  ;;  %s6052_s8 = scalar_lea.vmem %s1306_s2, 32 }
 0x256   : > { %p6046_p1 = scmp.ne.s32.totalorder %s1306_s2, %s6045_s1  ;;  %p6053_p13 = scmp.lt.s32.totalorder %s1306_s2, %s1306_s2 }
 0x257   : > { %p6054_p0 = scmp.lt.s32.totalorder %s6052_s8, %s6045_s1 }
 0x258   : > { %p6048_p3 = pnand %p6046_p1, %p6614_p8 }
 0x259   : > { %p6055_p2 = por %p6054_p0, %p6053_p13 }
 0x25a   : > { %p6049_p12 = pneg %p6048_p3 }
 0x25c   : > { %p6056_p5 = pnand %p6055_p2, %p6049_p12 }
 0x25e   : > { %6059 = shalt.err (!%p6056_p5)
}
 0x25f   : > { %s7770_s4 = sld [smem:[#allocation83_spill]] }
 0x260   : > { %5154 = dma.hbm_to_vmem [thread:$0]  (!%p6602_p6), %s7769_s23, 16, %s1306_s2, [#allocation33]  }
 0x265   : > { %s6060_s12 = scalar_lea.hbm %s7770_s4, 16 }
 0x266   : > { %p6061_p7 = scmp.ne.s32.totalorder %s7770_s4, %s6060_s12  ;;  %p6067_p11 = scmp.lt.u32.totalorder %s6060_s12, %s7770_s4 }
 0x268   : > { %p6063_p9 = pnand %p6061_p7, %p6614_p8 }
 0x26a   : > { %p6064_p10 = pneg %p6063_p9 }
 0x26c   : > { %p6069_p4 = pnand %p6067_p11, %p6064_p10 }
 0x26e   : > { %6072 = shalt.err (!%p6069_p4)
}
 0x26f   : > { %s6073_s10 = scalar_lea.vmem %s6873_s9, 16  ;;  %s6080_s1 = scalar_lea.vmem %s6873_s9, 32 }
 0x270   : > { %p6074_p1 = scmp.ne.s32.totalorder %s6873_s9, %s6073_s10  ;;  %p6081_p13 = scmp.lt.s32.totalorder %s6873_s9, %s6873_s9 }
 0x271   : > { %p6082_p0 = scmp.lt.s32.totalorder %s6080_s1, %s6073_s10 }
 0x272   : > { %p6076_p3 = pnand %p6074_p1, %p6614_p8 }
 0x273   : > { %p6083_p2 = por %p6082_p0, %p6081_p13 }
 0x274   : > { %p6077_p12 = pneg %p6076_p3 }
 0x276   : > { %p6084_p5 = pnand %p6083_p2, %p6077_p12 }
 0x278   : > { %6087 = shalt.err (!%p6084_p5)
}
 0x279   : > { %5160 = dma.hbm_to_vmem [thread:$0]  (!%p6602_p6), %s7770_s4, 16, %s6873_s9, [#allocation36]  }
 0x27a   : > { %s4480_s6 = sadd.s32 4294967294, %s6260_s18   ;;  %s6903_s2 = sadd.s32 1, %s6260_s18  }
 0x27b   : > { %s146_s7 = ssub.s32 %s6260_s18, %s6903_s2  ;;  %s149_s8 = sadd.s32 1, %s6256_s16 }
 0x27c   : > { %s7771_s12 = sld [smem:[#allocation56_spill]]  ;;  %p147_p8 = scmp.eq.s32.totalorder %s146_s7, 0 }
 0x27d   : > { %p156_p7 = scmp.ne.s32.totalorder %s6256_s16, %s6252_s0  ;;  %p157_p9 = scmp.eq.s32.totalorder %s6260_s18, 0 }
 0x27e   : > { %p162_p10 = scmp.ne.s32.totalorder %s6252_s0, %s6248_s15  ;;  %p7773_p4 = scmp.eq.s32.totalorder %s6586_s26, 0 }
 0x27f   : > { %s6914_s10 = scalar_select %p147_p8, %s6256_s16, %s149_s8  }
 0x280   : > { %p6916_p11 = por %p157_p9, %p156_p7  ;;  %p6922_p6 = por %p7773_p4, %p162_p10 }
 0x281   : > { %p1010_p1 = scmp.eq.s32.totalorder %s6586_s26, 1  ;;  %p1016_p3 = scmp.eq.s32.totalorder %s4480_s6, 1 }
 0x282   : > { %s7774_s9 = scalar_select %p6922_p6, 1, 0 }
 0x283   : > { %p5194_p12 = scmp.lt.s32.totalorder %s6260_s18, 2  ;;  %s1364_s3 = sand.u32 1, %s6256_s16  }
 0x284   : > { %p6929_p13 = por %p1010_p1, %p156_p7  ;;  %p6933_p0 = por %p1016_p3, %p162_p10 }
 0x285   : > { %s4505_s4 = sshll.u32 %s1364_s3, 2  ;;  %s4669_s11 = sshll.u32 %s6260_s18, 6 }
 0x286   : > { %s7775_s7 = scalar_select %p6929_p13, 1, 0 }
 0x287   : > { %s7776_s8 = scalar_select %p6933_p0, 1, 0 }
 0x288   : > { %s6939_s13 = scalar_lea.hbm %s7771_s12, %s4669_s11  ;;  %s1368_s6 = scalar_lea.vmem [#allocation2], %s4505_s4 }
 0x289   : > { %s1375_s14 = sshll.u32 %s1368_s6, 4  ;;  %p6945_p2 = pnand %p5194_p12, %p6916_p11  ;;  %s6941_s14 = int_to_ptr.vmem [resolvable:$true] %s1375_s14 }
 0x28a   : > { %s6949_s19 = scalar_lea.sflag [#allocation3], %s1364_s3  ;;  %s6088_s20 = scalar_lea.hbm %s6939_s13, 64 }
 0x28b   : > { %p6089_p5 = scmp.ne.s32.totalorder %s6939_s13, %s6088_s20  ;;  %p6090_p8 = pneg %p6945_p2 }
 0x28c   : > { %s6093_s11 = scalar_lea.hbm %s7771_s12, 128  ;;  %p6094_p10 = scmp.lt.u32.totalorder %s6939_s13, %s7771_s12 }
 0x28d   : > { %p6091_p7 = pnand %p6090_p8, %p6089_p5  ;;  %p6095_p4 = scmp.lt.u32.totalorder %s6093_s11, %s6088_s20 }
 0x28e   : > { %p6097_p11 = scmp.lt.u32.totalorder %s6088_s20, %s6939_s13 }
 0x28f   : > { %p6092_p9 = pneg %p6091_p7  ;;  %p6096_p1 = por %p6095_p4, %p6094_p10 }
 0x291   : > { %p6098_p3 = por %p6097_p11, %p6096_p1 }
 0x293   : > { %p6099_p12 = pnand %p6098_p3, %p6092_p9 }
 0x295   : > { %6102 = shalt.err (!%p6099_p12)
}
 0x296   : > { %s6103_s3 = scalar_lea.vmem %s6941_s14, 64  ;;  %s6330_s4 = smov [#allocation2]  }
 0x297   : > { %p6104_p0 = scmp.ne.s32.totalorder %s6941_s14, %s6103_s3  ;;  %s6108_s1 = sshll.u32 %s6330_s4, 4  ;;  %s6109_s1 = int_to_ptr.vmem [resolvable:$false] %s6108_s1 }
 0x298   : > { %s6110_s6 = scalar_lea.vmem %s6109_s1, 128  ;;  %p6111_p5 = scmp.lt.s32.totalorder %s6941_s14, %s6109_s1 }
 0x299   : > { %p6106_p13 = pnand %p6104_p0, %p6090_p8  ;;  %p6112_p7 = scmp.lt.s32.totalorder %s6110_s6, %s6103_s3 }
 0x29b   : > { %p6107_p6 = pneg %p6106_p13  ;;  %p6113_p10 = por %p6112_p7, %p6111_p5 }
 0x29d   : > { %p6114_p4 = pnand %p6113_p10, %p6107_p6 }
 0x29f   : > { %6117 = shalt.err (!%p6114_p4)
}
 0x2a0   : > { %s6331_s20 = smov 32   ;;  %s6332_s11 = smov 2  }
 0x2a1   : > { %5164 = dma.hbm_to_vmem [thread:$0]  (!%p6945_p2), %s6939_s13, 64, %s6941_s14, %s6949_s19, %s6331_s20, %s6331_s20, %s6332_s11  }
 0x2a2   : > { %p7778_p0 = scmp.ne.s32.totalorder %s7760_s28, 0 }
 0x2a3   : > { %s6976_s4 = sand.u32 (!%p7778_p0), 1, %s6252_s0   ;;  %p7779_p6 = scmp.ne.s32.totalorder (!%p7778_p0), %s7774_s9, 0 }
 0x2a4   : > { %1395 = sbr.rel (%p7778_p0) target bundleno = 7510 (0x1d56), region = 184  ;;  %s4509_s3 = sshll.u32 (!%p7778_p0), %s6976_s4, 2 }
 0x2a5   : > { %s1398_s1 = scalar_lea.sflag (!%p7778_p0), [#allocation3], %s6976_s4  ;;  %s6980_s6 = scalar_lea.vmem (!%p7778_p0), [#allocation2], %s4509_s3 }
 0x2ab   : > { %6191 = dma.done.wait (%p7779_p6), %s1398_s1, 64  }
 0x2ac   : > { %6193 = vsyncadd (%p7779_p6), %s1398_s1, 4294967232  ;;  %p7780_p13 = scmp.eq.s32.totalorder %s6586_s26, 0 }
 0x2ae   : > { %6195 = dma.done.wait (%p7780_p13), [#allocation6], 272   ;;  %p7781_p2 = pmov %p7780_p13 }
 0x2b0   : > { %6197 = vsyncadd (%p7781_p2), [#allocation6], 4294967024  ;;  %p7782_p8 = pmov %p7781_p2 }
 0x2b1   : > { %p7783_p9 = pmov %p7781_p2 }
 0x2b2   : > { %6199 = dma.done.wait (%p7782_p8), [#allocation9], 32  }
 0x2b3   : > { %6201 = vsyncadd (%p7783_p9), [#allocation9], 4294967264  ;;  %p7784_p1 = pmov %p7781_p2 }
 0x2b5   : > { %6203 = dma.done.wait (%p7784_p1), [#allocation12], 32   ;;  %p7785_p11 = pmov %p7784_p1 }
 0x2b6   : > { %p7786_p3 = pmov %p7784_p1 }
 0x2b7   : > { %6205 = vsyncadd (%p7785_p11), [#allocation12], 4294967264 }
 0x2b8   : > { %6207 = dma.done.wait (%p7786_p3), [#allocation15], 32   ;;  %p7787_p12 = pmov %p7784_p1 }
 0x2b9   : > { %p7788_p5 = pmov %p7784_p1 }
 0x2ba   : > { %6209 = vsyncadd (%p7787_p12), [#allocation15], 4294967264 }
 0x2bb   : > { %6211 = dma.done.wait (%p7788_p5), [#allocation18], 32   ;;  %p7789_p7 = pmov %p7784_p1 }
 0x2bc   : > { %p7790_p10 = pmov %p7784_p1 }
 0x2bd   : > { %6213 = vsyncadd (%p7789_p7), [#allocation18], 4294967264 }
 0x2be   : > { %6215 = dma.done.wait (%p7790_p10), [#allocation21], 32   ;;  %p7791_p4 = pmov %p7784_p1 }
 0x2bf   : > { %p7792_p0 = pmov %p7784_p1 }
 0x2c0   : > { %6217 = vsyncadd (%p7791_p4), [#allocation21], 4294967264 }
 0x2c1   : > { %6219 = dma.done.wait (%p7792_p0), [#allocation24], 32   ;;  %p7793_p6 = pmov %p7792_p0 }
 0x2c2   : > { %p7794_p13 = pmov %p7792_p0 }
 0x2c3   : > { %6221 = vsyncadd (%p7793_p6), [#allocation24], 4294967264 }
 0x2c4   : > { %6223 = dma.done.wait (%p7794_p13), [#allocation27], 144   ;;  %p7795_p2 = pmov %p7792_p0 }
 0x2c5   : > { %p7796_p8 = pmov %p7792_p0 }
 0x2c6   : > { %6225 = vsyncadd (%p7795_p2), [#allocation27], 4294967152 }
 0x2c7   : > { %6227 = dma.done.wait (%p7796_p8), [#allocation30], 32   ;;  %p7797_p9 = pmov %p7792_p0 }
 0x2c8   : > { %p7798_p1 = pmov %p7792_p0 }
 0x2c9   : > { %6229 = vsyncadd (%p7797_p9), [#allocation30], 4294967264 }
 0x2ca   : > { %6231 = dma.done.wait (%p7798_p1), [#allocation33], 528   ;;  %p7799_p11 = pmov %p7792_p0 }
 0x2cb   : > { %p7800_p3 = pmov %p7792_p0 }
 0x2cc   : > { %6233 = vsyncadd (%p7799_p11), [#allocation33], 4294966768 }
 0x2cd   : > { %6235 = dma.done.wait (%p7800_p3), [#allocation36], 32   ;;  %p7801_p12 = pmov %p7792_p0 }
 0x2ce   : > { %s7802_s13 = sld [smem:[#allocation55_spill]]  ;;  %p1605_p5 = scmp.lt.s32.totalorder %s6586_s26, 1  ;;  %vm1646_vm0 = vcmask 523264   ;;  %v6333_v15 = vmov 0.0   ;;  %vm6334_vm1 = vmmov 0   ;;  %vm2291_vm2 = vcmask 130048  }
 0x2cf   : > { %6237 = vsyncadd (%p7801_p12), [#allocation36], 4294967264  ;;  %s7803_s28 = sld [smem:[#allocation59_spill]]  ;;  %4768 = vmatprep.subr.bf16.mxu0 %v6333_v15  ;;  %4780 = vmatprep.subr.bf16.mxu1 %v6333_v15  ;;  %s7804_s9 = sld [smem:[#allocation61_spill]]  ;;  %v4538_v27 = vld [vmem:[#allocation7] ss:$0 sm:$0xff] }
 0x2d0   : > { %s7032_s17 = scalar_select %p1605_p5, %s6586_s26, 1  ;;  %4776 = vmatprep.mubr.msk.bf16.mxu0 %vm6334_vm1, %v6333_v15  ;;  %4796 = vmatprep.mubr.msk.bf16.mxu1 %vm6334_vm1, %v6333_v15  ;;  %v4539_v31 = vld [vmem:[#allocation8] ss:$0 sm:$0xff]  ;;  %v4540_v44 = vld [vmem:[#allocation10] ss:$0 sm:$0xff]  ;;  %vm2468_vm15 = vcmask 261248  }
 0x2d1   : > { %v4548_v62 = vld [vmem:[#allocation11] ss:$0 sm:$0xff]  ;;  %s7805_s20 = sld [smem:[#allocation64_spill]]  ;;  %s7806_s11 = sld [smem:[#allocation68_spill]] }
 0x2d2   : > { %s7696_s14 = sshll.u32 %s7032_s17, 4  ;;  %s7807_s3 = sld [smem:[#allocation66_spill]] }
 0x2d3   : > { %s7808_s1 = sld [smem:[#allocation70_spill]]  ;;  %p7822_p10 = scmp.ne.s32.totalorder %s7775_s7, 0 }
 0x2d4   : > { %s1609_s19 = scalar_lea.vmem %s7802_s13, %s7696_s14  ;;  %s4533_s13 = sshll.u32 %s6976_s4, 6 }
 0x2d5   : > { %v7038_v0 = vld [vmem:[%s1609_s19] sm:$0xff]  ;;  %v7040_v1 = vld [vmem:[%s1609_s19 + $0x8] sm:$0xff]  ;;  %v5334_v17 = vld [vmem:[%s7803_s28 + $0x10] sm:$0xff]   ;;  %s7152_s19 = scalar_lea.vmem [#allocation39], %s4533_s13  ;;  %s7701_s13 = smov 96  }
 0x2d6   : > { %v1647_v2 = vsel %vm1646_vm0, %v7038_v0, 0.0  ;;  %v1650_v3 = vsel %vm1646_vm0, %v7040_v1, 0.0  ;;  %v5332_v14 = vld [vmem:[%s7803_s28] sm:$0xff]   ;;  %v5333_v16 = vld [vmem:[%s7803_s28 + $0x8] sm:$0xff]   ;;  %v5335_v18 = vld [vmem:[%s7803_s28 + $0x18] sm:$0xff]   ;;  %s7809_s14 = sld [smem:[#allocation73_spill]] }
 0x2d7   : > { %1648 = vadd.xlane.f32.xlu0 %v1647_v2  ;;  %4769 = vmatpush3.bf16.msra.mxu0 %v5332_v14  ;;  %v5336_v36 = vld [vmem:[%s7804_s9] sm:$0xff]   ;;  %v5337_v37 = vld [vmem:[%s7804_s9 + $0x8] sm:$0xff]   ;;  %v5338_v38 = vld [vmem:[%s7804_s9 + $0x10] sm:$0xff]   ;;  %s6341_s12 = smov [#allocation39]  }
 0x2d8   : > { %4770 = vmatprep.subr.bf16.mxu0 %v6333_v15  ;;  %4781 = vmatpush3.bf16.msra.mxu1 %v5336_v36  ;;  %v5339_v39 = vld [vmem:[%s7804_s9 + $0x18] sm:$0xff]   ;;  %v5340_v40 = vld [vmem:[%s7804_s9 + $0x20] sm:$0xff]   ;;  %v5341_v41 = vld [vmem:[%s7804_s9 + $0x28] sm:$0xff]  }
 0x2d9   : > { %4782 = vmatprep.subr.bf16.mxu1 %v6333_v15  ;;  %v5342_v42 = vld [vmem:[%s7804_s9 + $0x30] sm:$0xff]   ;;  %v5343_v43 = vld [vmem:[%s7804_s9 + $0x38] sm:$0xff]   ;;  %s6340_s9 = smov 16  }
 0x2db   : > { %1651 = vadd.xlane.f32.xlu0 %v1650_v3  ;;  %4771 = vmatpush3.bf16.msra.mxu0 %v5333_v16 }
 0x2dc   : > { %4772 = vmatprep.subr.bf16.mxu0 %v6333_v15  ;;  %4783 = vmatpush3.bf16.msra.mxu1 %v5337_v37  ;;  %v4557_v37 = vld [vmem:[#allocation13] ss:$0 sm:$0xff] }
 0x2dd   : > { %4784 = vmatprep.subr.bf16.mxu1 %v6333_v15 }
 0x2df   : > { %4773 = vmatpush3.bf16.msra.mxu0 %v5334_v17 }
 0x2e0   : > { %4774 = vmatprep.subr.bf16.mxu0 %v6333_v15  ;;  %4785 = vmatpush3.bf16.msra.mxu1 %v5338_v38 }
 0x2e1   : > { %4786 = vmatprep.subr.bf16.mxu1 %v6333_v15 }
 0x2e3   : > { %4775 = vmatpush3.bf16.msra.mxu0 %v5335_v18 }
 0x2e4   : > { %4800 = vmatprep.subr.bf16.mxu0 %v6333_v15  ;;  %4787 = vmatpush3.bf16.msra.mxu1 %v5339_v39 }
 0x2e5   : > { %4788 = vmatprep.subr.bf16.mxu1 %v6333_v15 }
 0x2e8   : > { %4789 = vmatpush3.bf16.msra.mxu1 %v5340_v40 }
 0x2e9   : > { %4790 = vmatprep.subr.bf16.mxu1 %v6333_v15 }
 0x2ec   : > { %4791 = vmatpush3.bf16.msra.mxu1 %v5341_v41 }
 0x2ed   : > { %4792 = vmatprep.subr.bf16.mxu1 %v6333_v15 }
 0x2f0   : > { %4793 = vmatpush3.bf16.msra.mxu1 %v5342_v42  ;;  %v4558_v42 = vld [vmem:[#allocation14] ss:$0 sm:$0xff] }
 0x2f1   : > { %4794 = vmatprep.subr.bf16.mxu1 %v6333_v15 }
 0x2f4   : > { %4795 = vmatpush3.bf16.msra.mxu1 %v5343_v43 }
 0x2f5   : > { %4824 = vmatprep.subr.bf16.mxu1 %v6333_v15 }
 0x364   : > { %v1649_v4 = vpop.xlane.xlu0 %1648 }
 0x365   : > { %v1654_v5 = vmul.f32 0.015625, %v1649_v4 }
 0x367   : > { %v1656_v6 = vsub.f32 %v7038_v0, %v1654_v5 }
 0x368   : > { %v1652_v7 = vpop.xlane.xlu0 %1651 }
 0x369   : > { %v1655_v8 = vmul.f32 0.015625, %v1652_v7  ;;  %v1658_v9 = vmul.f32 %v1656_v6, %v1656_v6 }
 0x36b   : > { %v1657_v10 = vsub.f32 %v7040_v1, %v1655_v8  ;;  %v1660_v11 = vsel %vm1646_vm0, %v1658_v9, 0.0 }
 0x36c   : > { %1661 = vadd.xlane.f32.xlu1 %v1660_v11 }
 0x36d   : > { %v1659_v12 = vmul.f32 %v1657_v10, %v1657_v10 }
 0x36f   : > { %v1663_v13 = vsel %vm1646_vm0, %v1659_v12, 0.0 }
 0x370   : > { %1664 = vadd.xlane.f32.xlu1 %v1663_v13 }
 0x3f9   : > { %v1662_v19 = vpop.xlane.xlu1 %1661 }
 0x3fa   : > { %v1666_v20 = vmul.f32 0.015625, %v1662_v19 }
 0x3fc   : > { %v1668_v21 = vadd.f32 1e-05, %v1666_v20 }
 0x3fd   : > { %v1665_v22 = vpop.xlane.xlu1 %1664 }
 0x3fe   : > { %5384 = vrsqrt.f32 %v1668_v21  ;;  %v1667_v23 = vmul.f32 0.015625, %v1665_v22  ;;  %v5344_v22 = vld [vmem:[%s7805_s20] sm:$0xff]  }
 0x400   : > { %v1669_v24 = vadd.f32 1e-05, %v1667_v23  ;;  %v5345_v23 = vld [vmem:[%s7806_s11] sm:$0xff]  }
 0x402   : > { %5386 = vrsqrt.f32 %v1669_v24  ;;  %v5346_v24 = vld [vmem:[%s7805_s20 + $0x8] sm:$0xff]  }
 0x408   : > { %v5385_v25 = vpop.eup %5384 }
 0x409   : > { %v1672_v26 = vmul.f32 %v5385_v25, %v1656_v6  ;;  %v5347_v25 = vld [vmem:[%s7806_s11 + $0x8] sm:$0xff]  }
 0x40b   : > { %v1680_v30 = vmul.f32 %v4538_v27, %v1672_v26  ;;  %v5348_v26 = vld [vmem:[%s7805_s20 + $0x10] sm:$0xff]  }
 0x40c   : > { %v5387_v28 = vpop.eup %5386 }
 0x40d   : > { %v1673_v29 = vmul.f32 %v5387_v28, %v1657_v10  ;;  %v1688_v33 = vadd.f32 %v4539_v31, %v1680_v30  ;;  %v5350_v28 = vld [vmem:[%s7805_s20 + $0x18] sm:$0xff]  }
 0x40f   : > { %v1681_v32 = vmul.f32 %v4538_v27, %v1673_v29  ;;  %v5349_v27 = vld [vmem:[%s7806_s11 + $0x10] sm:$0xff]   ;;  %v5351_v29 = vld [vmem:[%s7806_s11 + $0x18] sm:$0xff]  }
 0x411   : > { %v1689_v34 = vadd.f32 %v4539_v31, %v1681_v32 }
 0x413   : > { %v1690_v35 = vpack.c.bf16 %v1689_v34, %v1688_v33 }
 0x415   : > { %4777 = vmatmul.mubr.msk.bf16.vlgmr.msra.gmra.mrb[0].mxu0 %vm1646_vm0, %v1690_v35 }
 0x416   : > { %4808 = vmatprep.mubr.msk.bf16.mxu0 %vm6334_vm1, %v6333_v15  ;;  %4801 = vmatpush3.bf16.msra.mxu0 %v5344_v22 }
 0x417   : > { %4802 = vmatprep.subr.bf16.mxu0 %v6333_v15 }
 0x41a   : > { %4803 = vmatpush3.bf16.msra.mxu0 %v5346_v24 }
 0x41b   : > { %4804 = vmatprep.subr.bf16.mxu0 %v6333_v15 }
 0x41e   : > { %4805 = vmatpush3.bf16.msra.mxu0 %v5348_v26 }
 0x41f   : > { %4806 = vmatprep.subr.bf16.mxu0 %v6333_v15 }
 0x422   : > { %4807 = vmatpush3.bf16.msra.mxu0 %v5350_v28 }
 0x423   : > { %4812 = vmatprep.subr.bf16.mxu0 %v6333_v15 }
 0x4e8   : > { %v1758_v45 = vpop.f32.mrb[0].mxu0 }
 0x4e9   : > { %v1759_v46 = vadd.f32 %v4540_v44, %v1758_v45  ;;  %v4778_v47 = vpop.f32.mrb[1].mxu0 }
 0x4ea   : > { %v1761_v48 = vpop.f32.mrb[2].mxu0 }
 0x4eb   : > { %v4546_v49 = vmul.f32 -1.442695, %v1759_v46  ;;  %v1762_v50 = vadd.f32 %v4540_v44, %v1761_v48  ;;  %v4779_v51 = vpop.f32.mrb[3].mxu0  ;;  %v5353_v48 = vld [vmem:[%s7807_s3 + $0x8] sm:$0xff]  }
 0x4ec   : > { %v5356_v51 = vld [vmem:[%s7808_s1] sm:$0xff]  }
 0x4ed   : > { %5388 = vpow2.f32 %v4546_v49  ;;  %v4547_v52 = vmul.f32 -1.442695, %v1762_v50  ;;  %v5354_v49 = vld [vmem:[%s7807_s3 + $0x10] sm:$0xff]  }
 0x4ef   : > { %5390 = vpow2.f32 %v4547_v52  ;;  %v5357_v52 = vld [vmem:[%s7808_s1 + $0x8] sm:$0xff]  }
 0x4f7   : > { %v5389_v53 = vpop.eup %5388 }
 0x4f8   : > { %v1771_v54 = vadd.f32 1.0, %v5389_v53  ;;  %v5358_v53 = vld [vmem:[%s7808_s1 + $0x10] sm:$0xff]  }
 0x4f9   : > { %v5391_v55 = vpop.eup %5390 }
 0x4fa   : > { %5392 = vrcp.f32 %v1771_v54  ;;  %v1772_v56 = vadd.f32 1.0, %v5391_v55  ;;  %v5359_v54 = vld [vmem:[%s7808_s1 + $0x18] sm:$0xff]   ;;  %v2167_v55 = vld [vmem:[#allocation5] sm:$0xff] }
 0x4fc   : > { %5394 = vrcp.f32 %v1772_v56  ;;  %v2168_v56 = vld [vmem:[#allocation5 + $0x8] sm:$0xff] }
 0x504   : > { %v5393_v57 = vpop.eup %5392 }
 0x505   : > { %v1777_v59 = vmul.f32 %v5393_v57, %v1759_v46  ;;  %v5352_v46 = vld [vmem:[%s7807_s3] sm:$0xff]   ;;  %v2169_v57 = vpack.c.bf16 %v2168_v56, %v2167_v55 }
 0x506   : > { %v5395_v58 = vpop.eup %5394 }
 0x507   : > { %v1778_v60 = vmul.f32 %v5395_v58, %v1762_v50  ;;  %v5355_v50 = vld [vmem:[%s7807_s3 + $0x18] sm:$0xff]   ;;  %v4559_v58 = vld [vmem:[#allocation16] ss:$0 sm:$0xff]  ;;  %s7812_s3 = sld [smem:[#allocation76_spill]] }
 0x509   : > { %v1779_v61 = vpack.c.bf16 %v1778_v60, %v1777_v59  ;;  %v4584_v60 = vld [vmem:[#allocation20] ss:$0 sm:$0xff] }
 0x50b   : > { %4797 = vmatmul.mubr.bf16.vlgmr.msra.gmra.mrb[0].mxu1 %v1779_v61  ;;  %v4585_v61 = vld [vmem:[#allocation22] ss:$0 sm:$0xff] }
 0x50c   : > { %4832 = vmatprep.mubr.msk.bf16.mxu1 %vm6334_vm1, %v6333_v15  ;;  %4825 = vmatpush3.bf16.msra.mxu1 %v5345_v23 }
 0x50d   : > { %4826 = vmatprep.subr.bf16.mxu1 %v6333_v15 }
 0x510   : > { %4827 = vmatpush3.bf16.msra.mxu1 %v5347_v25 }
 0x511   : > { %4828 = vmatprep.subr.bf16.mxu1 %v6333_v15 }
 0x514   : > { %4829 = vmatpush3.bf16.msra.mxu1 %v5349_v27 }
 0x515   : > { %4830 = vmatprep.subr.bf16.mxu1 %v6333_v15 }
 0x518   : > { %4831 = vmatpush3.bf16.msra.mxu1 %v5351_v29 }
 0x519   : > { %4854 = vmatprep.subr.bf16.mxu1 %v6333_v15 }
 0x5de   : > { %v1868_v63 = vpop.f32.mrb[0].mxu1 }
 0x5df   : > { %v1869_v2 = vadd.f32 %v4548_v62, %v1868_v63  ;;  %v4798_v3 = vpop.f32.mrb[1].mxu1 }
 0x5e0   : > { %v1871_v4 = vpop.f32.mrb[2].mxu1 }
 0x5e1   : > { %v1875_v5 = vmul.f32 0.5, %v1869_v2  ;;  %v1872_v6 = vadd.f32 %v4548_v62, %v1871_v4  ;;  %v4799_v7 = vpop.f32.mrb[3].mxu1 }
 0x5e3   : > { %v7086_v8 = vadd.f32 %v1875_v5, %v7038_v0  ;;  %v1876_v9 = vmul.f32 0.5, %v1872_v6 }
 0x5e5   : > { %v7089_v10 = vadd.f32 %v1876_v9, %v7040_v1  ;;  %v1881_v11 = vsel %vm1646_vm0, %v7086_v8, 0.0 }
 0x5e6   : > { %1882 = vadd.xlane.f32.xlu0 %v1881_v11 }
 0x5e7   : > { %v1884_v12 = vsel %vm1646_vm0, %v7089_v10, 0.0 }
 0x5e8   : > { %1885 = vadd.xlane.f32.xlu1 %v1884_v12 }
 0x673   : > { %v1883_v13 = vpop.xlane.xlu0 %1882 }
 0x674   : > { %v1887_v14 = vmul.f32 0.015625, %v1883_v13 }
 0x675   : > { %v1886_v16 = vpop.xlane.xlu1 %1885 }
 0x676   : > { %v1889_v0 = vsub.f32 %v7086_v8, %v1887_v14  ;;  %v1888_v17 = vmul.f32 0.015625, %v1886_v16 }
 0x678   : > { %v1890_v1 = vsub.f32 %v7089_v10, %v1888_v17  ;;  %v1891_v18 = vmul.f32 %v1889_v0, %v1889_v0 }
 0x67a   : > { %v1893_v19 = vsel %vm1646_vm0, %v1891_v18, 0.0  ;;  %v1892_v20 = vmul.f32 %v1890_v1, %v1890_v1 }
 0x67b   : > { %1894 = vadd.xlane.f32.xlu0 %v1893_v19 }
 0x67c   : > { %v1896_v21 = vsel %vm1646_vm0, %v1892_v20, 0.0  ;;  %v4565_v20 = vld [vmem:[#allocation17] ss:$0 sm:$0xff] }
 0x67d   : > { %1897 = vadd.xlane.f32.xlu1 %v1896_v21 }
 0x708   : > { %v1895_v30 = vpop.xlane.xlu0 %1894 }
 0x709   : > { %v1899_v31 = vmul.f32 0.015625, %v1895_v30 }
 0x70a   : > { %v1898_v32 = vpop.xlane.xlu1 %1897 }
 0x70b   : > { %v1901_v33 = vadd.f32 1e-05, %v1899_v31  ;;  %v1900_v34 = vmul.f32 0.015625, %v1898_v32 }
 0x70d   : > { %5396 = vrsqrt.f32 %v1901_v33  ;;  %v1902_v35 = vadd.f32 1e-05, %v1900_v34 }
 0x70f   : > { %5398 = vrsqrt.f32 %v1902_v35  ;;  %v4571_v35 = vld [vmem:[#allocation19] ss:$0 sm:$0xff] }
 0x717   : > { %v5397_v36 = vpop.eup %5396 }
 0x718   : > { %v1905_v38 = vmul.f32 %v5397_v36, %v1889_v0 }
 0x719   : > { %v5399_v39 = vpop.eup %5398 }
 0x71a   : > { %v1913_v40 = vmul.f32 %v4557_v37, %v1905_v38  ;;  %v1906_v41 = vmul.f32 %v5399_v39, %v1890_v1  ;;  %v4675_v39 = vld [vmem:[%s6980_s6] sm:$0xf]   ;;  %s7697_s6 = smov 112  }
 0x71c   : > { %v1914_v43 = vmul.f32 %v4557_v37, %v1906_v41  ;;  %v1921_v44 = vadd.f32 %v4558_v42, %v1913_v40 }
 0x71e   : > { %v1922_v45 = vadd.f32 %v4558_v42, %v1914_v43  ;;  %v4676_v42 = vunpack.c.0.s8 %v4675_v39 }
 0x720   : > { %v1923_v47 = vpack.c.bf16 %v1922_v45, %v1921_v44  ;;  %v4677_v45 = vunpack.c.1.s8 %v4675_v39 }
 0x722   : > { %4809 = vmatmul.mubr.msk.bf16.vlgmr.msra.gmra.mrb[4].mxu0 %vm1646_vm0, %v1923_v47  ;;  %4833 = vmatmul.mubr.msk.bf16.vlgmr.msra.gmra.mrb[4].mxu1 %vm1646_vm0, %v1923_v47 }
 0x723   : > { %4813 = vmatpush3.bf16.msra.mxu0 %v5352_v46  ;;  %4820 = vmatprep.mubr.msk.bf16.mxu0 %vm6334_vm1, %v6333_v15  ;;  %v7191_v46 = vcvt.s32.f32 %v4676_v42 }
 0x724   : > { %4814 = vmatprep.subr.bf16.mxu0 %v6333_v15  ;;  %4856 = vmatprep.mubr.msk.bf16.mxu1 %vm6334_vm1, %v6333_v15 }
 0x727   : > { %4815 = vmatpush3.bf16.msra.mxu0 %v5353_v48  ;;  %v4582_v48 = vadd.f32 -1.0, %v7191_v46 }
 0x728   : > { %4816 = vmatprep.subr.bf16.mxu0 %v6333_v15 }
 0x72b   : > { %4817 = vmatpush3.bf16.msra.mxu0 %v5354_v49 }
 0x72c   : > { %4818 = vmatprep.subr.bf16.mxu0 %v6333_v15 }
 0x72f   : > { %4819 = vmatpush3.bf16.msra.mxu0 %v5355_v50  ;;  %v7197_v50 = vmul.f32 1e+09, %v4582_v48 }
 0x730   : > { %4836 = vmatprep.subr.bf16.mxu0 %v6333_v15 }
 0x732   : > { %4821 = vmatmul.mubr.msk.bf16.vlgmr.msra.gmra.mrb[8].mxu0 %vm1646_vm0, %v1923_v47  ;;  %v7193_v47 = vcvt.s32.f32 %v4677_v45 }
 0x733   : > { %4837 = vmatpush3.bf16.msra.mxu0 %v5356_v51  ;;  %4844 = vmatprep.mubr.msk.bf16.mxu0 %vm6334_vm1, %v6333_v15 }
 0x734   : > { %4838 = vmatprep.subr.bf16.mxu0 %v6333_v15  ;;  %v4583_v49 = vadd.f32 -1.0, %v7193_v47 }
 0x737   : > { %4839 = vmatpush3.bf16.msra.mxu0 %v5357_v52 }
 0x738   : > { %4840 = vmatprep.subr.bf16.mxu0 %v6333_v15 }
 0x73b   : > { %4841 = vmatpush3.bf16.msra.mxu0 %v5358_v53 }
 0x73c   : > { %4842 = vmatprep.subr.bf16.mxu0 %v6333_v15 }
 0x73f   : > { %4843 = vmatpush3.bf16.msra.mxu0 %v5359_v54  ;;  %v7199_v54 = vmul.f32 1e+09, %v4583_v49 }
 0x740   : > { %4848 = vmatprep.subr.bf16.mxu0 %v6333_v15 }
 0x742   : > { %4845 = vmatmul.mubr.msk.bf16.vlgmr.msra.gmra.mrb[12].mxu0 %vm1646_vm0, %v2169_v57 }
 0x743   : > { %4850 = vmatprep.mubr.msk.bf16.mxu0 %vm6334_vm1, %v6333_v15 }
 0x7f5   : > { %v2000_v59 = vpop.f32.mrb[4].mxu0  ;;  %v2160_v62 = vpop.f32.mrb[4].mxu1 }
 0x7f6   : > { %v2001_v63 = vadd.f32 %v4559_v58, %v2000_v59  ;;  %v4810_v2 = vpop.f32.mrb[5].mxu0  ;;  %v4834_v3 = vpop.f32.mrb[5].mxu1  ;;  %v7178_v37 = vadd.f32 %v4571_v35, %v2160_v62 }
 0x7f7   : > { %v2003_v4 = vpop.f32.mrb[6].mxu0  ;;  %v2163_v5 = vpop.f32.mrb[6].mxu1 }
 0x7f8   : > { %v2263_v6 = vadd.f32 %v4584_v60, %v2001_v63  ;;  %v2275_v7 = vadd.f32 %v4585_v61, %v2001_v63  ;;  %v2004_v9 = vadd.f32 %v4559_v58, %v2003_v4  ;;  %v4811_v11 = vpop.f32.mrb[7].mxu0  ;;  %v4835_v12 = vpop.f32.mrb[7].mxu1  ;;  %v7176_v36 = vadd.f32 %v4571_v35, %v2163_v5 }
 0x7fa   : > { %v2264_v13 = vadd.f32 %v4584_v60, %v2004_v9  ;;  %v2276_v14 = vadd.f32 %v4585_v61, %v2004_v9  ;;  %v2265_v16 = vmul.f32 0.25, %v2263_v6  ;;  %v2277_v0 = vmul.f32 0.25, %v2275_v7 }
 0x7fb   : > { %v7182_v38 = vpack.c.bf16 %v7176_v36, %v7178_v37 }
 0x7fc   : > { %v2266_v17 = vmul.f32 0.25, %v2264_v13  ;;  %v2278_v1 = vmul.f32 0.25, %v2276_v14 }
 0x7fe   : > { %v7143_v18 = vpack.c.bf16 %v2266_v17, %v2265_v16  ;;  %v7145_v19 = vpack.c.bf16 %v2278_v1, %v2277_v0 }
 0x805   : > { %v2080_v21 = vpop.f32.mrb[8].mxu0 }
 0x806   : > { %v7148_v22 = vadd.f32 %v4565_v20, %v2080_v21  ;;  %v4822_v23 = vpop.f32.mrb[9].mxu0 }
 0x807   : > { %v2083_v24 = vpop.f32.mrb[10].mxu0 }
 0x808   : > { %v7150_v25 = vadd.f32 %v4565_v20, %v2083_v24  ;;  %v4823_v26 = vpop.f32.mrb[11].mxu0  ;;  %2458 = vst.msk [vmem:[%s7152_s19] sm:$0xff] %vm2291_vm2, %v7148_v22 }
 0x80a   : > { %v7159_v27 = vpack.c.bf16 %v7150_v25, %v7148_v22  ;;  %2459 = vst.msk [vmem:[%s7152_s19 + $0x8] sm:$0xff] %vm2291_vm2, %v7150_v25 }
 0x80c   : > { %v2343_v28 = vsel %vm2291_vm2, %v7159_v27, 0 }
 0x80d   : > { %4855 = vmatpush3.bf16.xpose.msra.mxu1 %v2343_v28 }
 0x80e   : > { %4866 = vmatprep.subr.bf16.mxu1 %v6333_v15 }
 0x814   : > { %4857 = vmatmul.mubr.msk.bf16.vlgmr.msra.gmra.mrb[8].mxu1 %vm2291_vm2, %v7143_v18 }
 0x815   : > { %v2239_v29 = vpop.f32.mrb[12].mxu0  ;;  %4868 = vmatprep.mubr.msk.bf16.mxu1 %vm6334_vm1, %v6333_v15 }
 0x816   : > { %v4846_v30 = vpop.f32.mrb[13].mxu0 }
 0x817   : > { %v2242_v31 = vpop.f32.mrb[14].mxu0 }
 0x818   : > { %v7171_v32 = vpack.c.bf16 %v2242_v31, %v2239_v29  ;;  %v4847_v33 = vpop.f32.mrb[15].mxu0 }
 0x81a   : > { %v2296_v34 = vsel %vm2291_vm2, %v7171_v32, 0 }
 0x81b   : > { %4849 = vmatpush3.bf16.xpose.msra.mxu0 %v2296_v34 }
 0x81c   : > { %4860 = vmatprep.subr.bf16.mxu0 %v6333_v15 }
 0x822   : > { %4851 = vmatmul.mubr.msk.bf16.vlgmr.msra.gmra.mrb[16].mxu0 %vm2291_vm2, %v7145_v19 }
 0x823   : > { %4861 = vmatpush3.bf16.msra.mxu0 %v7182_v38  ;;  %4862 = vmatprep.mubr.msk.bf16.mxu0 %vm6334_vm1, %v6333_v15 }
 0x824   : > { %4872 = vmatprep.subr.bf16.mxu0 %v6333_v15 }
 0x8e7   : > { %v2379_v40 = vpop.f32.mrb[8].mxu1 }
 0x8e8   : > { %v4858_v41 = vpop.f32.mrb[9].mxu1 }
 0x8e9   : > { %v2382_v43 = vpop.f32.mrb[10].mxu1 }
 0x8ea   : > { %v4859_v44 = vpop.f32.mrb[11].mxu1 }
 0x8f5   : > { %v2332_v51 = vpop.f32.mrb[16].mxu0 }
 0x8f6   : > { %v2380_v52 = vadd.f32 %v2379_v40, %v2332_v51  ;;  %v4852_v53 = vpop.f32.mrb[17].mxu0 }
 0x8f7   : > { %v2335_v55 = vpop.f32.mrb[18].mxu0 }
 0x8f8   : > { %v2383_v56 = vadd.f32 %v2382_v43, %v2335_v55  ;;  %v4853_v57 = vpop.f32.mrb[19].mxu0  ;;  %v2386_v58 = vadd.f32 %v2380_v52, %v7197_v50 }
 0x8fa   : > { %v2388_v59 = vsel %vm2291_vm2, %v2386_v58, -inf  ;;  %v2387_v60 = vadd.f32 %v2383_v56, %v7199_v54 }
 0x8fb   : > { %2389 = vmax.xlane.f32.xlu0 %v2388_v59 }
 0x8fc   : > { %v2391_v61 = vsel %vm2291_vm2, %v2387_v60, -inf }
 0x8fd   : > { %2392 = vmax.xlane.f32.xlu1 %v2391_v61 }
 0x90e   : > { %2528 = vrot.lane.b32.xlu1 %v7159_v27, %s7697_s6 }
 0x988   : > { %v2390_v62 = vpop.xlane.xlu0 %2389 }
 0x989   : > { %v2394_v63 = vsub.f32 %v2386_v58, %v2390_v62 }
 0x98a   : > { %v2393_v2 = vpop.xlane.xlu1 %2392 }
 0x98b   : > { %v2396_v3 = vmul.f32 1.442695, %v2394_v63  ;;  %v2395_v4 = vsub.f32 %v2387_v60, %v2393_v2 }
 0x98d   : > { %5400 = vpow2.f32 %v2396_v3  ;;  %v2398_v5 = vmul.f32 1.442695, %v2395_v4 }
 0x98e   : > { %v2529_v12 = vpop.permute.xlu1 %2528 }
 0x98f   : > { %5402 = vpow2.f32 %v2398_v5  ;;  %v2534_v29 = vsel %vm2291_vm2, %v2529_v12, 0 }
 0x997   : > { %v5401_v6 = vpop.eup %5400 }
 0x998   : > { %v2400_v7 = vsel %vm2291_vm2, %v5401_v6, 0.0 }
 0x999   : > { %v5403_v9 = vpop.eup %5402  ;;  %2401 = vadd.xlane.f32.xlu0 %v2400_v7 }
 0x99a   : > { %v2403_v11 = vsel %vm2291_vm2, %v5403_v9, 0.0 }
 0x99b   : > { %2404 = vadd.xlane.f32.xlu1 %v2403_v11 }
 0x9ac   : > { %2472 = vrot.lane.b32.xlu1 %v7145_v19, %s7697_s6 }
 0x9af   : > { %2475 = vrot.lane.b32.xlu0 %v7171_v32, %s7697_s6 }
 0x9b0   : > { %2525 = vrot.lane.b32.xlu1 %v7143_v18, %s7697_s6 }
 0xa26   : > { %v2402_v13 = vpop.xlane.xlu0 %2401 }
 0xa27   : > { %5404 = vrcp.f32 %v2402_v13 }
 0xa28   : > { %v2405_v14 = vpop.xlane.xlu1 %2404 }
 0xa29   : > { %5406 = vrcp.f32 %v2405_v14 }
 0xa2a   : > { %v2476_v16 = vpop.permute.xlu0 %2475 }
 0xa2b   : > { %v2481_v0 = vsel %vm2291_vm2, %v2476_v16, 0 }
 0xa2c   : > { %4867 = vmatpush3.bf16.xpose.msra.mxu1 %v2481_v0  ;;  %v2473_v20 = vpop.permute.xlu1 %2472 }
 0xa2d   : > { %4878 = vmatprep.subr.bf16.mxu1 %v6333_v15 }
 0xa30   : > { %v2526_v30 = vpop.permute.xlu1 %2525 }
 0xa31   : > { %v5405_v17 = vpop.eup %5404 }
 0xa32   : > { %v2408_v1 = vmul.f32 %v5405_v17, %v5401_v6  ;;  %v5361_v6 = vld [vmem:[%s7809_s14 + $0x8] sm:$0xff]  }
 0xa33   : > { %v5407_v21 = vpop.eup %5406  ;;  %4869 = vmatmul.mubr.msk.bf16.vlgmr.msra.gmra.mrb[12].mxu1 %vm2291_vm2, %v2473_v20 }
 0xa34   : > { %v2409_v23 = vmul.f32 %v5407_v21, %v5403_v9  ;;  %4880 = vmatprep.mubr.msk.bf16.mxu1 %vm6334_vm1, %v6333_v15  ;;  %v2410_v24 = vmul.f32 %v2408_v1, %v7191_v46  ;;  %v5360_v1 = vld [vmem:[%s7809_s14] sm:$0xff]  }
 0xa36   : > { %v2411_v26 = vmul.f32 %v2409_v23, %v7193_v47 }
 0xa38   : > { %v2412_v28 = vpack.c.bf16 %v2411_v26, %v2410_v24 }
 0xa3a   : > { %4863 = vmatmul.mubr.msk.bf16.vlgmr.msra.gmra.mrb[20].mxu0 %vm2291_vm2, %v2412_v28 }
 0xa3b   : > { %4873 = vmatpush3.bf16.xpose.msra.mxu0 %v2534_v29  ;;  %4874 = vmatprep.mubr.msk.bf16.mxu0 %vm6334_vm1, %v6333_v15 }
 0xa3c   : > { %4884 = vmatprep.subr.bf16.mxu0 %v6333_v15 }
 0xa42   : > { %4875 = vmatmul.mubr.msk.bf16.vlgmr.msra.gmra.mrb[24].mxu0 %vm2291_vm2, %v2526_v30 }
 0xa43   : > { %4886 = vmatprep.mubr.msk.bf16.mxu0 %vm6334_vm1, %v6333_v15  ;;  %4885 = vmatpush3.bf16.msra.mxu0 %v5361_v6 }
 0xa44   : > { %4896 = vmatprep.subr.bf16.mxu0 %v6333_v15 }
 0xb06   : > { %v2517_v31 = vpop.f32.mrb[12].mxu1 }
 0xb07   : > { %v4870_v33 = vpop.f32.mrb[13].mxu1 }
 0xb08   : > { %v2520_v34 = vpop.f32.mrb[14].mxu1 }
 0xb09   : > { %v4871_v35 = vpop.f32.mrb[15].mxu1 }
 0xb0d   : > { %v2450_v39 = vpop.f32.mrb[20].mxu0 }
 0xb0e   : > { %v4864_v40 = vpop.f32.mrb[21].mxu0 }
 0xb0f   : > { %v2453_v41 = vpop.f32.mrb[22].mxu0 }
 0xb10   : > { %v2457_v42 = vpack.c.bf16 %v2453_v41, %v2450_v39  ;;  %v4865_v43 = vpop.f32.mrb[23].mxu0 }
 0xb15   : > { %v2570_v44 = vpop.f32.mrb[24].mxu0 }
 0xb16   : > { %v2571_v45 = vadd.f32 %v2570_v44, %v2517_v31  ;;  %v4876_v48 = vpop.f32.mrb[25].mxu0 }
 0xb17   : > { %v2573_v49 = vpop.f32.mrb[26].mxu0 }
 0xb18   : > { %v2574_v51 = vadd.f32 %v2573_v49, %v2520_v34  ;;  %v4877_v52 = vpop.f32.mrb[27].mxu0  ;;  %v2577_v53 = vadd.f32 %v2571_v45, %v7197_v50 }
 0xb1a   : > { %v2579_v55 = vsel %vm2291_vm2, %v2577_v53, -inf  ;;  %v2578_v56 = vadd.f32 %v2574_v51, %v7199_v54 }
 0xb1b   : > { %2580 = vmax.xlane.f32.xlu0 %v2579_v55 }
 0xb1c   : > { %v2582_v57 = vsel %vm2291_vm2, %v2578_v56, -inf }
 0xb1d   : > { %2583 = vmax.xlane.f32.xlu1 %v2582_v57 }
 0xb2e   : > { %2768 = vrot.lane.b32.xlu1 %v7171_v32, %s7701_s13 }
 0xb32   : > { %2819 = vrot.lane.b32.xlu1 %v7159_v27, %s7701_s13 }
 0xb36   : > { %2766 = vrot.lane.b32.xlu1 %v7145_v19, %s7701_s13 }
 0xba8   : > { %v2581_v58 = vpop.xlane.xlu0 %2580 }
 0xba9   : > { %v2585_v59 = vsub.f32 %v2577_v53, %v2581_v58 }
 0xbaa   : > { %v2584_v60 = vpop.xlane.xlu1 %2583 }
 0xbab   : > { %v2587_v61 = vmul.f32 1.442695, %v2585_v59  ;;  %v2586_v62 = vsub.f32 %v2578_v56, %v2584_v60 }
 0xbad   : > { %5408 = vpow2.f32 %v2587_v61  ;;  %v2589_v63 = vmul.f32 1.442695, %v2586_v62 }
 0xbae   : > { %v2769_v21 = vpop.permute.xlu1 %2768 }
 0xbaf   : > { %5410 = vpow2.f32 %v2589_v63  ;;  %v2774_v34 = vsel %vm2291_vm2, %v2769_v21, 0 }
 0xbb2   : > { %v2820_v23 = vpop.permute.xlu1 %2819 }
 0xbb3   : > { %v2825_v24 = vsel %vm2291_vm2, %v2820_v23, 0 }
 0xbb7   : > { %v5409_v2 = vpop.eup %5408 }
 0xbb8   : > { %v2591_v3 = vsel %vm2291_vm2, %v5409_v2, 0.0 }
 0xbb9   : > { %v5411_v4 = vpop.eup %5410  ;;  %2592 = vadd.xlane.f32.xlu0 %v2591_v3 }
 0xbba   : > { %v2594_v5 = vsel %vm2291_vm2, %v5411_v4, 0.0 }
 0xbbd   : > { %2595 = vadd.xlane.f32.xlu0 %v2594_v5 }
 0xbd3   : > { %2605 = vrot.lane.b32.xlu0 %v7182_v38, %s7697_s6  ;;  %s7699_s6 = smov 80  }
 0xbd7   : > { %2817 = vrot.lane.b32.xlu0 %v7143_v18, %s7701_s13 }
 0xc46   : > { %v2593_v7 = vpop.xlane.xlu0 %2592 }
 0xc47   : > { %5412 = vrcp.f32 %v2593_v7 }
 0xc4a   : > { %v2596_v9 = vpop.xlane.xlu0 %2595 }
 0xc4b   : > { %5414 = vrcp.f32 %v2596_v9 }
 0xc4e   : > { %v2606_v11 = vpop.permute.xlu0 %2605 }
 0xc4f   : > { %4879 = vmatpush3.bf16.msra.mxu1 %v2606_v11 }
 0xc50   : > { %4890 = vmatprep.subr.bf16.mxu1 %v6333_v15 }
 0xc51   : > { %v5413_v12 = vpop.eup %5412 }
 0xc52   : > { %v2599_v13 = vmul.f32 %v5413_v12, %v5409_v2  ;;  %v2818_v26 = vpop.permute.xlu0 %2817 }
 0xc54   : > { %v2601_v0 = vmul.f32 %v2599_v13, %v7191_v46 }
 0xc55   : > { %v5415_v14 = vpop.eup %5414 }
 0xc56   : > { %v2600_v16 = vmul.f32 %v5415_v14, %v5411_v4 }
 0xc58   : > { %v2602_v17 = vmul.f32 %v2600_v16, %v7193_v47  ;;  %v5362_v16 = vld [vmem:[%s7809_s14 + $0x10] sm:$0xff]  }
 0xc5a   : > { %v2603_v20 = vpack.c.bf16 %v2602_v17, %v2601_v0 }
 0xc5c   : > { %4881 = vmatmul.mubr.msk.bf16.vlgmr.msra.gmra.mrb[16].mxu1 %vm2291_vm2, %v2603_v20 }
 0xc5d   : > { %4891 = vmatpush3.bf16.msra.mxu1 %v5360_v1  ;;  %4892 = vmatprep.mubr.msk.bf16.mxu1 %vm6334_vm1, %v6333_v15 }
 0xc5e   : > { %4902 = vmatprep.subr.bf16.mxu1 %v6333_v15 }
 0xc64   : > { %4893 = vmatmul.mubr.msk.bf16.vlgmr.msra.gmra.mrb[20].mxu1 %vm2291_vm2, %v2457_v42  ;;  %v2767_v42 = vpop.permute.xlu1 %2766 }
 0xc65   : > { %4904 = vmatprep.mubr.msk.bf16.mxu1 %vm6334_vm1, %v6333_v15 }
 0xc66   : > { %4903 = vmatpush3.bf16.xpose.msra.mxu1 %v2825_v24 }
 0xc67   : > { %4914 = vmatprep.subr.bf16.mxu1 %v6333_v15 }
 0xc6d   : > { %4905 = vmatmul.mubr.msk.bf16.vlgmr.msra.gmra.mrb[24].mxu1 %vm2291_vm2, %v2818_v26 }
 0xc6e   : > { %4916 = vmatprep.mubr.msk.bf16.mxu1 %vm6334_vm1, %v6333_v15  ;;  %4915 = vmatpush3.bf16.msra.mxu1 %v5362_v16 }
 0xc6f   : > { %4926 = vmatprep.subr.bf16.mxu1 %v6333_v15 }
 0xd2f   : > { %v2645_v28 = vpop.f32.mrb[16].mxu1 }
 0xd30   : > { %v4882_v29 = vpop.f32.mrb[17].mxu1 }
 0xd31   : > { %v2648_v30 = vpop.f32.mrb[18].mxu1 }
 0xd32   : > { %v2652_v31 = vpack.c.bf16 %v2648_v30, %v2645_v28  ;;  %v4883_v33 = vpop.f32.mrb[19].mxu1 }
 0xd34   : > { %4887 = vmatmul.mubr.msk.bf16.vlgmr.msra.gmra.mrb[28].mxu0 %vm2291_vm2, %v2652_v31 }
 0xd35   : > { %4897 = vmatpush3.bf16.xpose.msra.mxu0 %v2774_v34  ;;  %4898 = vmatprep.mubr.msk.bf16.mxu0 %vm6334_vm1, %v6333_v15 }
 0xd36   : > { %4908 = vmatprep.subr.bf16.mxu0 %v6333_v15 }
 0xd37   : > { %v2746_v35 = vpop.f32.mrb[20].mxu1 }
 0xd38   : > { %v4894_v39 = vpop.f32.mrb[21].mxu1 }
 0xd39   : > { %v2749_v40 = vpop.f32.mrb[22].mxu1 }
 0xd3a   : > { %v4895_v41 = vpop.f32.mrb[23].mxu1 }
 0xd3c   : > { %4899 = vmatmul.mubr.msk.bf16.vlgmr.msra.gmra.mrb[32].mxu0 %vm2291_vm2, %v2767_v42 }
 0xd3d   : > { %4910 = vmatprep.mubr.msk.bf16.mxu0 %vm6334_vm1, %v6333_v15 }
 0xd40   : > { %v2861_v43 = vpop.f32.mrb[24].mxu1 }
 0xd41   : > { %v4906_v44 = vpop.f32.mrb[25].mxu1 }
 0xd42   : > { %v2864_v45 = vpop.f32.mrb[26].mxu1 }
 0xd43   : > { %v4907_v48 = vpop.f32.mrb[27].mxu1 }
 0xe07   : > { %v2696_v49 = vpop.f32.mrb[28].mxu0 }
 0xe08   : > { %v7272_v51 = vadd.f32 %v2746_v35, %v2696_v49  ;;  %v4888_v52 = vpop.f32.mrb[29].mxu0 }
 0xe09   : > { %v2699_v53 = vpop.f32.mrb[30].mxu0 }
 0xe0a   : > { %v7274_v55 = vadd.f32 %v2749_v40, %v2699_v53  ;;  %v4889_v56 = vpop.f32.mrb[31].mxu0 }
 0xe0f   : > { %v2810_v57 = vpop.f32.mrb[32].mxu0 }
 0xe10   : > { %v2862_v58 = vadd.f32 %v2861_v43, %v2810_v57  ;;  %v4900_v59 = vpop.f32.mrb[33].mxu0 }
 0xe11   : > { %v2813_v60 = vpop.f32.mrb[34].mxu0 }
 0xe12   : > { %v2865_v61 = vadd.f32 %v2864_v45, %v2813_v60  ;;  %v4901_v62 = vpop.f32.mrb[35].mxu0  ;;  %v2868_v63 = vadd.f32 %v2862_v58, %v7197_v50 }
 0xe14   : > { %v2870_v2 = vsel %vm2291_vm2, %v2868_v63, -inf  ;;  %v2869_v3 = vadd.f32 %v2865_v61, %v7199_v54 }
 0xe15   : > { %2871 = vmax.xlane.f32.xlu1 %v2870_v2 }
 0xe16   : > { %v2873_v4 = vsel %vm2291_vm2, %v2869_v3, -inf }
 0xe17   : > { %2874 = vmax.xlane.f32.xlu0 %v2873_v4 }
 0xe26   : > { %2895 = vrot.lane.b32.xlu1 %v7182_v38, %s7701_s13  ;;  %s7811_s13 = sshll.u32 %s7032_s17, 4  ;;  %s7813_s17 = sld [smem:[#allocation77_spill]] }
 0xe2a   : > { %3065 = vrot.lane.b32.xlu1 %v7159_v27, %s7699_s6 }
 0xe2e   : > { %3012 = vrot.lane.b32.xlu1 %v7145_v19, %s7699_s6 }
 0xe32   : > { %3063 = vrot.lane.b32.xlu1 %v7143_v18, %s7699_s6 }
 0xea2   : > { %v2872_v5 = vpop.xlane.xlu1 %2871 }
 0xea3   : > { %v2876_v6 = vsub.f32 %v2868_v63, %v2872_v5 }
 0xea4   : > { %v2875_v7 = vpop.xlane.xlu0 %2874 }
 0xea5   : > { %v2878_v9 = vmul.f32 1.442695, %v2876_v6  ;;  %v2877_v11 = vsub.f32 %v2869_v3, %v2875_v7 }
 0xea6   : > { %v2896_v12 = vpop.permute.xlu1 %2895 }
 0xea7   : > { %5416 = vpow2.f32 %v2878_v9  ;;  %v2880_v13 = vmul.f32 1.442695, %v2877_v11  ;;  %4909 = vmatpush3.bf16.msra.mxu0 %v2896_v12 }
 0xea8   : > { %4920 = vmatprep.subr.bf16.mxu0 %v6333_v15 }
 0xea9   : > { %5418 = vpow2.f32 %v2880_v13 }
 0xeaa   : > { %v3066_v30 = vpop.permute.xlu1 %3065 }
 0xeab   : > { %v3071_v41 = vsel %vm2291_vm2, %v3066_v30, 0 }
 0xeae   : > { %v3013_v31 = vpop.permute.xlu1 %3012 }
 0xeb1   : > { %v5417_v27 = vpop.eup %5416 }
 0xeb2   : > { %v2882_v14 = vsel %vm2291_vm2, %v5417_v27, 0.0  ;;  %v3064_v48 = vpop.permute.xlu1 %3063 }
 0xeb3   : > { %v5419_v19 = vpop.eup %5418  ;;  %2883 = vadd.xlane.f32.xlu0 %v2882_v14  ;;  %v5363_v14 = vld [vmem:[%s7809_s14 + $0x18] sm:$0xff]  }
 0xeb4   : > { %v2885_v18 = vsel %vm2291_vm2, %v5419_v19, 0.0 }
 0xeb7   : > { %2886 = vadd.xlane.f32.xlu0 %v2885_v18 }
 0xecd   : > { %3014 = vrot.lane.b32.xlu0 %v7171_v32, %s7699_s6 }
 0xf40   : > { %v2884_v0 = vpop.xlane.xlu0 %2883 }
 0xf41   : > { %5420 = vrcp.f32 %v2884_v0 }
 0xf44   : > { %v2887_v17 = vpop.xlane.xlu0 %2886 }
 0xf45   : > { %5422 = vrcp.f32 %v2887_v17 }
 0xf48   : > { %v3015_v28 = vpop.permute.xlu0 %3014 }
 0xf49   : > { %v3020_v32 = vsel %vm2291_vm2, %v3015_v28, 0 }
 0xf4b   : > { %v5421_v1 = vpop.eup %5420 }
 0xf4c   : > { %v2890_v20 = vmul.f32 %v5421_v1, %v5417_v27 }
 0xf4e   : > { %v2892_v24 = vmul.f32 %v2890_v20, %v7191_v46 }
 0xf4f   : > { %v5423_v21 = vpop.eup %5422 }
 0xf50   : > { %v2891_v23 = vmul.f32 %v5423_v21, %v5419_v19 }
 0xf52   : > { %v2893_v26 = vmul.f32 %v2891_v23, %v7193_v47 }
 0xf54   : > { %v2894_v29 = vpack.c.bf16 %v2893_v26, %v2892_v24 }
 0xf56   : > { %4911 = vmatmul.mubr.msk.bf16.vlgmr.msra.gmra.mrb[36].mxu0 %vm2291_vm2, %v2894_v29 }
 0xf57   : > { %4921 = vmatpush3.bf16.xpose.msra.mxu0 %v3020_v32  ;;  %4922 = vmatprep.mubr.msk.bf16.mxu0 %vm6334_vm1, %v6333_v15 }
 0xf58   : > { %4932 = vmatprep.subr.bf16.mxu0 %v6333_v15 }
 0xf5e   : > { %4923 = vmatmul.mubr.msk.bf16.vlgmr.msra.gmra.mrb[40].mxu0 %vm2291_vm2, %v3013_v31 }
 0xf5f   : > { %4934 = vmatprep.mubr.msk.bf16.mxu0 %vm6334_vm1, %v6333_v15 }
0x1029   : > { %v2935_v33 = vpop.f32.mrb[36].mxu0 }
0x102a   : > { %v4912_v34 = vpop.f32.mrb[37].mxu0 }
0x102b   : > { %v2938_v35 = vpop.f32.mrb[38].mxu0 }
0x102c   : > { %v2942_v39 = vpack.c.bf16 %v2938_v35, %v2935_v33  ;;  %v4913_v40 = vpop.f32.mrb[39].mxu0 }
0x102e   : > { %4917 = vmatmul.mubr.msk.bf16.vlgmr.msra.gmra.mrb[28].mxu1 %vm2291_vm2, %v2942_v39 }
0x102f   : > { %4927 = vmatpush3.bf16.xpose.msra.mxu1 %v3071_v41  ;;  %4928 = vmatprep.mubr.msk.bf16.mxu1 %vm6334_vm1, %v6333_v15 }
0x1030   : > { %4938 = vmatprep.subr.bf16.mxu1 %v6333_v15 }
0x1031   : > { %v3056_v42 = vpop.f32.mrb[40].mxu0 }
0x1032   : > { %v4924_v43 = vpop.f32.mrb[41].mxu0 }
0x1033   : > { %v3059_v44 = vpop.f32.mrb[42].mxu0 }
0x1034   : > { %v4925_v45 = vpop.f32.mrb[43].mxu0 }
0x1035   : > { %v6338_v45 = vmov 0  }
0x1036   : > { %4929 = vmatmul.mubr.msk.bf16.vlgmr.msra.gmra.mrb[32].mxu1 %vm2291_vm2, %v3064_v48  ;;  %5330 = vset.pattern.permute.xlu1 %v6338_v45 }
0x1037   : > { %4940 = vmatprep.mubr.msk.bf16.mxu1 %vm6334_vm1, %v6333_v15  ;;  %4939 = vmatpush3.bf16.msra.mxu1 %v5363_v14 }
0x1038   : > { %4956 = vmatprep.subr.bf16.mxu1 %v6333_v15  ;;  %5331 = vset.pattern.permute.xlu0 %v6338_v45  ;;  %v7373_v45 = vld [vmem:[#allocation28] sm:$0x7f] }
0x1101   : > { %v2986_v49 = vpop.f32.mrb[28].mxu1 }
0x1102   : > { %v2993_v52 = vadd.f32 %v2986_v49, %v7272_v51  ;;  %v4918_v53 = vpop.f32.mrb[29].mxu1 }
0x1103   : > { %v2989_v56 = vpop.f32.mrb[30].mxu1 }
0x1104   : > { %v2994_v57 = vadd.f32 %v2989_v56, %v7274_v55  ;;  %v4919_v58 = vpop.f32.mrb[31].mxu1 }
0x1109   : > { %v3107_v59 = vpop.f32.mrb[32].mxu1 }
0x110a   : > { %v3108_v60 = vadd.f32 %v3107_v59, %v3056_v42  ;;  %v4930_v61 = vpop.f32.mrb[33].mxu1 }
0x110b   : > { %v3110_v62 = vpop.f32.mrb[34].mxu1 }
0x110c   : > { %v3111_v63 = vadd.f32 %v3110_v62, %v3059_v44  ;;  %v4931_v2 = vpop.f32.mrb[35].mxu1  ;;  %v3114_v3 = vadd.f32 %v3108_v60, %v7197_v50  ;;  %v5364_v62 = vld [vmem:[%s7812_s3] sm:$0xff]  }
0x110d   : > { %v5366_v2 = vld [vmem:[%s7812_s3 + $0x10] sm:$0xff]  }
0x110e   : > { %v3116_v4 = vsel %vm2291_vm2, %v3114_v3, -inf  ;;  %v3115_v5 = vadd.f32 %v3111_v63, %v7199_v54  ;;  %v5365_v63 = vld [vmem:[%s7812_s3 + $0x8] sm:$0xff]  }
0x110f   : > { %3117 = vmax.xlane.f32.xlu0 %v3116_v4 }
0x1110   : > { %v3119_v51 = vsel %vm2291_vm2, %v3115_v5, -inf }
0x1111   : > { %3120 = vmax.xlane.f32.xlu1 %v3119_v51 }
0x119c   : > { %v3118_v6 = vpop.xlane.xlu0 %3117 }
0x119d   : > { %v3122_v55 = vsub.f32 %v3114_v3, %v3118_v6  ;;  %v5367_v3 = vld [vmem:[%s7812_s3 + $0x18] sm:$0xff]   ;;  %s7821_s3 = smov 80  }
0x119e   : > { %v3121_v7 = vpop.xlane.xlu1 %3120 }
0x119f   : > { %v3124_v9 = vmul.f32 1.442695, %v3122_v55  ;;  %v3123_v11 = vsub.f32 %v3115_v5, %v3121_v7 }
0x11a1   : > { %5424 = vpow2.f32 %v3124_v9  ;;  %v3126_v12 = vmul.f32 1.442695, %v3123_v11  ;;  %v4619_v11 = vld [vmem:[#allocation25] ss:$0 sm:$0xff] }
0x11a3   : > { %5426 = vpow2.f32 %v3126_v12 }
0x11ab   : > { %v5425_v13 = vpop.eup %5424 }
0x11ac   : > { %v3128_v50 = vsel %vm2291_vm2, %v5425_v13, 0.0 }
0x11ad   : > { %v5427_v27 = vpop.eup %5426  ;;  %3129 = vadd.xlane.f32.xlu0 %v3128_v50 }
0x11ae   : > { %v3131_v54 = vsel %vm2291_vm2, %v5427_v27, 0.0 }
0x11b1   : > { %3132 = vadd.xlane.f32.xlu0 %v3131_v54 }
0x11c7   : > { %3141 = vrot.lane.b32.xlu0 %v7182_v38, %s7699_s6  ;;  %s7810_s6 = sld [smem:[#allocation57_spill]] }
0x11cd   : > { %s1614_s1 = scalar_lea.vmem %s7810_s6, %s7811_s13  ;;  %s7814_s6 = sld [smem:[#allocation79_spill]] }
0x11ce   : > { %v3269_v61 = vld [vmem:[%s1614_s1] sm:$0xff]  ;;  %s7815_s13 = sld [smem:[#allocation84_spill]] }
0x123a   : > { %v3130_v19 = vpop.xlane.xlu0 %3129 }
0x123b   : > { %5428 = vrcp.f32 %v3130_v19 }
0x123e   : > { %v3133_v18 = vpop.xlane.xlu0 %3132 }
0x123f   : > { %5430 = vrcp.f32 %v3133_v18 }
0x1242   : > { %v3142_v16 = vpop.permute.xlu0 %3141 }
0x1243   : > { %4933 = vmatpush3.bf16.msra.mxu0 %v3142_v16 }
0x1244   : > { %4944 = vmatprep.subr.bf16.mxu0 %v6333_v15 }
0x1245   : > { %v5429_v0 = vpop.eup %5428 }
0x1246   : > { %v3136_v17 = vmul.f32 %v5429_v0, %v5425_v13 }
0x1248   : > { %v3138_v21 = vmul.f32 %v3136_v17, %v7191_v46 }
0x1249   : > { %v5431_v1 = vpop.eup %5430 }
0x124a   : > { %v3137_v20 = vmul.f32 %v5431_v1, %v5427_v27  ;;  %v4620_v27 = vld [vmem:[#allocation26] ss:$0 sm:$0xff] }
0x124c   : > { %v3139_v38 = vmul.f32 %v3137_v20, %v7193_v47  ;;  %v4618_v47 = vld [vmem:[#allocation23] ss:$0 sm:$0xff] }
0x124e   : > { %v3140_v23 = vpack.c.bf16 %v3139_v38, %v3138_v21  ;;  %v4621_v21 = vld [vmem:[%s7813_s17] ss:$0 sm:$0xff]  ;;  %s7816_s17 = sld [smem:[#allocation86_spill]] }
0x1250   : > { %4935 = vmatmul.mubr.msk.bf16.vlgmr.msra.gmra.mrb[44].mxu0 %vm2291_vm2, %v3140_v23 }
0x1251   : > { %4952 = vmatprep.mubr.msk.bf16.mxu0 %vm6334_vm1, %v6333_v15  ;;  %4945 = vmatpush3.bf16.msra.mxu0 %v5364_v62 }
0x1252   : > { %4946 = vmatprep.subr.bf16.mxu0 %v6333_v15 }
0x1255   : > { %4947 = vmatpush3.bf16.msra.mxu0 %v5365_v63 }
0x1256   : > { %4948 = vmatprep.subr.bf16.mxu0 %v6333_v15 }
0x1259   : > { %4949 = vmatpush3.bf16.msra.mxu0 %v5366_v2 }
0x125a   : > { %4950 = vmatprep.subr.bf16.mxu0 %v6333_v15 }
0x125d   : > { %4951 = vmatpush3.bf16.msra.mxu0 %v5367_v3 }
0x125e   : > { %4968 = vmatprep.subr.bf16.mxu0 %v6333_v15 }
0x1323   : > { %v3181_v24 = vpop.f32.mrb[44].mxu0 }
0x1324   : > { %v4936_v26 = vpop.f32.mrb[45].mxu0 }
0x1325   : > { %v3184_v28 = vpop.f32.mrb[46].mxu0 }
0x1326   : > { %v3188_v29 = vpack.c.bf16 %v3184_v28, %v3181_v24  ;;  %v4937_v32 = vpop.f32.mrb[47].mxu0 }
0x1328   : > { %4941 = vmatmul.mubr.msk.bf16.vlgmr.msra.gmra.mrb[36].mxu1 %vm2291_vm2, %v3188_v29 }
0x1329   : > { %4964 = vmatprep.mubr.msk.bf16.mxu1 %vm6334_vm1, %v6333_v15 }
0x13fb   : > { %v3232_v30 = vpop.f32.mrb[36].mxu1 }
0x13fc   : > { %v3239_v46 = vadd.f32 %v3232_v30, %v2993_v52  ;;  %v4942_v31 = vpop.f32.mrb[37].mxu1 }
0x13fd   : > { %v3235_v33 = vpop.f32.mrb[38].mxu1 }
0x13fe   : > { %v3258_v34 = vadd.f32 %v3239_v46, %v7086_v8  ;;  %v3240_v35 = vadd.f32 %v3235_v33, %v2994_v57  ;;  %v4943_v39 = vpop.f32.mrb[39].mxu1  ;;  %v3270_v8 = vld [vmem:[%s1614_s1 + $0x8] sm:$0xff]  ;;  %s6339_s1 = smov 64  }
0x13ff   : > { %3322 = vperm.xlu0 %5331, %v3270_v8   ;;  %v3433_v39 = vlaneseq }
0x1400   : > { %v7335_v40 = vadd.f32 %v4618_v47, %v3258_v34  ;;  %v3259_v41 = vadd.f32 %v3240_v35, %v7089_v10 }
0x1402   : > { %v7338_v42 = vadd.f32 %v4618_v47, %v3259_v41  ;;  %v3273_v43 = vsel %vm1646_vm0, %v7335_v40, 0.0  ;;  %v7369_v41 = vshrl.u32 %v3433_v39, 7 }
0x1403   : > { %3274 = vadd.xlane.f32.xlu1 %v3273_v43 }
0x1404   : > { %v3276_v44 = vsel %vm1646_vm0, %v7338_v42, 0.0  ;;  %v3435_v43 = vadd.s32 8, %v7369_v41  ;;  %v3459_v8 = vsub.s32 0, %v7369_v41  ;;  %vm3440_vm3 = vcmp.lt.s32.totalorder %v7369_v41, 3 }
0x1405   : > { %vm3473_vm4 = vcmp.lt.s32.totalorder %v7369_v41, 2  ;;  %vm3500_vm5 = vcmp.lt.s32.totalorder %v7369_v41, 1  ;;  %vm3535_vm6 = vcmp.lt.s32.totalorder %v7369_v41, 7  ;;  %vm3562_vm8 = vcmp.lt.s32.totalorder %v7369_v41, 6 }
0x1406   : > { %v3443_v2 = vadd.s32 4294967293, %v7369_v41  ;;  %vm3589_vm9 = vcmp.lt.s32.totalorder %v7369_v41, 5 }
0x1407   : > { %3277 = vadd.xlane.f32.xlu1 %v3276_v44  ;;  %v3527_v44 = vsub.s32 3, %v7369_v41 }
0x1408   : > { %vm3445_vm10 = vcmp.ge.s32.totalorder %v3443_v2, 0 }
0x147e   : > { %v7361_v16 = vpop.permute.xlu0 %3322 }
0x1490   : > { %v3275_v48 = vpop.xlane.xlu1 %3274 }
0x1491   : > { %v3279_v10 = vmul.f32 0.015625, %v3275_v48  ;;  %v3492_v48 = vsub.s32 1, %v7369_v41 }
0x1493   : > { %v3281_v49 = vsub.f32 %v7335_v40, %v3279_v10  ;;  %v3519_v10 = vsub.s32 2, %v7369_v41 }
0x1494   : > { %v3278_v52 = vpop.xlane.xlu1 %3277 }
0x1495   : > { %v3280_v53 = vmul.f32 0.015625, %v3278_v52  ;;  %v3283_v56 = vmul.f32 %v3281_v49, %v3281_v49  ;;  %v3554_v52 = vsub.s32 4, %v7369_v41 }
0x1497   : > { %v3282_v57 = vsub.f32 %v7338_v42, %v3280_v53  ;;  %v3285_v58 = vsel %vm1646_vm0, %v3283_v56, 0.0  ;;  %v7380_v53 = vrot.slane %v7373_v45, %v3527_v44  ;;  %v3581_v56 = vsub.s32 5, %v7369_v41 }
0x1498   : > { %3286 = vadd.xlane.f32.xlu1 %v3285_v58  ;;  %v3460_v58 = vrot.slane %v7373_v45, %v3459_v8  ;;  %v7393_v63 = vrot.slane %v7373_v45, %v3554_v52 }
0x1499   : > { %v3284_v59 = vmul.f32 %v3282_v57, %v3282_v57 }
0x149b   : > { %v3288_v60 = vsel %vm1646_vm0, %v3284_v59, 0.0  ;;  %v3493_v59 = vrot.slane %v7373_v45, %v3492_v48 }
0x149c   : > { %3289 = vadd.xlane.f32.xlu1 %v3288_v60 }
0x14ad   : > { %3317 = vperm.xlu1 %5330, %v3269_v61   ;;  %v3520_v61 = vrot.slane %v7373_v45, %v3519_v10 }
0x1525   : > { %v3287_v4 = vpop.xlane.xlu1 %3286 }
0x1526   : > { %v3291_v5 = vmul.f32 0.015625, %v3287_v4  ;;  %v3566_v4 = vadd.s32 2, %v3435_v43 }
0x1528   : > { %v3293_v51 = vadd.f32 1e-05, %v3291_v5  ;;  %v7400_v5 = vrot.slane %v7373_v45, %v3581_v56  ;;  %vm3570_vm11 = vcmp.lt.s32.totalorder %v3566_v4, 16 }
0x1529   : > { %v3290_v6 = vpop.xlane.xlu1 %3289 }
0x152a   : > { %5432 = vrsqrt.f32 %v3293_v51  ;;  %v3292_v55 = vmul.f32 0.015625, %v3290_v6  ;;  %v3593_v6 = vadd.s32 3, %v3435_v43 }
0x152c   : > { %v3294_v7 = vadd.f32 1e-05, %v3292_v55  ;;  %v3476_v55 = vadd.s32 4294967294, %v7369_v41  ;;  %vm3597_vm14 = vcmp.lt.s32.totalorder %v3593_v6, 16 }
0x152d   : > { %v7359_v18 = vpop.permute.xlu1 %3317 }
0x152e   : > { %5434 = vrsqrt.f32 %v3294_v7  ;;  %v3503_v7 = vadd.s32 4294967295, %v7369_v41  ;;  %vm3478_vm12 = vcmp.ge.s32.totalorder %v3476_v55, 0 }
0x1530   : > { %vm3505_vm13 = vcmp.ge.s32.totalorder %v3503_v7, 0 }
0x1534   : > { %v5433_v9 = vpop.eup %5432 }
0x1535   : > { %v3297_v12 = vmul.f32 %v5433_v9, %v3281_v49  ;;  %v3539_v49 = vadd.s32 1, %v3435_v43 }
0x1537   : > { %v3305_v13 = vmul.f32 %v4619_v11, %v3297_v12  ;;  %vm3543_vm7 = vcmp.lt.s32.totalorder %v3539_v49, 16 }
0x1538   : > { %v5435_v50 = vpop.eup %5434 }
0x1539   : > { %v3298_v54 = vmul.f32 %v5435_v50, %v3282_v57  ;;  %v3313_v14 = vadd.f32 %v4620_v27, %v3305_v13 }
0x153b   : > { %v3306_v19 = vmul.f32 %v4619_v11, %v3298_v54  ;;  %v3325_v17 = vmul.f32 %v7359_v18, %v3313_v14  ;;  %v3608_v54 = vsub.s32 6, %v7369_v41  ;;  %v4629_v14 = vld [vmem:[%s7814_s6] ss:$0 sm:$0xff]  ;;  %s7818_s6 = sld [smem:[#allocation87_spill]] }
0x153d   : > { %v3314_v0 = vadd.f32 %v4620_v27, %v3306_v19 }
0x153f   : > { %v3326_v1 = vmul.f32 %v7361_v16, %v3314_v0 }
0x1541   : > { %v3327_v20 = vpack.c.bf16 %v3326_v1, %v3325_v17 }
0x1543   : > { %4953 = vmatmul.mubr.msk.bf16.vlgmr.msra.gmra.mrb[48].mxu0 %vm1646_vm0, %v3327_v20 }
0x1544   : > { %4976 = vmatprep.mubr.msk.bf16.mxu0 %vm6334_vm1, %v6333_v15 }
0x1616   : > { %v3404_v38 = vpop.f32.mrb[48].mxu0 }
0x1617   : > { %v3405_v23 = vadd.f32 %v4621_v21, %v3404_v38  ;;  %v4954_v24 = vpop.f32.mrb[49].mxu0 }
0x1618   : > { %v3407_v26 = vpop.f32.mrb[50].mxu0 }
0x1619   : > { %v4627_v28 = vmul.f32 -1.442695, %v3405_v23  ;;  %v3408_v29 = vadd.f32 %v4621_v21, %v3407_v26  ;;  %v4955_v32 = vpop.f32.mrb[51].mxu0 }
0x161b   : > { %5436 = vpow2.f32 %v4627_v28  ;;  %v4628_v30 = vmul.f32 -1.442695, %v3408_v29 }
0x161d   : > { %5438 = vpow2.f32 %v4628_v30 }
0x1625   : > { %v5437_v46 = vpop.eup %5436 }
0x1626   : > { %v3417_v31 = vadd.f32 1.0, %v5437_v46 }
0x1627   : > { %v5439_v47 = vpop.eup %5438 }
0x1628   : > { %5440 = vrcp.f32 %v3417_v31  ;;  %v3418_v33 = vadd.f32 1.0, %v5439_v47 }
0x162a   : > { %5442 = vrcp.f32 %v3418_v33 }
0x1632   : > { %v5441_v34 = vpop.eup %5440 }
0x1633   : > { %3425 = vrot.lane.b32.xlu0 %v5441_v34, %s6339_s1 }
0x1634   : > { %v5443_v35 = vpop.eup %5442 }
0x1635   : > { %3427 = vrot.lane.b32.xlu1 %v5443_v35, %s6339_s1  ;;  %s7817_s1 = sld [smem:[#allocation85_spill]] }
0x16a5   : > { %v3426_v57 = vpop.permute.xlu0 %3425 }
0x16a6   : > { %v7387_v60 = vmul.f32 %v3426_v57, %v3405_v23 }
0x16a7   : > { %v3428_v62 = vpop.permute.xlu1 %3427 }
0x16a8   : > { %v7397_v3 = vmul.f32 %v3428_v62, %v3408_v29  ;;  %v3438_v51 = vrot.slane %v7387_v60, 5  ;;  %v3471_v11 = vrot.slane %v7387_v60, 6  ;;  %v3498_v50 = vrot.slane %v7387_v60, 7 }
0x16a9   : > { %v3533_v21 = vrot.slane %v7387_v60, 1  ;;  %v3560_v23 = vrot.slane %v7387_v60, 2  ;;  %v3587_v46 = vrot.slane %v7387_v60, 3 }
0x16aa   : > { %v3439_v9 = vrot.slane %v7397_v3, 5  ;;  %v3472_v12 = vrot.slane %v7397_v3, 6  ;;  %v3499_v13 = vrot.slane %v7397_v3, 7  ;;  %v3534_v27 = vrot.slane %v7397_v3, 1 }
0x16ab   : > { %v3561_v38 = vrot.slane %v7397_v3, 2  ;;  %v3588_v32 = vrot.slane %v7397_v3, 3  ;;  %v3530_v52 = vmul.f32 %v7380_v53, %v7397_v3  ;;  %v3529_v3 = vmul.f32 %v7380_v53, %v7387_v60 }
0x16ac   : > { %v3441_v19 = vsel %vm3440_vm3, %v3438_v51, %v3439_v9  ;;  %v3474_v0 = vsel %vm3473_vm4, %v3471_v11, %v3472_v12  ;;  %v3442_v17 = vsel %vm3440_vm3, %v3439_v9, %v3438_v51  ;;  %v3501_v20 = vsel %vm3500_vm5, %v3498_v50, %v3499_v13 }
0x16ad   : > { %v3462_v1 = vmul.f32 %v3460_v58, %v3441_v19  ;;  %v3455_v24 = vsel %vm3445_vm10, %v3442_v17, 0.0  ;;  %v3495_v28 = vmul.f32 %v3493_v59, %v3474_v0  ;;  %v3537_v29 = vsel %vm3535_vm6, %v3534_v27, %v3533_v21 }
0x16ae   : > { %v3522_v30 = vmul.f32 %v3520_v61, %v3501_v20  ;;  %v3461_v31 = vmul.f32 %v3460_v58, %v3455_v24  ;;  %v3475_v47 = vsel %vm3473_vm4, %v3472_v12, %v3471_v11  ;;  %v3564_v34 = vsel %vm3562_vm8, %v3561_v38, %v3560_v23 }
0x16af   : > { %v3470_v26 = vadd.f32 %v4629_v14, %v3462_v1  ;;  %v3488_v35 = vsel %vm3478_vm12, %v3475_v47, 0.0  ;;  %v3502_v39 = vsel %vm3500_vm5, %v3499_v13, %v3498_v50  ;;  %v3551_v43 = vsel %vm3543_vm7, %v3537_v29, 0.0  ;;  %v5370_v29 = vld [vmem:[#allocation32 + $0x10] sm:$0xff]  }
0x16b0   : > { %v3469_v44 = vadd.f32 %v4629_v14, %v3461_v31  ;;  %v3494_v8 = vmul.f32 %v3493_v59, %v3488_v35  ;;  %v3515_v48 = vsel %vm3505_vm13, %v3502_v39, 0.0  ;;  %v3591_v56 = vsel %vm3589_vm9, %v3588_v32, %v3587_v46  ;;  %v4630_v39 = vld [vmem:[#allocation29] ss:$0 sm:$0xff] }
0x16b1   : > { %v3497_v33 = vadd.f32 %v3495_v28, %v3470_v26  ;;  %v3578_v57 = vsel %vm3570_vm11, %v3564_v34, 0.0  ;;  %v3521_v62 = vmul.f32 %v3520_v61, %v3515_v48  ;;  %v3557_v49 = vmul.f32 %v7393_v63, %v3551_v43  ;;  %v5368_v26 = vld [vmem:[#allocation32] sm:$0xff]   ;;  %v5369_v28 = vld [vmem:[#allocation32 + $0x8] sm:$0xff]  }
0x16b2   : > { %v3496_v58 = vadd.f32 %v3494_v8, %v3469_v44  ;;  %v3609_v51 = vrot.slane %v7373_v45, %v3608_v54  ;;  %v3536_v59 = vsel %vm3535_vm6, %v3533_v21, %v3534_v27  ;;  %v3605_v55 = vsel %vm3597_vm14, %v3591_v56, 0.0  ;;  %4957 = vmatpush3.bf16.msra.mxu1 %v5368_v26  ;;  %v4631_v44 = vld [vmem:[#allocation31] ss:$0 sm:$0xff] }
0x16b3   : > { %v3524_v10 = vadd.f32 %v3522_v30, %v3497_v33  ;;  %v3584_v6 = vmul.f32 %v7400_v5, %v3578_v57  ;;  %v3563_v4 = vsel %vm3562_vm8, %v3560_v23, %v3561_v38  ;;  %v3556_v11 = vmul.f32 %v7393_v63, %v3536_v59  ;;  %4958 = vmatprep.subr.bf16.mxu1 %v6333_v15 }
0x16b4   : > { %v3523_v7 = vadd.f32 %v3521_v62, %v3496_v58  ;;  %v3611_v13 = vmul.f32 %v3609_v51, %v3605_v55  ;;  %v3590_v45 = vsel %vm3589_vm9, %v3587_v46, %v3588_v32  ;;  %v3583_v27 = vmul.f32 %v7400_v5, %v3563_v4  ;;  %v5371_v32 = vld [vmem:[#allocation32 + $0x18] sm:$0xff]   ;;  %v4634_v4 = vld [vmem:[#allocation34] ss:$0 sm:$0xff] }
0x16b5   : > { %v3532_v2 = vadd.f32 %v3530_v52, %v3524_v10  ;;  %v3610_v53 = vmul.f32 %v3609_v51, %v3590_v45 }
0x16b6   : > { %v3531_v61 = vadd.f32 %v3529_v3, %v3523_v7  ;;  %4959 = vmatpush3.bf16.msra.mxu1 %v5369_v28 }
0x16b7   : > { %v3559_v9 = vadd.f32 %v3557_v49, %v3532_v2  ;;  %4960 = vmatprep.subr.bf16.mxu1 %v6333_v15 }
0x16b8   : > { %v3558_v50 = vadd.f32 %v3556_v11, %v3531_v61 }
0x16b9   : > { %v3586_v12 = vadd.f32 %v3584_v6, %v3559_v9 }
0x16ba   : > { %v3585_v14 = vadd.f32 %v3583_v27, %v3558_v50  ;;  %4961 = vmatpush3.bf16.msra.mxu1 %v5370_v29 }
0x16bb   : > { %v3613_v54 = vadd.f32 %v3611_v13, %v3586_v12  ;;  %4962 = vmatprep.subr.bf16.mxu1 %v6333_v15 }
0x16bc   : > { %v3612_v19 = vadd.f32 %v3610_v53, %v3585_v14 }
0x16bd   : > { %v3619_v60 = vsel %vm1646_vm0, %v3613_v54, 0.0 }
0x16be   : > { %3620 = vadd.xlane.f32.xlu1 %v3619_v60  ;;  %v3616_v0 = vsel %vm1646_vm0, %v3612_v19, 0.0  ;;  %4963 = vmatpush3.bf16.msra.mxu1 %v5371_v32 }
0x16bf   : > { %3617 = vadd.xlane.f32.xlu0 %v3616_v0  ;;  %4980 = vmatprep.subr.bf16.mxu1 %v6333_v15 }
0x174b   : > { %v3621_v17 = vpop.xlane.xlu1 %3620 }
0x174c   : > { %v3623_v63 = vmul.f32 0.015625, %v3621_v17  ;;  %v3618_v1 = vpop.xlane.xlu0 %3617 }
0x174d   : > { %v3622_v20 = vmul.f32 0.015625, %v3618_v1 }
0x174e   : > { %v3625_v21 = vsub.f32 %v3613_v54, %v3623_v63 }
0x174f   : > { %v3624_v41 = vsub.f32 %v3612_v19, %v3622_v20 }
0x1750   : > { %v3627_v5 = vmul.f32 %v3625_v21, %v3625_v21 }
0x1751   : > { %v3626_v38 = vmul.f32 %v3624_v41, %v3624_v41 }
0x1752   : > { %v3631_v24 = vsel %vm1646_vm0, %v3627_v5, 0.0  ;;  %v5375_v5 = vld [vmem:[%s7815_s13 + $0x18] sm:$0xff]  }
0x1753   : > { %v3628_v23 = vsel %vm1646_vm0, %v3626_v38, 0.0  ;;  %v5373_v38 = vld [vmem:[%s7815_s13 + $0x8] sm:$0xff]  }
0x1754   : > { %3629 = vadd.xlane.f32.xlu0 %v3628_v23  ;;  %v5374_v23 = vld [vmem:[%s7815_s13 + $0x10] sm:$0xff]  }
0x1758   : > { %3632 = vadd.xlane.f32.xlu0 %v3631_v24 }
0x17e1   : > { %v3630_v30 = vpop.xlane.xlu0 %3629 }
0x17e2   : > { %v3634_v46 = vmul.f32 0.015625, %v3630_v30 }
0x17e4   : > { %v3636_v31 = vadd.f32 1e-05, %v3634_v46 }
0x17e5   : > { %v3633_v47 = vpop.xlane.xlu0 %3632 }
0x17e6   : > { %5444 = vrsqrt.f32 %v3636_v31  ;;  %v3635_v33 = vmul.f32 0.015625, %v3633_v47  ;;  %v4640_v31 = vld [vmem:[#allocation35] ss:$0 sm:$0xff] }
0x17e8   : > { %v3637_v34 = vadd.f32 1e-05, %v3635_v33 }
0x17ea   : > { %5446 = vrsqrt.f32 %v3637_v34 }
0x17f0   : > { %v5445_v35 = vpop.eup %5444 }
0x17f1   : > { %v3640_v43 = vmul.f32 %v5445_v35, %v3624_v41  ;;  %v5372_v41 = vld [vmem:[%s7815_s13] sm:$0xff]   ;;  %s6122_s13 = sshll.u32 %s6341_s12, 4  ;;  %s6123_s13 = int_to_ptr.vmem [resolvable:$false] %s6122_s13 }
0x17f2   : > { %4969 = vmatpush3.bf16.msra.mxu0 %v5372_v41  ;;  %s6124_s14 = scalar_lea.vmem %s6123_s13, 2048 }
0x17f3   : > { %v3648_v8 = vmul.f32 %v4630_v39, %v3640_v43  ;;  %4970 = vmatprep.subr.bf16.mxu0 %v6333_v15 }
0x17f4   : > { %v5447_v48 = vpop.eup %5446 }
0x17f5   : > { %v3641_v10 = vmul.f32 %v5447_v48, %v3625_v21  ;;  %v3656_v52 = vadd.f32 %v4631_v44, %v3648_v8 }
0x17f6   : > { %4971 = vmatpush3.bf16.msra.mxu0 %v5373_v38 }
0x17f7   : > { %v3649_v56 = vmul.f32 %v4630_v39, %v3641_v10  ;;  %v4632_v57 = vmul.f32 -1.442695, %v3656_v52  ;;  %4972 = vmatprep.subr.bf16.mxu0 %v6333_v15  ;;  %v4641_v39 = vld [vmem:[#allocation37] ss:$0 sm:$0xff] }
0x17f8   : > { %v5376_v10 = vld [vmem:[%s7816_s17] sm:$0xff]  }
0x17f9   : > { %v3657_v58 = vadd.f32 %v4631_v44, %v3649_v56  ;;  %5448 = vpow2.f32 %v4632_v57  ;;  %v5378_v56 = vld [vmem:[%s7816_s17 + $0x10] sm:$0xff]   ;;  %v5379_v57 = vld [vmem:[%s7816_s17 + $0x18] sm:$0xff]  }
0x17fa   : > { %4973 = vmatpush3.bf16.msra.mxu0 %v5374_v23 }
0x17fb   : > { %v4633_v62 = vmul.f32 -1.442695, %v3657_v58  ;;  %4974 = vmatprep.subr.bf16.mxu0 %v6333_v15 }
0x17fd   : > { %5450 = vpow2.f32 %v4633_v62  ;;  %v5381_v62 = vld [vmem:[%s7816_s17 + $0x28] sm:$0xff]  }
0x17fe   : > { %4975 = vmatpush3.bf16.msra.mxu0 %v5375_v5 }
0x1803   : > { %v5449_v2 = vpop.eup %5448 }
0x1804   : > { %v3664_v49 = vadd.f32 1.0, %v5449_v2  ;;  %v5382_v2 = vld [vmem:[%s7816_s17 + $0x30] sm:$0xff]  }
0x1806   : > { %5452 = vrcp.f32 %v3664_v49  ;;  %v5383_v49 = vld [vmem:[%s7816_s17 + $0x38] sm:$0xff]  }
0x1807   : > { %v5451_v51 = vpop.eup %5450 }
0x1808   : > { %v3665_v59 = vadd.f32 1.0, %v5451_v51  ;;  %v4642_v51 = vld [vmem:[%s7817_s1] ss:$0 sm:$0xff]  ;;  %s7819_s1 = smov 112  }
0x180a   : > { %5454 = vrcp.f32 %v3665_v59 }
0x1810   : > { %v5453_v55 = vpop.eup %5452 }
0x1811   : > { %v3670_v3 = vmul.f32 %v5453_v55, %v3656_v52  ;;  %v5377_v52 = vld [vmem:[%s7816_s17 + $0x8] sm:$0xff]  }
0x1814   : > { %v5455_v7 = vpop.eup %5454 }
0x1815   : > { %v3671_v9 = vmul.f32 %v5455_v7, %v3657_v58  ;;  %v5380_v58 = vld [vmem:[%s7816_s17 + $0x20] sm:$0xff]  }
0x1817   : > { %v3672_v6 = vpack.c.bf16 %v3671_v9, %v3670_v3 }
0x1819   : > { %4965 = vmatmul.mubr.msk.bf16.vlgmr.msra.gmra.mrb[40].mxu1 %vm1646_vm0, %v3672_v6 }
0x181a   : > { %4996 = vmatprep.mubr.msk.bf16.mxu1 %vm6334_vm1, %v6333_v15  ;;  %4981 = vmatpush3.bf16.msra.mxu1 %v5376_v10 }
0x181b   : > { %4982 = vmatprep.subr.bf16.mxu1 %v6333_v15 }
0x181e   : > { %4983 = vmatpush3.bf16.msra.mxu1 %v5377_v52 }
0x181f   : > { %4984 = vmatprep.subr.bf16.mxu1 %v6333_v15 }
0x1822   : > { %4985 = vmatpush3.bf16.msra.mxu1 %v5378_v56 }
0x1823   : > { %4986 = vmatprep.subr.bf16.mxu1 %v6333_v15 }
0x1826   : > { %4987 = vmatpush3.bf16.msra.mxu1 %v5379_v57 }
0x1827   : > { %4988 = vmatprep.subr.bf16.mxu1 %v6333_v15 }
0x182a   : > { %4989 = vmatpush3.bf16.msra.mxu1 %v5380_v58 }
0x182b   : > { %4990 = vmatprep.subr.bf16.mxu1 %v6333_v15 }
0x182e   : > { %4991 = vmatpush3.bf16.msra.mxu1 %v5381_v62 }
0x182f   : > { %4992 = vmatprep.subr.bf16.mxu1 %v6333_v15 }
0x1832   : > { %4993 = vmatpush3.bf16.msra.mxu1 %v5382_v2 }
0x1833   : > { %4994 = vmatprep.subr.bf16.mxu1 %v6333_v15 }
0x1836   : > { %4995 = vmatpush3.bf16.msra.mxu1 %v5383_v49 }
0x18ec   : > { %v3749_v61 = vpop.f32.mrb[40].mxu1 }
0x18ed   : > { %v3750_v11 = vadd.f32 %v4634_v4, %v3749_v61  ;;  %v4966_v12 = vpop.f32.mrb[41].mxu1 }
0x18ee   : > { %v3752_v13 = vpop.f32.mrb[42].mxu1 }
0x18ef   : > { %v3756_v45 = vmul.f32 %v3750_v11, %v7359_v18  ;;  %v3753_v50 = vadd.f32 %v4634_v4, %v3752_v13  ;;  %v4967_v27 = vpop.f32.mrb[43].mxu1 }
0x18f1   : > { %v7468_v54 = vadd.f32 %v3756_v45, %v7335_v40  ;;  %v3757_v14 = vmul.f32 %v3753_v50, %v7361_v16 }
0x18f3   : > { %v7472_v53 = vadd.f32 %v3757_v14, %v7338_v42  ;;  %v3788_v60 = vsel %vm1646_vm0, %v7468_v54, 0.0 }
0x18f4   : > { %3789 = vadd.xlane.f32.xlu0 %v3788_v60 }
0x18f5   : > { %v3791_v19 = vsel %vm1646_vm0, %v7472_v53, 0.0 }
0x18f6   : > { %3792 = vadd.xlane.f32.xlu1 %v3791_v19  ;;  %v4650_v19 = vld [vmem:[%s7818_s6] ss:$0 sm:$0xff]  ;;  %s7820_s6 = smov 96  }
0x1981   : > { %v3790_v18 = vpop.xlane.xlu0 %3789 }
0x1982   : > { %v3794_v0 = vmul.f32 0.015625, %v3790_v18 }
0x1983   : > { %v3793_v40 = vpop.xlane.xlu1 %3792 }
0x1984   : > { %v3796_v17 = vsub.f32 %v7468_v54, %v3794_v0  ;;  %v3795_v16 = vmul.f32 0.015625, %v3793_v40 }
0x1986   : > { %v3797_v42 = vsub.f32 %v7472_v53, %v3795_v16  ;;  %v3798_v63 = vmul.f32 %v3796_v17, %v3796_v17 }
0x1988   : > { %v3800_v1 = vsel %vm1646_vm0, %v3798_v63, 0.0  ;;  %v3799_v20 = vmul.f32 %v3797_v42, %v3797_v42 }
0x1989   : > { %3801 = vadd.xlane.f32.xlu0 %v3800_v1 }
0x198a   : > { %v3803_v21 = vsel %vm1646_vm0, %v3799_v20, 0.0 }
0x198b   : > { %3804 = vadd.xlane.f32.xlu1 %v3803_v21 }
0x1a16   : > { %v3802_v24 = vpop.xlane.xlu0 %3801 }
0x1a17   : > { %v3806_v26 = vmul.f32 0.015625, %v3802_v24 }
0x1a18   : > { %v3805_v28 = vpop.xlane.xlu1 %3804 }
0x1a19   : > { %v3808_v29 = vadd.f32 1e-05, %v3806_v26  ;;  %v3807_v32 = vmul.f32 0.015625, %v3805_v28 }
0x1a1b   : > { %5456 = vrsqrt.f32 %v3808_v29  ;;  %v3809_v30 = vadd.f32 1e-05, %v3807_v32 }
0x1a1d   : > { %5458 = vrsqrt.f32 %v3809_v30 }
0x1a25   : > { %v5457_v46 = vpop.eup %5456 }
0x1a26   : > { %v3812_v47 = vmul.f32 %v5457_v46, %v3796_v17 }
0x1a27   : > { %v5459_v33 = vpop.eup %5458 }
0x1a28   : > { %v3820_v34 = vmul.f32 %v4640_v31, %v3812_v47  ;;  %v3813_v35 = vmul.f32 %v5459_v33, %v3797_v42 }
0x1a2a   : > { %v3821_v43 = vmul.f32 %v4640_v31, %v3813_v35  ;;  %v3828_v44 = vadd.f32 %v4641_v39, %v3820_v34 }
0x1a2c   : > { %v3829_v8 = vadd.f32 %v4641_v39, %v3821_v43 }
0x1a2e   : > { %v3830_v48 = vpack.c.bf16 %v3829_v8, %v3828_v44 }
0x1a30   : > { %4977 = vmatmul.mubr.msk.bf16.vlgmr.msra.gmra.mrb[52].mxu0 %vm1646_vm0, %v3830_v48 }
0x1b03   : > { %v3898_v59 = vpop.f32.mrb[52].mxu0 }
0x1b04   : > { %v3899_v55 = vadd.f32 %v4642_v51, %v3898_v59  ;;  %v4978_v7 = vpop.f32.mrb[53].mxu0 }
0x1b05   : > { %v3901_v3 = vpop.f32.mrb[54].mxu0 }
0x1b06   : > { %v4648_v9 = vmul.f32 -1.442695, %v3899_v55  ;;  %v3902_v6 = vadd.f32 %v4642_v51, %v3901_v3  ;;  %v4979_v4 = vpop.f32.mrb[55].mxu0 }
0x1b08   : > { %5460 = vpow2.f32 %v4648_v9  ;;  %v4649_v61 = vmul.f32 -1.442695, %v3902_v6 }
0x1b0a   : > { %5462 = vpow2.f32 %v4649_v61 }
0x1b12   : > { %v5461_v11 = vpop.eup %5460 }
0x1b13   : > { %v3911_v12 = vadd.f32 1.0, %v5461_v11 }
0x1b14   : > { %v5463_v13 = vpop.eup %5462 }
0x1b15   : > { %5464 = vrcp.f32 %v3911_v12  ;;  %v3912_v45 = vadd.f32 1.0, %v5463_v13 }
0x1b17   : > { %5466 = vrcp.f32 %v3912_v45 }
0x1b1f   : > { %v5465_v15 = vpop.eup %5464 }
0x1b20   : > { %v3917_v27 = vmul.f32 %v5465_v15, %v3899_v55 }
0x1b21   : > { %v5467_v50 = vpop.eup %5466 }
0x1b22   : > { %v3918_v14 = vmul.f32 %v5467_v50, %v3902_v6 }
0x1b24   : > { %v3919_v60 = vpack.c.bf16 %v3918_v14, %v3917_v27 }
0x1b26   : > { %4997 = vmatmul.mubr.bf16.vlgmr.msra.gmra.mrb[44].mxu1 %v3919_v60 }
0x1bf9   : > { %v4008_v18 = vpop.f32.mrb[44].mxu1 }
0x1bfa   : > { %v4009_v0 = vadd.f32 %v4650_v19, %v4008_v18  ;;  %v4998_v40 = vpop.f32.mrb[45].mxu1 }
0x1bfb   : > { %v4011_v17 = vpop.f32.mrb[46].mxu1 }
0x1bfc   : > { %v4015_v16 = vmul.f32 0.5, %v4009_v0  ;;  %v4012_v42 = vadd.f32 %v4650_v19, %v4011_v17  ;;  %v4999_v63 = vpop.f32.mrb[47].mxu1 }
0x1bfe   : > { %v4016_v1 = vmul.f32 0.5, %v4012_v42  ;;  %v4017_v20 = vadd.f32 %v4015_v16, %v7468_v54 }
0x1c00   : > { %v4021_v21 = vsel %vm1646_vm0, %v4017_v20, 0.0  ;;  %v4018_v41 = vadd.f32 %v4016_v1, %v7472_v53 }
0x1c01   : > { %4022 = vadd.xlane.f32.xlu0 %v4021_v21 }
0x1c02   : > { %v4024_v38 = vsel %vm1646_vm0, %v4018_v41, 0.0 }
0x1c03   : > { %4025 = vadd.xlane.f32.xlu1 %v4024_v38 }
0x1c14   : > { %2757 = vrot.lane.b32.xlu1 %v7150_v25, %s7819_s1 }
0x1c17   : > { %2755 = vrot.lane.b32.xlu0 %v7148_v22, %s7819_s1 }
0x1c18   : > { %2995 = vrot.lane.b32.xlu1 %v7148_v22, %s7820_s6 }
0x1c1b   : > { %3241 = vrot.lane.b32.xlu0 %v7148_v22, %s7821_s3 }
0x1c1c   : > { %2997 = vrot.lane.b32.xlu1 %v7150_v25, %s7820_s6 }
0x1c1f   : > { %2462 = vrot.lane.b32.xlu0 %v7178_v37, %s6340_s9 }
0x1c20   : > { %3243 = vrot.lane.b32.xlu1 %v7150_v25, %s7821_s3  ;;  %s4100_s3 = sshll.u32 %s7152_s19, 4  ;;  %s7576_s3 = int_to_ptr.vmem [resolvable:$true] %s4100_s3 }
0x1c21   : > { %s6118_s11 = scalar_lea.vmem %s7576_s3, 1024  ;;  %p6125_p6 = scmp.lt.s32.totalorder %s7576_s3, %s6123_s13 }
0x1c22   : > { %p6119_p7 = scmp.ne.s32.totalorder %s7576_s3, %s6118_s11  ;;  %p6126_p13 = scmp.lt.s32.totalorder %s6124_s14, %s6118_s11 }
0x1c24   : > { %2464 = vrot.lane.b32.xlu1 %v7176_v36, %s6340_s9  ;;  %s4673_s9 = sshll.u32 %s6586_s26, 10  ;;  %p6120_p4 = pnand %p6119_p7, %p7822_p10 }
0x1c25   : > { %p6127_p2 = por %p6126_p13, %p6125_p6 }
0x1c26   : > { %p6121_p0 = pneg %p6120_p4 }
0x1c28   : > { %3006 = vrot.lane.b32.xlu1 %v7176_v36, %s7819_s1  ;;  %p6128_p8 = pnand %p6127_p2, %p6121_p0 }
0x1c8e   : > { %v4023_v54 = vpop.xlane.xlu0 %4022 }
0x1c8f   : > { %v4027_v53 = vmul.f32 0.015625, %v4023_v54 }
0x1c90   : > { %v4026_v22 = vpop.xlane.xlu1 %4025 }
0x1c91   : > { %v7527_v23 = vsub.f32 %v4017_v20, %v4027_v53  ;;  %v4028_v5 = vmul.f32 0.015625, %v4026_v22 }
0x1c92   : > { %v2756_v24 = vpop.permute.xlu0 %2755 }
0x1c93   : > { %v7529_v26 = vsub.f32 %v4018_v41, %v4028_v5  ;;  %4596 = vst.msk [vmem:[%s7152_s19 + $0x10] sm:$0xff] %vm2291_vm2, %v2756_v24  ;;  %v4031_v25 = vmul.f32 %v7527_v23, %v7527_v23 }
0x1c94   : > { %4598 = vst.msk [vmem:[%s7152_s19 + $0x10] sm:$0xff] %vm2468_vm15, %v7178_v37  ;;  %v2758_v28 = vpop.permute.xlu1 %2757 }
0x1c95   : > { %4597 = vst.msk [vmem:[%s7152_s19 + $0x18] sm:$0xff] %vm2291_vm2, %v2758_v28  ;;  %v4033_v29 = vsel %vm1646_vm0, %v4031_v25, 0.0  ;;  %v4032_v32 = vmul.f32 %v7529_v26, %v7529_v26 }
0x1c96   : > { %4599 = vst.msk [vmem:[%s7152_s19 + $0x18] sm:$0xff] %vm2468_vm15, %v7176_v36  ;;  %4034 = vadd.xlane.f32.xlu0 %v4033_v29  ;;  %v3242_v30 = vpop.permute.xlu0 %3241 }
0x1c97   : > { %4614 = vst.msk [vmem:[%s7152_s19 + $0x30] sm:$0xff] %vm2291_vm2, %v3242_v30  ;;  %v4036_v46 = vsel %vm1646_vm0, %v4032_v32, 0.0 }
0x1c98   : > { %4037 = vadd.xlane.f32.xlu1 %v4036_v46  ;;  %v2996_v31 = vpop.permute.xlu1 %2995 }
0x1c99   : > { %4605 = vst.msk [vmem:[%s7152_s19 + $0x20] sm:$0xff] %vm2291_vm2, %v2996_v31 }
0x1c9a   : > { %v2463_v47 = vpop.permute.xlu0 %2462 }
0x1c9b   : > { %2469 = vst.msk [vmem:[%s7152_s19] sm:$0xff] %vm2468_vm15, %v2463_v47 }
0x1c9c   : > { %v2998_v33 = vpop.permute.xlu1 %2997 }
0x1c9d   : > { %4606 = vst.msk [vmem:[%s7152_s19 + $0x28] sm:$0xff] %vm2291_vm2, %v2998_v33 }
0x1ca0   : > { %v3244_v34 = vpop.permute.xlu1 %3243 }
0x1ca1   : > { %4615 = vst.msk [vmem:[%s7152_s19 + $0x38] sm:$0xff] %vm2291_vm2, %v3244_v34 }
0x1ca4   : > { %v2465_v35 = vpop.permute.xlu1 %2464 }
0x1ca5   : > { %2470 = vst.msk [vmem:[%s7152_s19 + $0x8] sm:$0xff] %vm2468_vm15, %v2465_v35 }
0x1ca8   : > { %v3007_v39 = vpop.permute.xlu1 %3006 }
0x1ca9   : > { %4608 = vst.msk [vmem:[%s7152_s19 + $0x28] sm:$0xff] %vm2468_vm15, %v3007_v39  ;;  %3252 = vrot.lane.b32.xlu1 %v7176_v36, %s7820_s6 }
0x1cac   : > { %3004 = vrot.lane.b32.xlu0 %v7178_v37, %s7819_s1  ;;  %s7574_s1 = scalar_lea.hbm %s7751_s5, %s4673_s9 }
0x1cb0   : > { %3250 = vrot.lane.b32.xlu0 %v7178_v37, %s7820_s6  ;;  %s4071_s6 = scalar_lea.sflag [#allocation40], %s6976_s4 }
0x1d23   : > { %v4035_v43 = vpop.xlane.xlu0 %4034 }
0x1d24   : > { %v4039_v44 = vmul.f32 0.015625, %v4035_v43 }
0x1d25   : > { %v4038_v8 = vpop.xlane.xlu1 %4037 }
0x1d26   : > { %v4041_v48 = vadd.f32 1e-05, %v4039_v44  ;;  %v4040_v10 = vmul.f32 0.015625, %v4038_v8 }
0x1d27   : > { %v3005_v52 = vpop.permute.xlu0 %3004 }
0x1d28   : > { %5468 = vrsqrt.f32 %v4041_v48  ;;  %v4042_v36 = vadd.f32 1e-05, %v4040_v10  ;;  %4607 = vst.msk [vmem:[%s7152_s19 + $0x20] sm:$0xff] %vm2468_vm15, %v3005_v52 }
0x1d29   : > { %v3253_v56 = vpop.permute.xlu1 %3252 }
0x1d2a   : > { %5470 = vrsqrt.f32 %v4042_v36  ;;  %4617 = vst.msk [vmem:[%s7152_s19 + $0x38] sm:$0xff] %vm2468_vm15, %v3253_v56 }
0x1d2b   : > { %v3251_v37 = vpop.permute.xlu0 %3250 }
0x1d2c   : > { %4616 = vst.msk [vmem:[%s7152_s19 + $0x30] sm:$0xff] %vm2468_vm15, %v3251_v37 }
0x1d2d   : > { %6131 = shalt.err (!%p6128_p8)
}
0x1d2e   : > { %s6132_s19 = scalar_lea.hbm %s7574_s1, 1024  ;;  %s6136_s12 = scalar_lea.hbm %s7751_s5, 2048 }
0x1d2f   : > { %p6133_p9 = scmp.ne.s32.totalorder %s7574_s1, %s6132_s19  ;;  %p6137_p3 = scmp.lt.u32.totalorder %s7574_s1, %s7751_s5 }
0x1d30   : > { %p6138_p12 = scmp.lt.u32.totalorder %s6136_s12, %s6132_s19  ;;  %p6140_p7 = scmp.lt.u32.totalorder %s6132_s19, %s7574_s1 }
0x1d31   : > { %p6134_p1 = pnand %p6133_p9, %p7822_p10 }
0x1d32   : > { %p6139_p5 = por %p6138_p12, %p6137_p3 }
0x1d33   : > { %p6135_p11 = pneg %p6134_p1 }
0x1d34   : > { %p6141_p4 = por %p6140_p7, %p6139_p5 }
0x1d36   : > { %p6142_p0 = pnand %p6141_p4, %p6135_p11 }
0x1d38   : > { %6145 = shalt.err (!%p6142_p0)
}
0x1d39   : > { %s6342_s14 = smov 128   ;;  %s7823_s11 = sld [smem:[#allocation88_spill]]  ;;  %v5469_v57 = vpop.eup %5468 }
0x1d3a   : > { %s7824_s13 = sld [smem:[#allocation89_spill]]  ;;  %s6343_s9 = smov 8   ;;  %v4045_v62 = vmul.f32 %v5469_v57, %v7527_v23  ;;  %v5471_v2 = vpop.eup %5470 }
0x1d3b   : > { %5091 = dma.vmem_to_hbm [thread:$0]  (%p7822_p10), %s7576_s3, 1024, %s7574_s1, %s4071_s6, %s6342_s14, %s6342_s14, %s6343_s9   ;;  %v4046_v59 = vmul.f32 %v5471_v2, %v7529_v26 }
0x1d3c   : > { %s7825_s19 = sld [smem:[#allocation90_spill]]  ;;  %s4532_s12 = sshll.u32 %s6976_s4, 4 }
0x1d3d   : > { %s4672_s5 = sshll.u32 %s6586_s26, 8  ;;  %s1597_s17 = scalar_lea.vmem [#allocation38], %s4532_s12 }
0x1d3e   : > { %s4084_s20 = sshll.u32 %s1597_s17, 4  ;;  %s4066_s1 = scalar_lea.sflag [#allocation4], %s6976_s4  ;;  %s7613_s20 = int_to_ptr.vmem [resolvable:$true] %s4084_s20 }
0x1d3f   : > { %v4659_v58 = vld [vmem:[%s7823_s11] ss:$0 sm:$0xff]  ;;  %s6146_s6 = scalar_lea.vmem %s7613_s20, 256  ;;  %s6344_s26 = smov [#allocation38]  }
0x1d40   : > { %v4660_v49 = vld [vmem:[%s7824_s13] ss:$0 sm:$0xff]  ;;  %v4053_v51 = vmul.f32 %v4659_v58, %v4045_v62  ;;  %v4054_v7 = vmul.f32 %v4659_v58, %v4046_v59  ;;  %p6147_p6 = scmp.ne.s32.totalorder %s7613_s20, %s6146_s6  ;;  %s6150_s11 = sshll.u32 %s6344_s26, 4  ;;  %s6151_s11 = int_to_ptr.vmem [resolvable:$false] %s6150_s11 }
0x1d41   : > { %s6152_s13 = scalar_lea.vmem %s6151_s11, 512  ;;  %p6153_p8 = scmp.lt.s32.totalorder %s7613_s20, %s6151_s11 }
0x1d42   : > { %v4061_v55 = vadd.f32 %v4660_v49, %v4053_v51  ;;  %v4062_v3 = vadd.f32 %v4660_v49, %v4054_v7  ;;  %s7611_s3 = scalar_lea.hbm %s7825_s19, %s4672_s5  ;;  %p6148_p13 = pnand %p6147_p6, %p7822_p10 }
0x1d43   : > { %p6154_p9 = scmp.lt.s32.totalorder %s6152_s13, %s6146_s6 }
0x1d44   : > { %4063 = vst.msk [vmem:[%s1597_s17] sm:$0xff] %vm1646_vm0, %v4061_v55  ;;  %4064 = vst.msk [vmem:[%s1597_s17 + $0x8] sm:$0xff] %vm1646_vm0, %v4062_v3  ;;  %p6149_p2 = pneg %p6148_p13 }
0x1d45   : > { %p6155_p1 = por %p6154_p9, %p6153_p8 }
0x1d47   : > { %p6156_p11 = pnand %p6155_p1, %p6149_p2 }
0x1d49   : > { %6159 = shalt.err (!%p6156_p11)
}
0x1d4a   : > { %s6160_s5 = scalar_lea.hbm %s7611_s3, 256  ;;  %s6164_s17 = scalar_lea.hbm %s7825_s19, 512 }
0x1d4b   : > { %p6161_p3 = scmp.ne.s32.totalorder %s7611_s3, %s6160_s5  ;;  %p6165_p7 = scmp.lt.u32.totalorder %s7611_s3, %s7825_s19 }
0x1d4c   : > { %p6166_p4 = scmp.lt.u32.totalorder %s6164_s17, %s6160_s5  ;;  %p6168_p6 = scmp.lt.u32.totalorder %s6160_s5, %s7611_s3 }
0x1d4d   : > { %p6162_p12 = pnand %p6161_p3, %p7822_p10 }
0x1d4e   : > { %p6167_p0 = por %p6166_p4, %p6165_p7 }
0x1d4f   : > { %p6163_p5 = pneg %p6162_p12 }
0x1d50   : > { %p6169_p13 = por %p6168_p6, %p6167_p0 }
0x1d52   : > { %p6170_p2 = pnand %p6169_p13, %p6163_p5 }
0x1d54   : > { %6173 = shalt.err (!%p6170_p2)
}
0x1d55   : > { %5090 = dma.vmem_to_hbm [thread:$0]  (%p7822_p10), %s7613_s20, 256, %s7611_s3, %s4066_s1, %s6342_s14, %s6342_s14, %s6343_s9  }
0x1d56 PF: > { %s4115_s12 = sand.u32 1, %s6248_s15   ;;  %p7826_p8 = scmp.ne.s32.totalorder %s7776_s8, 0 }
0x1d57   : > { %p7827_p9 = scmp.ge.s32.totalorder %s6260_s18, 2  ;;  %s4116_s6 = scalar_lea.sflag [#allocation4], %s4115_s12 }
0x1d59   : > { %p5166_p1 = pnand %p7827_p9, %p7826_p8 }
0x1d5b   : > { %6239 = dma.done.wait (!%p5166_p1), %s4116_s6, 256  }
0x1d5c   : > { %6241 = vsyncadd (!%p5166_p1), %s4116_s6, 4294967040  ;;  %s4125_s7 = scalar_lea.sflag [#allocation40], %s4115_s12 }
0x1d5d   : > { %6243 = dma.done.wait (!%p5166_p1), %s4125_s7, 1024  }
0x1d5e   : > { %6245 = vsyncadd (!%p5166_p1), %s4125_s7, 4294966272  ;;  %p113_p10 = scmp.ge.s32.totalorder %s6903_s2, 4   ;;  %s7828_s15 = smov %s6252_s0 }
0x1d5f   : > { %s7829_s0 = smov %s6256_s16  ;;  %s7830_s16 = smov %s6914_s10 }
0x1d60   : > { %s7831_s18 = smov %s6903_s2  ;;  %115 = sbr.rel (!%p113_p10) target bundleno = 105 (0x69), region = 385 }
0x1d67   :  { %4130 = vsyncpa [#allocation3], 1 }
0x1d68   :  { %4132 = vsyncpa [#allocation3 + $0x1], 1 }
0x1d69   :  { %4133 = vsyncpa [#allocation6], 1 }
0x1d6a   :  { %4134 = vsyncpa [#allocation9], 1 }
0x1d6b   :  { %4135 = vsyncpa [#allocation12], 1 }
0x1d6c   :  { %4136 = vsyncpa [#allocation15], 1 }
0x1d6d   :  { %4137 = vsyncpa [#allocation18], 1 }
0x1d6e   :  { %4138 = vsyncpa [#allocation21], 1 }
0x1d6f   :  { %4139 = vsyncpa [#allocation24], 1 }
0x1d70   :  { %4140 = vsyncpa [#allocation27], 1 }
0x1d71   :  { %4141 = vsyncpa [#allocation30], 1 }
0x1d72   :  { %4142 = vsyncpa [#allocation33], 1 }
0x1d73   :  { %4143 = vsyncpa [#allocation36], 1 }
0x1d74   :  { %4144 = vsyncpa [#allocation4], 1 }
0x1d75   :  { %4146 = vsyncpa [#allocation4 + $0x1], 1 }
0x1d76   :  { %4147 = vsyncpa [#allocation40], 1 }
0x1d77   :  { %4149 = vsyncpa [#allocation40 + $0x1], 1 }

</bundles_post_ra>
